<compile_context>
chip_gen: v6e
topology: v6e:2x2x1
jax: 0.10.0
libtpu: 0.0.40
codegen_flags: <defaults>
</compile_context>

<pallas_src>
import jax
import jax.numpy as jnp
from jax.experimental import pallas as pl
from jax.experimental.pallas import tpu as pltpu

IMAGE_SIZE = 28 * 28   # 784
HIDDEN_DIM = 256


def _discriminator_kernel(x_ref, w1_ref, b1_ref, w2_ref, b2_ref, w3_ref, b3_ref, o_ref):
    # x:  (TB, 784)  (bf16 preferred)     w1: (784, 256) matmul dtype   b1: (1, 256) f32
    # w2: (256, 256) matmul dtype         b2: (1, 256) f32
    # w3: (1, 256) f32                    b3: (1,) f32 (SMEM scalar)
    # o:  (TB, 1) f32
    x = x_ref[...].astype(w1_ref.dtype)   # no-op when x is already the matmul dtype

    # Linear 1 + LeakyReLU(0.2)   (MXU, f32 accumulation)
    h1 = jnp.dot(x, w1_ref[...], preferred_element_type=jnp.float32) + b1_ref[...]
    h1 = jnp.where(h1 > 0, h1, 0.2 * h1)

    # Linear 2 + LeakyReLU(0.2)
    h2 = jnp.dot(h1.astype(w2_ref.dtype), w2_ref[...],
                 preferred_element_type=jnp.float32) + b2_ref[...]
    h2 = jnp.where(h2 > 0, h2, 0.2 * h2)

    # Linear 3 (out_features = 1): VPU multiply + XLU lane reduction; keeps the
    # MXU free and avoids a lane-padded (256, 1) weight layout.
    logits = jnp.sum(h2 * w3_ref[...], axis=-1, keepdims=True) + b3_ref[0]   # (TB, 1)
    o_ref[...] = (1.0 / (1.0 + jnp.exp(-logits))).astype(o_ref.dtype)        # Sigmoid


def _round_up(v, m):
    return ((v + m - 1) // m) * m


def discriminator_forward(x, params, *, tb=None, matmul_dtype=jnp.bfloat16):
    """x: (B, 784), ideally already bf16 end-to-end from the caller.
    params: w1(784,256), b1(1,256), w2(256,256), b2(1,256), w3(1,256), b3(1,)."""
    B, F = x.shape
    assert F == IMAGE_SIZE

    if tb is None:
        # Multiple of 256, capped at 1024 (~85%+ of HBM roofline, few MiB VMEM),
        # and small enough that v7x's two TensorCores both get batch tiles.
        tb = max(256, min(1024, _round_up(pl.cdiv(B, 4), 256)))
    tb = min(tb, _round_up(B, 8))           # never larger than the (8-aligned) batch
    n_tiles = pl.cdiv(B, tb)                # partial last block handled by Pallas masking

    w1 = params["w1"].astype(matmul_dtype)
    w2 = params["w2"].astype(matmul_dtype)
    b1 = params["b1"].astype(jnp.float32)
    b2 = params["b2"].astype(jnp.float32)
    w3 = params["w3"].reshape(1, HIDDEN_DIM).astype(jnp.float32)
    b3 = params["b3"].reshape(1).astype(jnp.float32)

    def resident(arr):
        nd = arr.ndim
        return pl.BlockSpec(arr.shape, lambda i, _n=nd: (0,) * _n)

    param_bytes = sum(int(a.size) * a.dtype.itemsize for a in (w1, b1, w2, b2, w3, b3))
    cost = pl.CostEstimate(
        flops=2 * B * (IMAGE_SIZE * HIDDEN_DIM + HIDDEN_DIM * HIDDEN_DIM + HIDDEN_DIM),
        transcendentals=B,                                     # one exp per sample
        bytes_accessed=int(x.size) * x.dtype.itemsize + param_bytes + B * 4,
    )

    out = pl.pallas_call(
        _discriminator_kernel,
        out_shape=jax.ShapeDtypeStruct((B, 1), jnp.float32),
        grid_spec=pltpu.PrefetchScalarGridSpec(
            num_scalar_prefetch=0,
            grid=(n_tiles,),
            in_specs=[
                pl.BlockSpec((tb, IMAGE_SIZE), lambda i: (i, 0)),    # x (batch-tiled)
                resident(w1), resident(b1),                          # layer 1
                resident(w2), resident(b2),                          # layer 2
                resident(w3),                                        # layer 3 row
                pl.BlockSpec(memory_space=pltpu.MemorySpace.SMEM),   # b3 scalar
            ],
            out_specs=pl.BlockSpec((tb, 1), lambda i: (i, 0)),
        ),
        compiler_params=pltpu.CompilerParams(
            dimension_semantics=("parallel",)),   # v7x: shard batch tiles over 2 TCs
        cost_estimate=cost,
    )(x, w1, b1, w2, b2, w3, b3)

    return out


def init_params(key):
    """Deterministic init mimicking PyTorch Linear default (uniform +/- 1/sqrt(fan_in)).
    w1/w2 stored pre-transposed as [in, out]; w3 stored as a (1, 256) row."""
    ks = jax.random.split(key, 6)

    def linear(kw, kb, fan_in, fan_out):
        bound = 1.0 / jnp.sqrt(fan_in)
        w = jax.random.uniform(kw, (fan_in, fan_out), jnp.float32, -bound, bound)
        b = jax.random.uniform(kb, (fan_out,), jnp.float32, -bound, bound)
        return w, b

    w1, b1 = linear(ks[0], ks[1], IMAGE_SIZE, HIDDEN_DIM)
    w2, b2 = linear(ks[2], ks[3], HIDDEN_DIM, HIDDEN_DIM)
    w3, b3 = linear(ks[4], ks[5], HIDDEN_DIM, 1)
    return {"w1": w1, "b1": b1.reshape(1, -1),
            "w2": w2, "b2": b2.reshape(1, -1),
            "w3": w3.reshape(1, HIDDEN_DIM), "b3": b3.reshape(1)}


def _reference(x, p):
    h1 = x @ p["w1"] + p["b1"]
    h1 = jnp.where(h1 > 0, h1, 0.2 * h1)
    h2 = h1 @ p["w2"] + p["b2"]
    h2 = jnp.where(h2 > 0, h2, 0.2 * h2)
    logits = h2 @ p["w3"].T + p["b3"]
    return jax.nn.sigmoid(logits)


if __name__ == "__main__":
    key = jax.random.PRNGKey(0)
    k_params, k_x = jax.random.split(key)
    params = init_params(k_params)

    # B not a multiple of the tile -> exercises the masked partial last block
    # and gives 2 grid steps.  x is produced directly in bf16 (end-to-end bf16
    # input path: halves the dominant HBM read, no wrapper-side cast op).
    B = 300
    x = jax.random.normal(k_x, (B, IMAGE_SIZE), jnp.bfloat16)

    ref = _reference(x.astype(jnp.float32), params)

    # Exact (f32 matmul) path.
    out_f32 = jax.block_until_ready(
        discriminator_forward(x, params, matmul_dtype=jnp.float32))
    assert out_f32.shape == (B, 1)
    assert jnp.allclose(out_f32, ref, atol=2e-3, rtol=2e-3), \
        float(jnp.max(jnp.abs(out_f32 - ref)))

    # Default bf16-MXU path (f32 accumulation) -- looser tolerance.
    out_bf16 = jax.block_until_ready(discriminator_forward(x, params))
    assert out_bf16.shape == (B, 1)
    assert jnp.allclose(out_bf16, ref, atol=2e-2, rtol=0), \
        float(jnp.max(jnp.abs(out_bf16 - ref)))

    print("KERNEL_OK")
</pallas_src>

<mosaic_0001>
module attributes {stable_mosaic.version = 11 : i64} {
  func.func @_discriminator_kernel(%arg0: i32, %arg1: memref<256x784xbf16, #tpu.memory_space<vmem>>, %arg2: memref<784x256xf32, #tpu.memory_space<vmem>>, %arg3: memref<1x256xf32, #tpu.memory_space<vmem>>, %arg4: memref<256x256xf32, #tpu.memory_space<vmem>>, %arg5: memref<1x256xf32, #tpu.memory_space<vmem>>, %arg6: memref<1x256xf32, #tpu.memory_space<vmem>>, %arg7: memref<1xf32, #tpu.memory_space<smem>>, %arg8: memref<256x1xf32, #tpu.memory_space<vmem>>) attributes {dimension_semantics = [#tpu.dimension_semantics<parallel>], iteration_bounds = array<i64: 2>, scalar_prefetch = 0 : i64, scratch_operands = 0 : i64, tpu.core_type = #tpu.core_type<tc>, window_params = [{transform_indices = @transform_0, window_bounds = array<i64: 256, 784>}, {pipeline_mode = #tpu.pipeline_mode<synchronous>, transform_indices = @transform_1, window_bounds = array<i64: 784, 256>}, {pipeline_mode = #tpu.pipeline_mode<synchronous>, transform_indices = @transform_2, window_bounds = array<i64: 1, 256>}, {pipeline_mode = #tpu.pipeline_mode<synchronous>, transform_indices = @transform_3, window_bounds = array<i64: 256, 256>}, {pipeline_mode = #tpu.pipeline_mode<synchronous>, transform_indices = @transform_4, window_bounds = array<i64: 1, 256>}, {pipeline_mode = #tpu.pipeline_mode<synchronous>, transform_indices = @transform_5, window_bounds = array<i64: 1, 256>}, {transform_indices = @transform_6, window_bounds = array<i64: 1>}, {transform_indices = @transform_7, window_bounds = array<i64: 256, 1>}]} {
    %c0 = arith.constant 0 : index
    %c0_0 = arith.constant 0 : index
    %0 = vector.load %arg1[%c0, %c0_0] : memref<256x784xbf16, #tpu.memory_space<vmem>>, vector<256x784xbf16>
    %1 = arith.extf %0 : vector<256x784xbf16> to vector<256x784xf32>
    %c0_1 = arith.constant 0 : index
    %c0_2 = arith.constant 0 : index
    %2 = vector.load %arg2[%c0_1, %c0_2] : memref<784x256xf32, #tpu.memory_space<vmem>>, vector<784x256xf32>
    %cst = arith.constant dense<0.000000e+00> : vector<256x256xf32>
    %3 = tpu.matmul %1, %2, %cst {dimension_numbers = #tpu.dot_dimension_numbers<[1], [0], [0], [1], [0, 0, 1, 1], [], []>} : vector<256x784xf32>, vector<784x256xf32>, vector<256x256xf32> -> vector<256x256xf32>
    %c0_3 = arith.constant 0 : index
    %c0_4 = arith.constant 0 : index
    %4 = vector.load %arg3[%c0_3, %c0_4] : memref<1x256xf32, #tpu.memory_space<vmem>>, vector<1x256xf32>
    %5 = vector.broadcast %4 : vector<1x256xf32> to vector<256x256xf32>
    %6 = arith.addf %3, %5 : vector<256x256xf32>
    %cst_5 = arith.constant 0.000000e+00 : f32
    %7 = vector.broadcast %cst_5 : f32 to vector<256x256xf32>
    %8 = arith.cmpf ogt, %6, %7 : vector<256x256xf32>
    %cst_6 = arith.constant 2.000000e-01 : f32
    %9 = vector.broadcast %cst_6 : f32 to vector<256x256xf32>
    %10 = arith.mulf %9, %6 : vector<256x256xf32>
    %11 = arith.select %8, %6, %10 : vector<256x256xi1>, vector<256x256xf32>
    %c0_7 = arith.constant 0 : index
    %c0_8 = arith.constant 0 : index
    %12 = vector.load %arg4[%c0_7, %c0_8] : memref<256x256xf32, #tpu.memory_space<vmem>>, vector<256x256xf32>
    %cst_9 = arith.constant dense<0.000000e+00> : vector<256x256xf32>
    %13 = tpu.matmul %11, %12, %cst_9 {dimension_numbers = #tpu.dot_dimension_numbers<[1], [0], [0], [1], [0, 0, 1, 1], [], []>} : vector<256x256xf32>, vector<256x256xf32>, vector<256x256xf32> -> vector<256x256xf32>
    %c0_10 = arith.constant 0 : index
    %c0_11 = arith.constant 0 : index
    %14 = vector.load %arg5[%c0_10, %c0_11] : memref<1x256xf32, #tpu.memory_space<vmem>>, vector<1x256xf32>
    %15 = vector.broadcast %14 : vector<1x256xf32> to vector<256x256xf32>
    %16 = arith.addf %13, %15 : vector<256x256xf32>
    %cst_12 = arith.constant 0.000000e+00 : f32
    %17 = vector.broadcast %cst_12 : f32 to vector<256x256xf32>
    %18 = arith.cmpf ogt, %16, %17 : vector<256x256xf32>
    %cst_13 = arith.constant 2.000000e-01 : f32
    %19 = vector.broadcast %cst_13 : f32 to vector<256x256xf32>
    %20 = arith.mulf %19, %16 : vector<256x256xf32>
    %21 = arith.select %18, %16, %20 : vector<256x256xi1>, vector<256x256xf32>
    %c0_14 = arith.constant 0 : index
    %c0_15 = arith.constant 0 : index
    %22 = vector.load %arg6[%c0_14, %c0_15] : memref<1x256xf32, #tpu.memory_space<vmem>>, vector<1x256xf32>
    %23 = vector.broadcast %22 : vector<1x256xf32> to vector<256x256xf32>
    %24 = arith.mulf %21, %23 : vector<256x256xf32>
    %cst_16 = arith.constant dense<0.000000e+00> : vector<256xf32>
    %25 = vector.multi_reduction <add>, %24, %cst_16 [1] : vector<256x256xf32> to vector<256xf32>
    %26 = vector.shape_cast %25 : vector<256xf32> to vector<256x1xf32>
    %c0_17 = arith.constant 0 : index
    %27 = memref.load %arg7[%c0_17] : memref<1xf32, #tpu.memory_space<smem>>
    %28 = vector.broadcast %27 : f32 to vector<256x1xf32>
    %29 = arith.addf %26, %28 : vector<256x1xf32>
    %cst_18 = arith.constant 0.000000e+00 : f32
    %30 = vector.broadcast %cst_18 : f32 to vector<256x1xf32>
    %31 = arith.subf %30, %29 : vector<256x1xf32>
    %32 = math.exp %31 : vector<256x1xf32>
    %cst_19 = arith.constant 1.000000e+00 : f32
    %33 = vector.broadcast %cst_19 : f32 to vector<256x1xf32>
    %34 = arith.addf %33, %32 : vector<256x1xf32>
    %cst_20 = arith.constant 1.000000e+00 : f32
    %35 = vector.broadcast %cst_20 : f32 to vector<256x1xf32>
    %36 = arith.divf %35, %34 : vector<256x1xf32>
    %c0_21 = arith.constant 0 : index
    %c0_22 = arith.constant 0 : index
    %37 = vector.load %arg8[%c0_21, %c0_22] : memref<256x1xf32, #tpu.memory_space<vmem>>, vector<256x1xf32>
    tpu.vector_store %arg8[%c0_21, %c0_22], %36 {strides = array<i32>} : memref<256x1xf32, #tpu.memory_space<vmem>>, vector<256x1xf32>,
    return
  }
  func.func @transform_0(%arg0: i32) -> (i32, i32) {
    %c0_i32 = arith.constant 0 : i32
    %c0_i32_0 = arith.constant 0 : i32
    return %arg0, %c0_i32 : i32, i32
  }
  func.func @transform_1(%arg0: i32) -> (i32, i32) {
    %c0_i32 = arith.constant 0 : i32
    %c0_i32_0 = arith.constant 0 : i32
    %c0_i32_1 = arith.constant 0 : i32
    return %c0_i32, %c0_i32_0 : i32, i32
  }
  func.func @transform_2(%arg0: i32) -> (i32, i32) {
    %c0_i32 = arith.constant 0 : i32
    %c0_i32_0 = arith.constant 0 : i32
    %c0_i32_1 = arith.constant 0 : i32
    return %c0_i32, %c0_i32_0 : i32, i32
  }
  func.func @transform_3(%arg0: i32) -> (i32, i32) {
    %c0_i32 = arith.constant 0 : i32
    %c0_i32_0 = arith.constant 0 : i32
    %c0_i32_1 = arith.constant 0 : i32
    return %c0_i32, %c0_i32_0 : i32, i32
  }
  func.func @transform_4(%arg0: i32) -> (i32, i32) {
    %c0_i32 = arith.constant 0 : i32
    %c0_i32_0 = arith.constant 0 : i32
    %c0_i32_1 = arith.constant 0 : i32
    return %c0_i32, %c0_i32_0 : i32, i32
  }
  func.func @transform_5(%arg0: i32) -> (i32, i32) {
    %c0_i32 = arith.constant 0 : i32
    %c0_i32_0 = arith.constant 0 : i32
    %c0_i32_1 = arith.constant 0 : i32
    return %c0_i32, %c0_i32_0 : i32, i32
  }
  func.func @transform_6(%arg0: i32) -> i32 {
    %c0_i32 = arith.constant 0 : i32
    %c0_i32_0 = arith.constant 0 : i32
    return %c0_i32 : i32
  }
  func.func @transform_7(%arg0: i32) -> (i32, i32) {
    %c0_i32 = arith.constant 0 : i32
    %c0_i32_0 = arith.constant 0 : i32
    return %arg0, %c0_i32 : i32, i32
  }
}

</mosaic_0001>

<bundles_post_ra>
// kernel: tpu_custom_call.1
= control target key start
LH: loop header
LB: loop body
LE: loop exit
PB: predicated region body
PF: predicated region fallthrough
CT: control target
= control target key end

     0   :  { %s5508_s0 = inlined_call_operand.hbm [shape: bf16[300,784], index: 0, kind: input, shape index: {}]   ;;  %s5509_s1 = inlined_call_operand.hbm [shape: f32[784,256], index: 1, kind: input, shape index: {}]   ;;  %s5510_s2 = inlined_call_operand.vmem [shape: f32[1,256], index: 2, kind: input, shape index: {}]   ;;  %s5511_s3 = inlined_call_operand.hbm [shape: f32[256,256], index: 3, kind: input, shape index: {}]   ;;  %s5512_s4 = inlined_call_operand.vmem [shape: f32[1,256], index: 4, kind: input, shape index: {}]   ;;  %s5513_s5 = inlined_call_operand.vmem [shape: f32[1,256], index: 5, kind: input, shape index: {}]   ;;  %s5514_s6 = inlined_call_operand.<no memory space> [shape: f32[1], index: 6, kind: input, shape index: {}]   ;;  %s5515_s7 = inlined_call_operand.vmem [shape: f32[300,1], index: 7, kind: output, shape index: {}]  }
   0x1   :  { %12 = sst [smem:[#allocation2]] %s5514_s6 }
   0x2   :  { %13 = vsyncpa [#allocation4], 0 }
   0x3   :  { %15 = vsyncpa [#allocation4 + $0x1], 0 }
   0x4   :  { %16 = vsyncpa [#allocation6], 0  ;;  %s4164_s26 = smov 0   ;;  %s4166_s27 = smov 0  }
   0x5   :  { %s4168_s28 = smov 0   ;;  %s4170_s29 = smov 0  }
   0x6 LB: > { %s4183_s6 = sadd.s32 4294967295, %s4079_s29   ;;  %s4186_s30 = sadd.s32 1, %s4079_s29   ;;  %s4079_s29 = sphi %s4170_s29, %s5715_s29   ;;  %s4075_s28 = sphi %s4168_s28, %s5714_s28   ;;  %s4071_s27 = sphi %s4166_s27, %s5713_s27   ;;  %s4067_s26 = sphi %s4164_s26, %s5712_s26  }
   0x7   : > { %s26_s8 = ssub.s32 %s4079_s29, %s4186_s30  ;;  %s29_s9 = sadd.s32 1, %s4075_s28 }
   0x8   : > { %p27_p0 = scmp.eq.s32.totalorder %s26_s8, 0  ;;  %p36_p1 = scmp.ne.s32.totalorder %s4075_s28, %s4071_s27 }
   0x9   : > { %p37_p2 = scmp.eq.s32.totalorder %s4079_s29, 0  ;;  %p42_p3 = scmp.ne.s32.totalorder %s4071_s27, %s4067_s26 }
   0xa   : > { %s4196_s10 = scalar_select %p27_p0, %s4075_s28, %s29_s9  }
   0xb   : > { %p4198_p4 = por %p37_p2, %p36_p1  ;;  %p5516_p5 = scmp.eq.s32.totalorder %s4183_s6, 0 }
   0xc   : > { %p192_p6 = scmp.eq.s32.totalorder %s4183_s6, 1  ;;  %p3546_p7 = scmp.ge.s32.totalorder %s4079_s29, 1 }
   0xd   : > { %p4207_p8 = por %p5516_p5, %p42_p3  ;;  %p205_p9 = scmp.lt.s32.totalorder %s4079_s29, 3 }
   0xe   : > { %p4212_p10 = por %p192_p6, %p36_p1  ;;  %s4113_s15 = smov [#allocation5]  }
   0xf   : > { %s5523_s12 = scalar_select %p4207_p8, 1, 0 }
  0x10   : > { %s5524_s13 = scalar_select %p4212_p10, 1, 0 }
  0x11   : > { %p4216_p11 = pnand %p3546_p7, %p205_p9  ;;  %s217_s16 = sshll.u32 %s4113_s15, 4  ;;  %s218_s16 = int_to_ptr.vmem [resolvable:$true] %s217_s16 }
  0x12   : > { %s4114_s18 = smov [#allocation7]   ;;  %s3942_s20 = scalar_lea.vmem %s218_s16, 25088 }
  0x13   : > { %p3689_p12 = pneg %p4216_p11  ;;  %s233_s19 = sshll.u32 %s4114_s18, 4  ;;  %s234_s19 = int_to_ptr.vmem [resolvable:$true] %s233_s19 }
  0x14   : > { %p3943_p1 = scmp.ne.s32.totalorder %s218_s16, %s3942_s20  ;;  %p3950_p6 = scmp.lt.s32.totalorder %s218_s16, %s218_s16 }
  0x15   : > { %p4224_p13 = pnand %p3689_p12, %p5516_p5  ;;  %p3951_p7 = scmp.lt.s32.totalorder %s3942_s20, %s3942_s20 }
  0x17   : > { %p3933_p0 = pneg %p4224_p13  ;;  %p3952_p9 = por %p3951_p7, %p3950_p6 }
  0x19   : > { %p3945_p2 = pnand %p3943_p1, %p3933_p0 }
  0x1b   : > { %p3946_p3 = pneg %p3945_p2 }
  0x1d   : > { %p3953_p12 = pnand %p3952_p9, %p3946_p3 }
  0x1f   : > { %3956 = shalt.err (!%p3953_p12)
}
  0x20   : > { %s4115_s21 = smov 256   ;;  %s4116_s22 = smov 16  }
  0x21   : > { %3692 = dma.hbm_to_vmem [thread:$0]  (!%p4224_p13), %s5509_s1, 25088, %s218_s16, [#allocation6], %s4115_s21, %s4115_s21, %s4116_s22  }
  0x22   : > { %s3968_s25 = scalar_lea.vmem %s234_s19, 8192  ;;  %p3976_p10 = scmp.lt.s32.totalorder %s234_s19, %s234_s19 }
  0x23   : > { %p3969_p5 = scmp.ne.s32.totalorder %s234_s19, %s3968_s25  ;;  %p3977_p8 = scmp.lt.s32.totalorder %s3968_s25, %s3968_s25 }
  0x25   : > { %p3971_p1 = pnand %p3969_p5, %p3933_p0  ;;  %p3978_p6 = por %p3977_p8, %p3976_p10 }
  0x27   : > { %p3972_p2 = pneg %p3971_p1 }
  0x29   : > { %p3979_p3 = pnand %p3978_p6, %p3972_p2 }
  0x2b   : > { %3982 = shalt.err (!%p3979_p3)
}
  0x2c   : > { %3695 = dma.hbm_to_vmem [thread:$0]  (!%p4224_p13), %s5511_s3, 8192, %s234_s19, [#allocation6], %s4115_s21, %s4115_s21, %s4116_s22  }
  0x2d   : > { %p3549_p7 = scmp.ge.s32.totalorder %s4079_s29, 2 }
  0x2f   : > { %252 = sbr.rel (%p3549_p7) target bundleno = 86 (0x56), region = 40 }
  0x34   : > { %255 = sbr.rel (!%p4198_p4) target bundleno = 86 (0x56), region = 44  ;;  %s256_s9 = sand.u32 (%p4198_p4), 1, %s4075_s28  }
  0x35   : > { %s3550_s15 = sshll.u32 (%p4198_p4), %s4079_s29, 5  ;;  %s3677_s16 = smul.u32 (%p4198_p4), 896, %s256_s9 }
  0x36   : > { %s262_s18 = ssub.s32 (%p4198_p4), 38, %s3550_s15  ;;  %s4254_s23 = scalar_lea.sflag (%p4198_p4), [#allocation4], %s256_s9 }
  0x37   : > { %p263_p5 = scmp.lt.s32.totalorder (%p4198_p4), %s262_s18, 32  ;;  %s260_s19 = scalar_lea.vmem (%p4198_p4), [#allocation3], %s3677_s16 }
  0x39   : > { %s5717_s18 = smov (!%p263_p5, %s262_s18), 32 }
  0x3a   : > { %s4251_s20 = smul.u32 448, %s5717_s18 }
  0x3c   : > { %s268_s17 = ssub.s32 14336, %s4251_s20 }
  0x3d   : > { %269 = vsyncadd %s4254_s23, %s268_s17  ;;  %p3553_p4 = scmp.ne.s32.totalorder %s4251_s20, 0  ;;  %s3678_s11 = smul.u32 14336, %s4079_s29 }
  0x3e   : > { %s275_s21 = sshll.u32 %s260_s19, 4  ;;  %s3987_s29 = scalar_lea.hbm %s5508_s0, 17024  ;;  %s4264_s21 = int_to_ptr.vmem [resolvable:$true] %s275_s21 }
  0x3f   : > { %s4262_s25 = scalar_lea.hbm %s5508_s0, %s3678_s11 }
  0x40   : > { %s3983_s26 = scalar_lea.hbm %s4262_s25, %s4251_s20  ;;  %p3988_p0 = scmp.lt.s32.totalorder %s4262_s25, %s5508_s0 }
  0x41   : > { %p3984_p8 = scmp.ne.s32.totalorder %s4262_s25, %s3983_s26  ;;  %p3989_p9 = scmp.lt.s32.totalorder %s3987_s29, %s3983_s26 }
  0x43   : > { %p3985_p10 = pnand %p3984_p8, %p3553_p4  ;;  %p3990_p12 = por %p3989_p9, %p3988_p0 }
  0x45   : > { %p3986_p13 = pneg %p3985_p10 }
  0x47   : > { %p3991_p1 = pnand %p3990_p12, %p3986_p13 }
  0x49   : > { %3994 = shalt.err (!%p3991_p1)
}
  0x4a   : > { %s3995_s18 = scalar_lea.vmem %s4264_s21, %s4251_s20  ;;  %s4117_s17 = smov [#allocation3]  }
  0x4b   : > { %p3996_p2 = scmp.ne.s32.totalorder %s4264_s21, %s3995_s18  ;;  %s3999_s19 = sshll.u32 %s4117_s17, 4  ;;  %s4000_s19 = int_to_ptr.vmem [resolvable:$false] %s3999_s19 }
  0x4c   : > { %s4001_s11 = scalar_lea.vmem %s4000_s19, 28672  ;;  %p4002_p7 = scmp.lt.s32.totalorder %s4264_s21, %s4000_s19 }
  0x4d   : > { %p3997_p6 = pnand %p3996_p2, %p3553_p4  ;;  %p4003_p5 = scmp.lt.s32.totalorder %s4001_s11, %s3995_s18 }
  0x4f   : > { %p3998_p3 = pneg %p3997_p6  ;;  %p4004_p8 = por %p4003_p5, %p4002_p7 }
  0x51   : > { %p4005_p10 = pnand %p4004_p8, %p3998_p3 }
  0x53   : > { %4008 = shalt.err (!%p4005_p10)
}
  0x54   : > { %s4118_s22 = smov 448   ;;  %s4119_s24 = smov 28  }
  0x55   : > { %281 = dma.hbm_to_vmem [thread:$0]  (%p3553_p4), %s4262_s25, %s4251_s20, %s4264_s21, %s4254_s23, %s4118_s22, %s4118_s22, %s4119_s24  }
  0x56 PF: > { %287 = sbr.rel (%p4216_p11) target bundleno = 1141 (0x475), region = 48 }
  0x5b   : > { %s4293_s26 = sand.u32 1, %s4071_s27   ;;  %p5527_p13 = scmp.ne.s32.totalorder %s5523_s12, 0 }
  0x5c   : > { %s3679_s8 = smul.u32 896, %s4293_s26  ;;  %s290_s9 = scalar_lea.sflag [#allocation4], %s4293_s26 }
  0x5e   : > { %s4297_s29 = scalar_lea.vmem [#allocation3], %s3679_s8 }
  0x5f   : > { %4058 = dma.done.wait (%p5527_p13), %s290_s9, 14336  }
  0x60   : > { %4060 = vsyncadd (%p5527_p13), %s290_s9, 4294952960  ;;  %p5528_p4 = scmp.eq.s32.totalorder %s4183_s6, 0 }
  0x62   : > { %4062 = dma.done.wait (%p5528_p4), [#allocation6], 33280   ;;  %p5529_p11 = pmov %p5528_p4 }
  0x63   : > { %v725_v0 = vld [vmem:[#allocation5 + $0xf8] sm:$0xff]  ;;  %v724_v1 = vld [vmem:[#allocation5 + $0xf0] sm:$0xff]  ;;  %v723_v2 = vld [vmem:[#allocation5 + $0xe8] sm:$0xff]  ;;  %vm902_vm0 = vcmask 130048   ;;  %s2916_s15 = sld [smem:[#allocation2]]  ;;  %s3560_s16 = sshll.u32 %s4293_s26, 8 }
  0x64   : > { %4064 = vsyncadd (%p5529_p11), [#allocation6], 4294934016  ;;  %3613 = vmatprep.subr.mxu1 %v725_v0  ;;  %999 = vmatprep.subr.mxu0 %v725_v0  ;;  %v722_v3 = vld [vmem:[#allocation5 + $0xe0] sm:$0xff]  ;;  %v721_v4 = vld [vmem:[#allocation5 + $0xd8] sm:$0xff]  ;;  %s5277_s18 = scalar_lea.vmem [#allocation8], %s3560_s16   ;;  %p5706_p0 = scmp.ne.s32.totalorder %s5524_s13, 0 }
  0x65   : > { %3645 = vmatpush1.msra.mxu1 %v724_v1  ;;  %1000 = vmatpush1.msra.mxu0 %v724_v1  ;;  %v720_v5 = vld [vmem:[#allocation5 + $0xd0] sm:$0xff]  ;;  %v719_v6 = vld [vmem:[#allocation5 + $0xc8] sm:$0xff]  ;;  %v718_v7 = vld [vmem:[#allocation5 + $0xc0] sm:$0xff]  ;;  %s3594_s17 = sshll.u32 (%p5706_p0), %s4183_s6, 5  ;;  %s3610_s19 = sshll.u32 (%p5706_p0), %s4183_s6, 8 }
  0x66   : > { %3614 = vmatprep.subr.mxu1 %v723_v2  ;;  %1001 = vmatprep.subr.mxu0 %v723_v2  ;;  %v717_v8 = vld [vmem:[#allocation5 + $0xb8] sm:$0xff]  ;;  %v716_v9 = vld [vmem:[#allocation5 + $0xb0] sm:$0xff]  ;;  %v715_v10 = vld [vmem:[#allocation5 + $0xa8] sm:$0xff]  ;;  %s3183_s11 = ssub.s32 (%p5706_p0), 38, %s3594_s17  ;;  %s5373_s26 = scalar_lea.vmem (%p5706_p0), %s5515_s7, %s3610_s19  }
  0x67   : > { %3646 = vmatpush1.msra.mxu1 %v722_v3  ;;  %1002 = vmatpush1.msra.mxu0 %v722_v3  ;;  %v714_v11 = vld [vmem:[#allocation5 + $0xa0] sm:$0xff]  ;;  %v713_v12 = vld [vmem:[#allocation5 + $0x98] sm:$0xff]  ;;  %v712_v13 = vld [vmem:[#allocation5 + $0x90] sm:$0xff]  ;;  %p3184_p9 = scmp.lt.s32.totalorder (%p5706_p0), %s3183_s11, 32 }
  0x68   : > { %3615 = vmatprep.subr.mxu1 %v721_v4  ;;  %1003 = vmatprep.subr.mxu0 %v721_v4  ;;  %v711_v14 = vld [vmem:[#allocation5 + $0x88] sm:$0xff]  ;;  %v710_v15 = vld [vmem:[#allocation5 + $0x80] sm:$0xff]  ;;  %v709_v16 = vld [vmem:[#allocation5 + $0x78] sm:$0xff] }
  0x69   : > { %3647 = vmatpush1.msra.mxu1 %v720_v5  ;;  %1004 = vmatpush1.msra.mxu0 %v720_v5  ;;  %v708_v17 = vld [vmem:[#allocation5 + $0x70] sm:$0xff]  ;;  %v707_v18 = vld [vmem:[#allocation5 + $0x68] sm:$0xff]  ;;  %v706_v19 = vld [vmem:[#allocation5 + $0x60] sm:$0xff] }
  0x6a   : > { %3616 = vmatprep.subr.mxu1 %v719_v6  ;;  %1005 = vmatprep.subr.mxu0 %v719_v6  ;;  %v705_v20 = vld [vmem:[#allocation5 + $0x58] sm:$0xff]  ;;  %v704_v21 = vld [vmem:[#allocation5 + $0x50] sm:$0xff]  ;;  %v703_v22 = vld [vmem:[#allocation5 + $0x48] sm:$0xff] }
  0x6b   : > { %3648 = vmatpush1.msra.mxu1 %v718_v7  ;;  %1006 = vmatpush1.msra.mxu0 %v718_v7  ;;  %v702_v23 = vld [vmem:[#allocation5 + $0x40] sm:$0xff]  ;;  %v701_v24 = vld [vmem:[#allocation5 + $0x38] sm:$0xff]  ;;  %v700_v25 = vld [vmem:[#allocation5 + $0x30] sm:$0xff] }
  0x6c   : > { %3617 = vmatprep.subr.mxu1 %v717_v8  ;;  %1007 = vmatprep.subr.mxu0 %v717_v8  ;;  %v699_v26 = vld [vmem:[#allocation5 + $0x28] sm:$0xff]  ;;  %v698_v27 = vld [vmem:[#allocation5 + $0x20] sm:$0xff]  ;;  %v697_v28 = vld [vmem:[#allocation5 + $0x18] sm:$0xff] }
  0x6d   : > { %3649 = vmatpush1.msra.mxu1 %v716_v9  ;;  %1008 = vmatpush1.msra.mxu0 %v716_v9  ;;  %v696_v29 = vld [vmem:[#allocation5 + $0x10] sm:$0xff]  ;;  %v695_v30 = vld [vmem:[#allocation5 + $0x8] sm:$0xff]  ;;  %v694_v31 = vld [vmem:[#allocation5] sm:$0xff] }
  0x6e   : > { %3618 = vmatprep.subr.mxu1 %v715_v10  ;;  %1009 = vmatprep.subr.mxu0 %v715_v10  ;;  %v757_v32 = vld [vmem:[#allocation5 + $0x1f8] sm:$0xff]  ;;  %v756_v33 = vld [vmem:[#allocation5 + $0x1f0] sm:$0xff]  ;;  %v755_v34 = vld [vmem:[#allocation5 + $0x1e8] sm:$0xff] }
  0x6f   : > { %3650 = vmatpush1.msra.mxu1 %v714_v11  ;;  %1010 = vmatpush1.msra.mxu0 %v714_v11  ;;  %v754_v35 = vld [vmem:[#allocation5 + $0x1e0] sm:$0xff]  ;;  %v753_v36 = vld [vmem:[#allocation5 + $0x1d8] sm:$0xff]  ;;  %v752_v37 = vld [vmem:[#allocation5 + $0x1d0] sm:$0xff] }
  0x70   : > { %3619 = vmatprep.subr.mxu1 %v713_v12  ;;  %1011 = vmatprep.subr.mxu0 %v713_v12  ;;  %v751_v38 = vld [vmem:[#allocation5 + $0x1c8] sm:$0xff]  ;;  %v750_v39 = vld [vmem:[#allocation5 + $0x1c0] sm:$0xff]  ;;  %v749_v40 = vld [vmem:[#allocation5 + $0x1b8] sm:$0xff] }
  0x71   : > { %3651 = vmatpush1.msra.mxu1 %v712_v13  ;;  %1012 = vmatpush1.msra.mxu0 %v712_v13  ;;  %v748_v41 = vld [vmem:[#allocation5 + $0x1b0] sm:$0xff]  ;;  %v747_v42 = vld [vmem:[#allocation5 + $0x1a8] sm:$0xff]  ;;  %v746_v43 = vld [vmem:[#allocation5 + $0x1a0] sm:$0xff] }
  0x72   : > { %3620 = vmatprep.subr.mxu1 %v711_v14  ;;  %1013 = vmatprep.subr.mxu0 %v711_v14  ;;  %v745_v44 = vld [vmem:[#allocation5 + $0x198] sm:$0xff]  ;;  %v744_v45 = vld [vmem:[#allocation5 + $0x190] sm:$0xff]  ;;  %v743_v46 = vld [vmem:[#allocation5 + $0x188] sm:$0xff] }
  0x73   : > { %3652 = vmatpush1.msra.mxu1 %v710_v15  ;;  %1014 = vmatpush1.msra.mxu0 %v710_v15  ;;  %v742_v47 = vld [vmem:[#allocation5 + $0x180] sm:$0xff]  ;;  %v741_v48 = vld [vmem:[#allocation5 + $0x178] sm:$0xff]  ;;  %v740_v49 = vld [vmem:[#allocation5 + $0x170] sm:$0xff] }
  0x74   : > { %3621 = vmatprep.subr.mxu1 %v709_v16  ;;  %1015 = vmatprep.subr.mxu0 %v709_v16  ;;  %v739_v50 = vld [vmem:[#allocation5 + $0x168] sm:$0xff]  ;;  %v738_v51 = vld [vmem:[#allocation5 + $0x160] sm:$0xff]  ;;  %v737_v52 = vld [vmem:[#allocation5 + $0x158] sm:$0xff] }
  0x75   : > { %3653 = vmatpush1.msra.mxu1 %v708_v17  ;;  %1016 = vmatpush1.msra.mxu0 %v708_v17  ;;  %v736_v53 = vld [vmem:[#allocation5 + $0x150] sm:$0xff]  ;;  %v735_v54 = vld [vmem:[#allocation5 + $0x148] sm:$0xff]  ;;  %v734_v55 = vld [vmem:[#allocation5 + $0x140] sm:$0xff] }
  0x76   : > { %3622 = vmatprep.subr.mxu1 %v707_v18  ;;  %1017 = vmatprep.subr.mxu0 %v707_v18  ;;  %v733_v56 = vld [vmem:[#allocation5 + $0x138] sm:$0xff]  ;;  %v732_v57 = vld [vmem:[#allocation5 + $0x130] sm:$0xff]  ;;  %v731_v58 = vld [vmem:[#allocation5 + $0x128] sm:$0xff] }
  0x77   : > { %3654 = vmatpush1.msra.mxu1 %v706_v19  ;;  %1018 = vmatpush1.msra.mxu0 %v706_v19  ;;  %v406_v59 = vld [vmem:[%s4297_s29 + $0x1c0] sm:$0xff]  ;;  %v729_v61 = vld [vmem:[#allocation5 + $0x118] sm:$0xff]  ;;  %v728_v62 = vld [vmem:[#allocation5 + $0x110] sm:$0xff] }
  0x78   : > { %3623 = vmatprep.subr.mxu1 %v705_v20  ;;  %1019 = vmatprep.subr.mxu0 %v705_v20  ;;  %v730_v60 = vld [vmem:[#allocation5 + $0x120] sm:$0xff]  ;;  %v583_v63 = vunpack.c.h.bf16 %v406_v59  ;;  %v727_v1 = vld [vmem:[#allocation5 + $0x108] sm:$0xff]  ;;  %v582_v3 = vunpack.c.l.bf16 %v406_v59  ;;  %v789_v4 = vld [vmem:[#allocation5 + $0x2f8] sm:$0xff] }
  0x79   : > { %3655 = vmatpush1.msra.mxu1 %v704_v21  ;;  %1020 = vmatpush1.msra.mxu0 %v704_v21  ;;  %v342_v0 = vld [vmem:[%s4297_s29] sm:$0xff]  ;;  %v788_v8 = vld [vmem:[#allocation5 + $0x2f0] sm:$0xff]  ;;  %v787_v9 = vld [vmem:[#allocation5 + $0x2e8] sm:$0xff] }
  0x7a   : > { %3624 = vmatprep.subr.mxu1 %v703_v22  ;;  %1021 = vmatprep.subr.mxu0 %v703_v22  ;;  %v726_v2 = vld [vmem:[#allocation5 + $0x100] sm:$0xff]  ;;  %v471_v5 = vunpack.c.h.bf16 %v342_v0  ;;  %v470_v7 = vunpack.c.l.bf16 %v342_v0  ;;  %v853_v10 = vld [vmem:[#allocation5 + $0x4f8] sm:$0xff]  ;;  %v852_v15 = vld [vmem:[#allocation5 + $0x4f0] sm:$0xff] }
  0x7b   : > { %3656 = vmatpush1.msra.mxu1 %v702_v23  ;;  %1022 = vmatpush1.msra.mxu0 %v702_v23  ;;  %v410_v6 = vld [vmem:[%s4297_s29 + $0x1dc] sm:$0xff]  ;;  %v851_v17 = vld [vmem:[#allocation5 + $0x4e8] sm:$0xff]  ;;  %v784_v20 = vld [vmem:[#allocation5 + $0x2d0] sm:$0xff] }
  0x7c   : > { %3625 = vmatprep.subr.mxu1 %v701_v24  ;;  %1023 = vmatprep.subr.mxu0 %v701_v24  ;;  %v590_v11 = vunpack.c.h.bf16 %v410_v6  ;;  %v346_v12 = vld [vmem:[%s4297_s29 + $0x1c] sm:$0xff]  ;;  %v589_v14 = vunpack.c.l.bf16 %v410_v6  ;;  %v783_v23 = vld [vmem:[#allocation5 + $0x2c8] sm:$0xff] }
  0x7d   : > { %3657 = vmatpush1.msra.mxu1 %v700_v25  ;;  %1024 = vmatpush1.msra.mxu0 %v700_v25  ;;  %v786_v13 = vld [vmem:[#allocation5 + $0x2e0] sm:$0xff]  ;;  %v785_v16 = vld [vmem:[#allocation5 + $0x2d8] sm:$0xff]  ;;  %v478_v18 = vunpack.c.h.bf16 %v346_v12  ;;  %v477_v22 = vunpack.c.l.bf16 %v346_v12  ;;  %v839_v59 = vld [vmem:[#allocation5 + $0x488] sm:$0xff] }
  0x7e   : > { %3626 = vmatprep.subr.mxu1 %v699_v26  ;;  %1025 = vmatprep.subr.mxu0 %v699_v26  ;;  %v414_v19 = vld [vmem:[%s4297_s29 + $0x1f8] sm:$0xff]  ;;  %v850_v21 = vld [vmem:[#allocation5 + $0x4e0] sm:$0xff]  ;;  %v768_v12 = vld [vmem:[#allocation5 + $0x250] sm:$0xff] }
  0x7f   : > { %3658 = vmatpush1.msra.mxu1 %v698_v27  ;;  %1026 = vmatpush1.msra.mxu0 %v698_v27  ;;  %v849_v24 = vld [vmem:[#allocation5 + $0x4d8] sm:$0xff]  ;;  %v597_v25 = vunpack.c.h.bf16 %v414_v19  ;;  %v782_v27 = vld [vmem:[#allocation5 + $0x2c0] sm:$0xff] }
  0x80   : > { %3627 = vmatprep.subr.mxu1 %v697_v28  ;;  %1027 = vmatprep.subr.mxu0 %v697_v28  ;;  %v350_v26 = vld [vmem:[%s4297_s29 + $0x38] sm:$0xff]  ;;  %v596_v28 = vunpack.c.l.bf16 %v414_v19  ;;  %v766_v19 = vld [vmem:[#allocation5 + $0x240] sm:$0xff] }
  0x81   : > { %3659 = vmatpush1.msra.mxu1 %v696_v29  ;;  %1028 = vmatpush1.msra.mxu0 %v696_v29  ;;  %v848_v29 = vld [vmem:[#allocation5 + $0x4d0] sm:$0xff] }
  0x82   : > { %3628 = vmatprep.subr.mxu1 %v695_v30  ;;  %1029 = vmatprep.subr.mxu0 %v695_v30  ;;  %v781_v30 = vld [vmem:[#allocation5 + $0x2b8] sm:$0xff] }
  0x83   : > { %3660 = vmatpush1.msra.mxu1 %v694_v31  ;;  %1030 = vmatpush1.msra.mxu0 %v694_v31  ;;  %v847_v31 = vld [vmem:[#allocation5 + $0x4c8] sm:$0xff] }
  0x84   : > { %3629 = vmatprep.subr.mxu1 %v757_v32  ;;  %1031 = vmatprep.subr.mxu0 %v757_v32  ;;  %v485_v32 = vunpack.c.h.bf16 %v350_v26 }
  0x85   : > { %3661 = vmatpush2.msra.mxu1 %v756_v33  ;;  %1032 = vmatpush2.msra.mxu0 %v756_v33  ;;  %v418_v33 = vld [vmem:[%s4297_s29 + $0x214] sm:$0xff] }
  0x86   : > { %3630 = vmatprep.subr.mxu1 %v755_v34  ;;  %1033 = vmatprep.subr.mxu0 %v755_v34  ;;  %v780_v34 = vld [vmem:[#allocation5 + $0x2b0] sm:$0xff] }
  0x87   : > { %3662 = vmatpush2.msra.mxu1 %v754_v35  ;;  %1034 = vmatpush2.msra.mxu0 %v754_v35  ;;  %v846_v35 = vld [vmem:[#allocation5 + $0x4c0] sm:$0xff] }
  0x88   : > { %3631 = vmatprep.subr.mxu1 %v753_v36  ;;  %1035 = vmatprep.subr.mxu0 %v753_v36  ;;  %v484_v36 = vunpack.c.l.bf16 %v350_v26  ;;  %v764_v26 = vld [vmem:[#allocation5 + $0x230] sm:$0xff] }
  0x89   : > { %3663 = vmatpush2.msra.mxu1 %v752_v37  ;;  %1036 = vmatpush2.msra.mxu0 %v752_v37  ;;  %v779_v37 = vld [vmem:[#allocation5 + $0x2a8] sm:$0xff] }
  0x8a   : > { %3632 = vmatprep.subr.mxu1 %v751_v38  ;;  %1037 = vmatprep.subr.mxu0 %v751_v38  ;;  %v845_v38 = vld [vmem:[#allocation5 + $0x4b8] sm:$0xff] }
  0x8b   : > { %3664 = vmatpush2.msra.mxu1 %v750_v39  ;;  %1038 = vmatpush2.msra.mxu0 %v750_v39  ;;  %v604_v39 = vunpack.c.h.bf16 %v418_v33 }
  0x8c   : > { %3633 = vmatprep.subr.mxu1 %v749_v40  ;;  %1039 = vmatprep.subr.mxu0 %v749_v40  ;;  %v354_v40 = vld [vmem:[%s4297_s29 + $0x54] sm:$0xff] }
  0x8d   : > { %3665 = vmatpush2.msra.mxu1 %v748_v41  ;;  %1040 = vmatpush2.msra.mxu0 %v748_v41  ;;  %v778_v41 = vld [vmem:[#allocation5 + $0x2a0] sm:$0xff] }
  0x8e   : > { %3634 = vmatprep.subr.mxu1 %v747_v42  ;;  %1041 = vmatprep.subr.mxu0 %v747_v42  ;;  %v603_v42 = vunpack.c.l.bf16 %v418_v33  ;;  %v762_v33 = vld [vmem:[#allocation5 + $0x220] sm:$0xff] }
  0x8f   : > { %3666 = vmatpush2.msra.mxu1 %v746_v43  ;;  %1042 = vmatpush2.msra.mxu0 %v746_v43  ;;  %v844_v43 = vld [vmem:[#allocation5 + $0x4b0] sm:$0xff] }
  0x90   : > { %3635 = vmatprep.subr.mxu1 %v745_v44  ;;  %1043 = vmatprep.subr.mxu0 %v745_v44  ;;  %v777_v44 = vld [vmem:[#allocation5 + $0x298] sm:$0xff] }
  0x91   : > { %3667 = vmatpush2.msra.mxu1 %v744_v45  ;;  %1044 = vmatpush2.msra.mxu0 %v744_v45  ;;  %v843_v45 = vld [vmem:[#allocation5 + $0x4a8] sm:$0xff] }
  0x92   : > { %3636 = vmatprep.subr.mxu1 %v743_v46  ;;  %1045 = vmatprep.subr.mxu0 %v743_v46  ;;  %v492_v46 = vunpack.c.h.bf16 %v354_v40 }
  0x93   : > { %3668 = vmatpush2.msra.mxu1 %v742_v47  ;;  %1046 = vmatpush2.msra.mxu0 %v742_v47  ;;  %v422_v47 = vld [vmem:[%s4297_s29 + $0x230] sm:$0xff] }
  0x94   : > { %3637 = vmatprep.subr.mxu1 %v741_v48  ;;  %1047 = vmatprep.subr.mxu0 %v741_v48  ;;  %v776_v48 = vld [vmem:[#allocation5 + $0x290] sm:$0xff] }
  0x95   : > { %3669 = vmatpush2.msra.mxu1 %v740_v49  ;;  %1048 = vmatpush2.msra.mxu0 %v740_v49  ;;  %v842_v49 = vld [vmem:[#allocation5 + $0x4a0] sm:$0xff] }
  0x96   : > { %3638 = vmatprep.subr.mxu1 %v739_v50  ;;  %1049 = vmatprep.subr.mxu0 %v739_v50  ;;  %v491_v50 = vunpack.c.l.bf16 %v354_v40  ;;  %v760_v40 = vld [vmem:[#allocation5 + $0x210] sm:$0xff] }
  0x97   : > { %3670 = vmatpush2.msra.mxu1 %v738_v51  ;;  %1050 = vmatpush2.msra.mxu0 %v738_v51  ;;  %v775_v51 = vld [vmem:[#allocation5 + $0x288] sm:$0xff] }
  0x98   : > { %3639 = vmatprep.subr.mxu1 %v737_v52  ;;  %1051 = vmatprep.subr.mxu0 %v737_v52  ;;  %v841_v52 = vld [vmem:[#allocation5 + $0x498] sm:$0xff] }
  0x99   : > { %3671 = vmatpush2.msra.mxu1 %v736_v53  ;;  %1052 = vmatpush2.msra.mxu0 %v736_v53  ;;  %v611_v53 = vunpack.c.h.bf16 %v422_v47 }
  0x9a   : > { %3640 = vmatprep.subr.mxu1 %v735_v54  ;;  %1053 = vmatprep.subr.mxu0 %v735_v54  ;;  %v358_v54 = vld [vmem:[%s4297_s29 + $0x70] sm:$0xff] }
  0x9b   : > { %3672 = vmatpush2.msra.mxu1 %v734_v55  ;;  %1054 = vmatpush2.msra.mxu0 %v734_v55  ;;  %v774_v55 = vld [vmem:[#allocation5 + $0x280] sm:$0xff]  ;;  %v498_v0 = vunpack.c.l.bf16 %v358_v54 }
  0x9c   : > { %3641 = vmatprep.subr.mxu1 %v733_v56  ;;  %1055 = vmatprep.subr.mxu0 %v733_v56  ;;  %v610_v56 = vunpack.c.l.bf16 %v422_v47  ;;  %v758_v47 = vld [vmem:[#allocation5 + $0x200] sm:$0xff] }
  0x9d   : > { %3673 = vmatpush2.msra.mxu1 %v732_v57  ;;  %1056 = vmatpush2.msra.mxu0 %v732_v57  ;;  %v840_v57 = vld [vmem:[#allocation5 + $0x490] sm:$0xff] }
  0x9e   : > { %3642 = vmatprep.subr.mxu1 %v731_v58  ;;  %1057 = vmatprep.subr.mxu0 %v731_v58  ;;  %v773_v58 = vld [vmem:[#allocation5 + $0x278] sm:$0xff] }
  0x9f   : > { %3674 = vmatpush2.msra.mxu1 %v730_v60  ;;  %1058 = vmatpush2.msra.mxu0 %v730_v60  ;;  %v499_v60 = vunpack.c.h.bf16 %v358_v54  ;;  %v820_v54 = vld [vmem:[#allocation5 + $0x3f0] sm:$0xff] }
  0xa0   : > { %3643 = vmatprep.subr.mxu1 %v729_v61  ;;  %1059 = vmatprep.subr.mxu0 %v729_v61  ;;  %v426_v61 = vld [vmem:[%s4297_s29 + $0x24c] sm:$0xff] }
  0xa1   : > { %3675 = vmatpush2.msra.mxu1 %v728_v62  ;;  %1060 = vmatpush2.msra.mxu0 %v728_v62  ;;  %v772_v62 = vld [vmem:[#allocation5 + $0x270] sm:$0xff]  ;;  %v617_v6 = vunpack.c.l.bf16 %v426_v61 }
  0xa2   : > { %3644 = vmatprep.subr.mxu1 %v727_v1  ;;  %1159 = vmatprep.mubr.f32.mxu1 %v583_v63  ;;  %v838_v63 = vld [vmem:[#allocation5 + $0x480] sm:$0xff] }
  0xa3   : > { %3676 = vmatpush2.msra.mxu1 %v726_v2  ;;  %1061 = vmatprep.subr.mxu0 %v727_v1  ;;  %v771_v1 = vld [vmem:[#allocation5 + $0x268] sm:$0xff] }
  0xa4   : > { %1160 = vmatmul.mubr.f32.vlgmr.msra.gmra.mxu1 %v582_v3  ;;  %1256 = vmatprep.subr.mxu1 %v789_v4  ;;  %v618_v3 = vunpack.c.h.bf16 %v426_v61  ;;  %v362_v4 = vld [vmem:[%s4297_s29 + $0x8c] sm:$0xff]  ;;  %v818_v61 = vld [vmem:[#allocation5 + $0x3e0] sm:$0xff] }
  0xa5   : > { %1062 = vmatpush2.msra.mxu0 %v726_v2  ;;  %1063 = vmatprep.mubr.f32.mxu0 %v471_v5  ;;  %v837_v2 = vld [vmem:[#allocation5 + $0x478] sm:$0xff]  ;;  %v770_v5 = vld [vmem:[#allocation5 + $0x260] sm:$0xff] }
  0xa6   : > { %1257 = vmatpush1.msra.mxu1 %v788_v8  ;;  %1064 = vmatmul.mubr.f32.vlgmr.msra.gmra.mxu0 %v470_v7  ;;  %v836_v7 = vld [vmem:[#allocation5 + $0x470] sm:$0xff]  ;;  %v769_v8 = vld [vmem:[#allocation5 + $0x258] sm:$0xff] }
  0xa7   : > { %1258 = vmatprep.subr.mxu1 %v787_v9  ;;  %1513 = vmatprep.subr.mxu0 %v853_v10  ;;  %v835_v9 = vld [vmem:[#allocation5 + $0x468] sm:$0xff]  ;;  %v506_v10 = vunpack.c.h.bf16 %v362_v4 }
  0xa8   : > { %1165 = vmatprep.mubr.f32.mxu1 %v590_v11  ;;  %1259 = vmatpush1.msra.mxu1 %v786_v13  ;;  %v430_v11 = vld [vmem:[%s4297_s29 + $0x268] sm:$0xff]  ;;  %v834_v13 = vld [vmem:[#allocation5 + $0x460] sm:$0xff] }
  0xa9   : > { %1514 = vmatpush1.msra.mxu0 %v852_v15  ;;  %1166 = vmatmul.mubr.f32.gmra.mxu1 %v589_v14  ;;  %v505_v14 = vunpack.c.l.bf16 %v362_v4  ;;  %v767_v15 = vld [vmem:[#allocation5 + $0x248] sm:$0xff]  ;;  %v816_v4 = vld [vmem:[#allocation5 + $0x3d0] sm:$0xff] }
  0xaa   : > { %1260 = vmatprep.subr.mxu1 %v785_v16  ;;  %1515 = vmatprep.subr.mxu0 %v851_v17  ;;  %v833_v16 = vld [vmem:[#allocation5 + $0x458] sm:$0xff]  ;;  %v625_v17 = vunpack.c.h.bf16 %v430_v11 }
  0xab   : > { %1069 = vmatprep.mubr.f32.mxu0 %v478_v18  ;;  %1261 = vmatpush1.msra.mxu1 %v784_v20  ;;  %v366_v18 = vld [vmem:[%s4297_s29 + $0xa8] sm:$0xff]  ;;  %v624_v20 = vunpack.c.l.bf16 %v430_v11  ;;  %v814_v11 = vld [vmem:[#allocation5 + $0x3c0] sm:$0xff] }
  0xac   : > { %1516 = vmatpush1.msra.mxu0 %v850_v21  ;;  %1262 = vmatprep.subr.mxu1 %v783_v23  ;;  %v832_v21 = vld [vmem:[#allocation5 + $0x450] sm:$0xff]  ;;  %v831_v23 = vld [vmem:[#allocation5 + $0x448] sm:$0xff] }
  0xad   : > { %1070 = vmatmul.mubr.f32.gmra.mxu0 %v477_v22  ;;  %1517 = vmatprep.subr.mxu0 %v849_v24  ;;  %v765_v22 = vld [vmem:[#allocation5 + $0x238] sm:$0xff]  ;;  %v513_v24 = vunpack.c.h.bf16 %v366_v18 }
  0xae   : > { %1171 = vmatprep.mubr.f32.mxu1 %v597_v25  ;;  %1263 = vmatpush1.msra.mxu1 %v782_v27  ;;  %v434_v25 = vld [vmem:[%s4297_s29 + $0x284] sm:$0xff] }
  0xaf   : > { %1518 = vmatpush1.msra.mxu0 %v848_v29  ;;  %1172 = vmatmul.mubr.f32.gmra.mxu1 %v596_v28  ;;  %v830_v27 = vld [vmem:[#allocation5 + $0x440] sm:$0xff]  ;;  %v512_v28 = vunpack.c.l.bf16 %v366_v18  ;;  %v763_v29 = vld [vmem:[#allocation5 + $0x228] sm:$0xff]  ;;  %v812_v18 = vld [vmem:[#allocation5 + $0x3b0] sm:$0xff] }
  0xb0   : > { %1264 = vmatprep.subr.mxu1 %v781_v30  ;;  %1519 = vmatprep.subr.mxu0 %v847_v31  ;;  %v829_v30 = vld [vmem:[#allocation5 + $0x438] sm:$0xff]  ;;  %v632_v31 = vunpack.c.h.bf16 %v434_v25 }
  0xb1   : > { %1075 = vmatprep.mubr.f32.mxu0 %v485_v32  ;;  %1265 = vmatpush1.msra.mxu1 %v780_v34  ;;  %v370_v32 = vld [vmem:[%s4297_s29 + $0xc4] sm:$0xff]  ;;  %v631_v34 = vunpack.c.l.bf16 %v434_v25 }
  0xb2   : > { %1520 = vmatpush1.msra.mxu0 %v846_v35  ;;  %1266 = vmatprep.subr.mxu1 %v779_v37  ;;  %v828_v35 = vld [vmem:[#allocation5 + $0x430] sm:$0xff]  ;;  %v827_v37 = vld [vmem:[#allocation5 + $0x428] sm:$0xff]  ;;  %v810_v25 = vld [vmem:[#allocation5 + $0x3a0] sm:$0xff] }
  0xb3   : > { %1076 = vmatmul.mubr.f32.gmra.mxu0 %v484_v36  ;;  %1521 = vmatprep.subr.mxu0 %v845_v38  ;;  %v761_v36 = vld [vmem:[#allocation5 + $0x218] sm:$0xff]  ;;  %v520_v38 = vunpack.c.h.bf16 %v370_v32 }
  0xb4   : > { %1177 = vmatprep.mubr.f32.mxu1 %v604_v39  ;;  %1267 = vmatpush1.msra.mxu1 %v778_v41  ;;  %v438_v39 = vld [vmem:[%s4297_s29 + $0x2a0] sm:$0xff] }
  0xb5   : > { %1522 = vmatpush1.msra.mxu0 %v844_v43  ;;  %1178 = vmatmul.mubr.f32.gmra.mxu1 %v603_v42  ;;  %v826_v41 = vld [vmem:[#allocation5 + $0x420] sm:$0xff]  ;;  %v519_v42 = vunpack.c.l.bf16 %v370_v32  ;;  %v759_v43 = vld [vmem:[#allocation5 + $0x208] sm:$0xff]  ;;  %v808_v32 = vld [vmem:[#allocation5 + $0x390] sm:$0xff] }
  0xb6   : > { %1268 = vmatprep.subr.mxu1 %v777_v44  ;;  %1523 = vmatprep.subr.mxu0 %v843_v45  ;;  %v825_v44 = vld [vmem:[#allocation5 + $0x418] sm:$0xff]  ;;  %v639_v45 = vunpack.c.h.bf16 %v438_v39 }
  0xb7   : > { %1081 = vmatprep.mubr.f32.mxu0 %v492_v46  ;;  %1269 = vmatpush1.msra.mxu1 %v776_v48  ;;  %v374_v46 = vld [vmem:[%s4297_s29 + $0xe0] sm:$0xff]  ;;  %v638_v48 = vunpack.c.l.bf16 %v438_v39 }
  0xb8   : > { %1524 = vmatpush1.msra.mxu0 %v842_v49  ;;  %1270 = vmatprep.subr.mxu1 %v775_v51  ;;  %v824_v49 = vld [vmem:[#allocation5 + $0x410] sm:$0xff]  ;;  %v823_v51 = vld [vmem:[#allocation5 + $0x408] sm:$0xff]  ;;  %v806_v39 = vld [vmem:[#allocation5 + $0x380] sm:$0xff] }
  0xb9   : > { %1082 = vmatmul.mubr.f32.gmra.mxu0 %v491_v50  ;;  %1525 = vmatprep.subr.mxu0 %v841_v52  ;;  %v821_v50 = vld [vmem:[#allocation5 + $0x3f8] sm:$0xff]  ;;  %v527_v52 = vunpack.c.h.bf16 %v374_v46 }
  0xba   : > { %1183 = vmatprep.mubr.f32.mxu1 %v611_v53  ;;  %1271 = vmatpush1.msra.mxu1 %v774_v55  ;;  %v442_v53 = vld [vmem:[%s4297_s29 + $0x2bc] sm:$0xff] }
  0xbb   : > { %1526 = vmatpush1.msra.mxu0 %v840_v57  ;;  %1184 = vmatmul.mubr.f32.gmra.mxu1 %v610_v56  ;;  %v822_v55 = vld [vmem:[#allocation5 + $0x400] sm:$0xff]  ;;  %v526_v56 = vunpack.c.l.bf16 %v374_v46  ;;  %v819_v57 = vld [vmem:[#allocation5 + $0x3e8] sm:$0xff]  ;;  %v804_v46 = vld [vmem:[#allocation5 + $0x370] sm:$0xff] }
  0xbc   : > { %1272 = vmatprep.subr.mxu1 %v773_v58  ;;  %1527 = vmatprep.subr.mxu0 %v839_v59  ;;  %v885_v58 = vld [vmem:[#allocation5 + $0x5f8] sm:$0xff]  ;;  %v646_v59 = vunpack.c.h.bf16 %v442_v53 }
  0xbd   : > { %1087 = vmatprep.mubr.f32.mxu0 %v499_v60  ;;  %1273 = vmatpush1.msra.mxu1 %v772_v62  ;;  %v378_v60 = vld [vmem:[%s4297_s29 + $0xfc] sm:$0xff]  ;;  %v645_v62 = vunpack.c.l.bf16 %v442_v53 }
  0xbe   : > { %1528 = vmatpush1.msra.mxu0 %v838_v63  ;;  %1274 = vmatprep.subr.mxu1 %v771_v1  ;;  %v884_v63 = vld [vmem:[#allocation5 + $0x5f0] sm:$0xff]  ;;  %v883_v1 = vld [vmem:[#allocation5 + $0x5e8] sm:$0xff]  ;;  %v802_v53 = vld [vmem:[#allocation5 + $0x360] sm:$0xff] }
  0xbf   : > { %1088 = vmatmul.mubr.f32.gmra.mxu0 %v498_v0  ;;  %1529 = vmatprep.subr.mxu0 %v837_v2  ;;  %v817_v0 = vld [vmem:[#allocation5 + $0x3d8] sm:$0xff]  ;;  %v534_v2 = vunpack.c.h.bf16 %v378_v60 }
  0xc0   : > { %1189 = vmatprep.mubr.f32.mxu1 %v618_v3  ;;  %1275 = vmatpush1.msra.mxu1 %v770_v5  ;;  %v446_v3 = vld [vmem:[%s4297_s29 + $0x2d8] sm:$0xff]  ;;  %v882_v5 = vld [vmem:[#allocation5 + $0x5e0] sm:$0xff] }
  0xc1   : > { %1530 = vmatpush1.msra.mxu0 %v836_v7  ;;  %1190 = vmatmul.mubr.f32.gmra.mxu1 %v617_v6  ;;  %v533_v6 = vunpack.c.l.bf16 %v378_v60  ;;  %v815_v7 = vld [vmem:[#allocation5 + $0x3c8] sm:$0xff]  ;;  %v800_v60 = vld [vmem:[#allocation5 + $0x350] sm:$0xff] }
  0xc2   : > { %1276 = vmatprep.subr.mxu1 %v769_v8  ;;  %1531 = vmatprep.subr.mxu0 %v835_v9  ;;  %v881_v8 = vld [vmem:[#allocation5 + $0x5d8] sm:$0xff]  ;;  %v653_v9 = vunpack.c.h.bf16 %v446_v3 }
  0xc3   : > { %1093 = vmatprep.mubr.f32.mxu0 %v506_v10  ;;  %1277 = vmatpush1.msra.mxu1 %v768_v12  ;;  %v382_v10 = vld [vmem:[%s4297_s29 + $0x118] sm:$0xff]  ;;  %v652_v12 = vunpack.c.l.bf16 %v446_v3  ;;  %v798_v3 = vld [vmem:[#allocation5 + $0x340] sm:$0xff] }
  0xc4   : > { %1532 = vmatpush1.msra.mxu0 %v834_v13  ;;  %1278 = vmatprep.subr.mxu1 %v767_v15  ;;  %v880_v13 = vld [vmem:[#allocation5 + $0x5d0] sm:$0xff]  ;;  %v879_v15 = vld [vmem:[#allocation5 + $0x5c8] sm:$0xff] }
  0xc5   : > { %1094 = vmatmul.mubr.f32.gmra.mxu0 %v505_v14  ;;  %1533 = vmatprep.subr.mxu0 %v833_v16  ;;  %v813_v14 = vld [vmem:[#allocation5 + $0x3b8] sm:$0xff]  ;;  %v541_v16 = vunpack.c.h.bf16 %v382_v10 }
  0xc6   : > { %1195 = vmatprep.mubr.f32.mxu1 %v625_v17  ;;  %1279 = vmatpush1.msra.mxu1 %v766_v19  ;;  %v450_v17 = vld [vmem:[%s4297_s29 + $0x2f4] sm:$0xff]  ;;  %v878_v19 = vld [vmem:[#allocation5 + $0x5c0] sm:$0xff] }
  0xc7   : > { %1534 = vmatpush1.msra.mxu0 %v832_v21  ;;  %1196 = vmatmul.mubr.f32.gmra.mxu1 %v624_v20  ;;  %v540_v20 = vunpack.c.l.bf16 %v382_v10  ;;  %v811_v21 = vld [vmem:[#allocation5 + $0x3a8] sm:$0xff]  ;;  %v796_v10 = vld [vmem:[#allocation5 + $0x330] sm:$0xff] }
  0xc8   : > { %1280 = vmatprep.subr.mxu1 %v765_v22  ;;  %1535 = vmatprep.subr.mxu0 %v831_v23  ;;  %v877_v22 = vld [vmem:[#allocation5 + $0x5b8] sm:$0xff]  ;;  %v660_v23 = vunpack.c.h.bf16 %v450_v17 }
  0xc9   : > { %1099 = vmatprep.mubr.f32.mxu0 %v513_v24  ;;  %1281 = vmatpush1.msra.mxu1 %v764_v26  ;;  %v386_v24 = vld [vmem:[%s4297_s29 + $0x134] sm:$0xff]  ;;  %v659_v26 = vunpack.c.l.bf16 %v450_v17  ;;  %v794_v17 = vld [vmem:[#allocation5 + $0x320] sm:$0xff] }
  0xca   : > { %1536 = vmatpush1.msra.mxu0 %v830_v27  ;;  %1282 = vmatprep.subr.mxu1 %v763_v29  ;;  %v876_v27 = vld [vmem:[#allocation5 + $0x5b0] sm:$0xff]  ;;  %v875_v29 = vld [vmem:[#allocation5 + $0x5a8] sm:$0xff] }
  0xcb   : > { %1100 = vmatmul.mubr.f32.gmra.mxu0 %v512_v28  ;;  %1537 = vmatprep.subr.mxu0 %v829_v30  ;;  %v809_v28 = vld [vmem:[#allocation5 + $0x398] sm:$0xff]  ;;  %v548_v30 = vunpack.c.h.bf16 %v386_v24 }
  0xcc   : > { %1201 = vmatprep.mubr.f32.mxu1 %v632_v31  ;;  %1283 = vmatpush1.msra.mxu1 %v762_v33  ;;  %v454_v31 = vld [vmem:[%s4297_s29 + $0x310] sm:$0xff]  ;;  %v874_v33 = vld [vmem:[#allocation5 + $0x5a0] sm:$0xff] }
  0xcd   : > { %1538 = vmatpush1.msra.mxu0 %v828_v35  ;;  %1202 = vmatmul.mubr.f32.gmra.mxu1 %v631_v34  ;;  %v547_v34 = vunpack.c.l.bf16 %v386_v24  ;;  %v807_v35 = vld [vmem:[#allocation5 + $0x388] sm:$0xff]  ;;  %v792_v24 = vld [vmem:[#allocation5 + $0x310] sm:$0xff] }
  0xce   : > { %1284 = vmatprep.subr.mxu1 %v761_v36  ;;  %1539 = vmatprep.subr.mxu0 %v827_v37  ;;  %v873_v36 = vld [vmem:[#allocation5 + $0x598] sm:$0xff]  ;;  %v667_v37 = vunpack.c.h.bf16 %v454_v31 }
  0xcf   : > { %1105 = vmatprep.mubr.f32.mxu0 %v520_v38  ;;  %1285 = vmatpush1.msra.mxu1 %v760_v40  ;;  %v390_v38 = vld [vmem:[%s4297_s29 + $0x150] sm:$0xff]  ;;  %v666_v40 = vunpack.c.l.bf16 %v454_v31  ;;  %v790_v31 = vld [vmem:[#allocation5 + $0x300] sm:$0xff] }
  0xd0   : > { %1540 = vmatpush1.msra.mxu0 %v826_v41  ;;  %1286 = vmatprep.subr.mxu1 %v759_v43  ;;  %v872_v41 = vld [vmem:[#allocation5 + $0x590] sm:$0xff]  ;;  %v871_v43 = vld [vmem:[#allocation5 + $0x588] sm:$0xff] }
  0xd1   : > { %1106 = vmatmul.mubr.f32.gmra.mxu0 %v519_v42  ;;  %1541 = vmatprep.subr.mxu0 %v825_v44  ;;  %v805_v42 = vld [vmem:[#allocation5 + $0x378] sm:$0xff]  ;;  %v555_v44 = vunpack.c.h.bf16 %v390_v38 }
  0xd2   : > { %1207 = vmatprep.mubr.f32.mxu1 %v639_v45  ;;  %1287 = vmatpush1.msra.mxu1 %v758_v47  ;;  %v458_v45 = vld [vmem:[%s4297_s29 + $0x32c] sm:$0xff]  ;;  %v870_v47 = vld [vmem:[#allocation5 + $0x580] sm:$0xff] }
  0xd3   : > { %1542 = vmatpush1.msra.mxu0 %v824_v49  ;;  %1208 = vmatmul.mubr.f32.gmra.mxu1 %v638_v48  ;;  %v554_v48 = vunpack.c.l.bf16 %v390_v38  ;;  %v803_v49 = vld [vmem:[#allocation5 + $0x368] sm:$0xff] }
  0xd4   : > { %1288 = vmatprep.subr.mxu1 %v821_v50  ;;  %1543 = vmatprep.subr.mxu0 %v823_v51  ;;  %v869_v50 = vld [vmem:[#allocation5 + $0x578] sm:$0xff]  ;;  %v674_v51 = vunpack.c.h.bf16 %v458_v45 }
  0xd5   : > { %1111 = vmatprep.mubr.f32.mxu0 %v527_v52  ;;  %1289 = vmatpush2.msra.mxu1 %v820_v54  ;;  %v394_v52 = vld [vmem:[%s4297_s29 + $0x16c] sm:$0xff]  ;;  %v673_v54 = vunpack.c.l.bf16 %v458_v45 }
  0xd6   : > { %1544 = vmatpush1.msra.mxu0 %v822_v55  ;;  %1290 = vmatprep.subr.mxu1 %v819_v57  ;;  %v868_v55 = vld [vmem:[#allocation5 + $0x570] sm:$0xff]  ;;  %v867_v57 = vld [vmem:[#allocation5 + $0x568] sm:$0xff] }
  0xd7   : > { %1112 = vmatmul.mubr.f32.gmra.mxu0 %v526_v56  ;;  %1545 = vmatprep.subr.mxu0 %v885_v58  ;;  %v801_v56 = vld [vmem:[#allocation5 + $0x358] sm:$0xff]  ;;  %v562_v58 = vunpack.c.h.bf16 %v394_v52 }
  0xd8   : > { %1213 = vmatprep.mubr.f32.mxu1 %v646_v59  ;;  %1291 = vmatpush2.msra.mxu1 %v818_v61  ;;  %v462_v59 = vld [vmem:[%s4297_s29 + $0x348] sm:$0xff]  ;;  %v866_v61 = vld [vmem:[#allocation5 + $0x560] sm:$0xff] }
  0xd9   : > { %1546 = vmatpush2.msra.mxu0 %v884_v63  ;;  %1214 = vmatmul.mubr.f32.gmra.mxu1 %v645_v62  ;;  %v561_v62 = vunpack.c.l.bf16 %v394_v52  ;;  %v799_v63 = vld [vmem:[#allocation5 + $0x348] sm:$0xff] }
  0xda   : > { %1292 = vmatprep.subr.mxu1 %v817_v0  ;;  %1547 = vmatprep.subr.mxu0 %v883_v1  ;;  %v865_v0 = vld [vmem:[#allocation5 + $0x558] sm:$0xff]  ;;  %v681_v1 = vunpack.c.h.bf16 %v462_v59 }
  0xdb   : > { %1117 = vmatprep.mubr.f32.mxu0 %v534_v2  ;;  %1293 = vmatpush2.msra.mxu1 %v816_v4  ;;  %v398_v2 = vld [vmem:[%s4297_s29 + $0x188] sm:$0xff]  ;;  %v680_v4 = vunpack.c.l.bf16 %v462_v59 }
  0xdc   : > { %1548 = vmatpush2.msra.mxu0 %v882_v5  ;;  %1294 = vmatprep.subr.mxu1 %v815_v7  ;;  %v864_v5 = vld [vmem:[#allocation5 + $0x550] sm:$0xff]  ;;  %v863_v7 = vld [vmem:[#allocation5 + $0x548] sm:$0xff] }
  0xdd   : > { %1118 = vmatmul.mubr.f32.gmra.mxu0 %v533_v6  ;;  %1549 = vmatprep.subr.mxu0 %v881_v8  ;;  %v797_v6 = vld [vmem:[#allocation5 + $0x338] sm:$0xff]  ;;  %v569_v8 = vunpack.c.h.bf16 %v398_v2 }
  0xde   : > { %1219 = vmatprep.mubr.f32.mxu1 %v653_v9  ;;  %1295 = vmatpush2.msra.mxu1 %v814_v11  ;;  %v466_v9 = vld [vmem:[%s4297_s29 + $0x364] sm:$0xff] }
  0xdf   : > { %1550 = vmatpush2.msra.mxu0 %v880_v13  ;;  %1220 = vmatmul.mubr.f32.gmra.mxu1 %v652_v12  ;;  %v862_v11 = vld [vmem:[#allocation5 + $0x540] sm:$0xff]  ;;  %v568_v12 = vunpack.c.l.bf16 %v398_v2  ;;  %v795_v13 = vld [vmem:[#allocation5 + $0x328] sm:$0xff] }
  0xe0   : > { %1296 = vmatprep.subr.mxu1 %v813_v14  ;;  %1551 = vmatprep.subr.mxu0 %v879_v15  ;;  %v861_v14 = vld [vmem:[#allocation5 + $0x538] sm:$0xff]  ;;  %v688_v15 = vunpack.c.h.bf16 %v466_v9 }
  0xe1   : > { %1123 = vmatprep.mubr.f32.mxu0 %v541_v16  ;;  %1297 = vmatpush2.msra.mxu1 %v812_v18  ;;  %v402_v16 = vld [vmem:[%s4297_s29 + $0x1a4] sm:$0xff]  ;;  %v687_v18 = vunpack.c.l.bf16 %v466_v9  ;;  %v364_v2 = vld [vmem:[%s4297_s29 + $0x9c] sm:$0xff] }
  0xe2   : > { %1552 = vmatpush2.msra.mxu0 %v878_v19  ;;  %1298 = vmatprep.subr.mxu1 %v811_v21  ;;  %v860_v19 = vld [vmem:[#allocation5 + $0x530] sm:$0xff]  ;;  %v859_v21 = vld [vmem:[#allocation5 + $0x528] sm:$0xff] }
  0xe3   : > { %1124 = vmatmul.mubr.f32.gmra.mxu0 %v540_v20  ;;  %1553 = vmatprep.subr.mxu0 %v877_v22  ;;  %v793_v20 = vld [vmem:[#allocation5 + $0x318] sm:$0xff]  ;;  %v576_v22 = vunpack.c.h.bf16 %v402_v16 }
  0xe4   : > { %1225 = vmatprep.mubr.f32.mxu1 %v660_v23  ;;  %1299 = vmatpush2.msra.mxu1 %v810_v25  ;;  %v343_v23 = vld [vmem:[%s4297_s29 + $0x8] sm:$0xff]  ;;  %v858_v25 = vld [vmem:[#allocation5 + $0x520] sm:$0xff] }
  0xe5   : > { %1554 = vmatpush2.msra.mxu0 %v876_v27  ;;  %1226 = vmatmul.mubr.f32.gmra.mxu1 %v659_v26  ;;  %v575_v26 = vunpack.c.l.bf16 %v402_v16  ;;  %v791_v27 = vld [vmem:[#allocation5 + $0x308] sm:$0xff] }
  0xe6   : > { %1300 = vmatprep.subr.mxu1 %v809_v28  ;;  %1555 = vmatprep.subr.mxu0 %v875_v29  ;;  %v857_v28 = vld [vmem:[#allocation5 + $0x518] sm:$0xff]  ;;  %v473_v29 = vunpack.c.h.bf16 %v343_v23 }
  0xe7   : > { %1129 = vmatprep.mubr.f32.mxu0 %v548_v30  ;;  %1301 = vmatpush2.msra.mxu1 %v808_v32  ;;  %v344_v30 = vld [vmem:[%s4297_s29 + $0x10] sm:$0xff]  ;;  %v472_v32 = vunpack.c.l.bf16 %v343_v23  ;;  %v379_v23 = vld [vmem:[%s4297_s29 + $0x104] sm:$0xff] }
  0xe8   : > { %1556 = vmatpush2.msra.mxu0 %v874_v33  ;;  %1302 = vmatprep.subr.mxu1 %v807_v35  ;;  %v856_v33 = vld [vmem:[#allocation5 + $0x510] sm:$0xff]  ;;  %v475_v38 = vunpack.c.h.bf16 %v344_v30 }
  0xe9   : > { %1130 = vmatmul.mubr.f32.gmra.mxu0 %v547_v34  ;;  %1557 = vmatprep.subr.mxu0 %v873_v36  ;;  %v347_v34 = vld [vmem:[%s4297_s29 + $0x24] sm:$0xff]  ;;  %v348_v35 = vld [vmem:[%s4297_s29 + $0x2c] sm:$0xff] }
  0xea   : > { %1231 = vmatprep.mubr.f32.mxu1 %v667_v37  ;;  %1303 = vmatpush2.msra.mxu1 %v806_v39  ;;  %v855_v36 = vld [vmem:[#allocation5 + $0x508] sm:$0xff]  ;;  %v889_v37 = vld [vmem:[#allocation5 + $0x618] sm:$0xff]  ;;  %v854_v39 = vld [vmem:[#allocation5 + $0x500] sm:$0xff]  ;;  %v479_v45 = vunpack.c.l.bf16 %v347_v34 }
  0xeb   : > { %1558 = vmatpush2.msra.mxu0 %v872_v41  ;;  %1232 = vmatmul.mubr.f32.gmra.mxu1 %v666_v40  ;;  %v474_v40 = vunpack.c.l.bf16 %v344_v30  ;;  %v351_v41 = vld [vmem:[%s4297_s29 + $0x40] sm:$0xff] }
  0xec   : > { %1304 = vmatprep.subr.mxu1 %v805_v42  ;;  %1559 = vmatprep.subr.mxu0 %v871_v43  ;;  %v888_v42 = vld [vmem:[#allocation5 + $0x610] sm:$0xff]  ;;  %v480_v43 = vunpack.c.h.bf16 %v347_v34 }
  0xed   : > { %1135 = vmatprep.mubr.f32.mxu0 %v555_v44  ;;  %1305 = vmatpush2.msra.mxu1 %v804_v46  ;;  %v482_v44 = vunpack.c.h.bf16 %v348_v35  ;;  %v352_v46 = vld [vmem:[%s4297_s29 + $0x48] sm:$0xff] }
  0xee   : > { %1560 = vmatpush2.msra.mxu0 %v870_v47  ;;  %1306 = vmatprep.subr.mxu1 %v803_v49  ;;  %v487_v47 = vunpack.c.h.bf16 %v351_v41  ;;  %v481_v49 = vunpack.c.l.bf16 %v348_v35  ;;  %v489_v52 = vunpack.c.h.bf16 %v352_v46  ;;  %v387_v35 = vld [vmem:[%s4297_s29 + $0x13c] sm:$0xff] }
  0xef   : > { %1136 = vmatmul.mubr.f32.gmra.mxu0 %v554_v48  ;;  %1561 = vmatprep.subr.mxu0 %v869_v50  ;;  %v887_v48 = vld [vmem:[#allocation5 + $0x608] sm:$0xff]  ;;  %v355_v50 = vld [vmem:[%s4297_s29 + $0x5c] sm:$0xff] }
  0xf0   : > { %1237 = vmatprep.mubr.f32.mxu1 %v674_v51  ;;  %1307 = vmatpush2.msra.mxu1 %v802_v53  ;;  %v886_v51 = vld [vmem:[#allocation5 + $0x600] sm:$0xff]  ;;  %v486_v53 = vunpack.c.l.bf16 %v351_v41  ;;  %v493_v59 = vunpack.c.l.bf16 %v355_v50  ;;  %v391_v41 = vld [vmem:[%s4297_s29 + $0x158] sm:$0xff] }
  0xf1   : > { %1562 = vmatpush2.msra.mxu0 %v868_v55  ;;  %1238 = vmatmul.mubr.f32.gmra.mxu1 %v673_v54  ;;  %v356_v54 = vld [vmem:[%s4297_s29 + $0x64] sm:$0xff]  ;;  %v494_v55 = vunpack.c.h.bf16 %v355_v50  ;;  %v396_v50 = vld [vmem:[%s4297_s29 + $0x17c] sm:$0xff] }
  0xf2   : > { %1308 = vmatprep.subr.mxu1 %v801_v56  ;;  %1563 = vmatprep.subr.mxu0 %v867_v57  ;;  %v488_v56 = vunpack.c.l.bf16 %v352_v46  ;;  %v359_v57 = vld [vmem:[%s4297_s29 + $0x78] sm:$0xff] }
  0xf3   : > { %1141 = vmatprep.mubr.f32.mxu0 %v562_v58  ;;  %1309 = vmatpush2.msra.mxu1 %v800_v60  ;;  %v496_v58 = vunpack.c.h.bf16 %v356_v54  ;;  %v360_v60 = vld [vmem:[%s4297_s29 + $0x80] sm:$0xff] }
  0xf4   : > { %1564 = vmatpush2.msra.mxu0 %v866_v61  ;;  %1310 = vmatprep.subr.mxu1 %v799_v63  ;;  %v501_v61 = vunpack.c.h.bf16 %v359_v57  ;;  %v363_v63 = vld [vmem:[%s4297_s29 + $0x94] sm:$0xff] }
  0xf5   : > { %1142 = vmatmul.mubr.f32.gmra.mxu0 %v561_v62  ;;  %1565 = vmatprep.subr.mxu0 %v865_v0  ;;  %v495_v62 = vunpack.c.l.bf16 %v356_v54  ;;  %v503_v0 = vunpack.c.h.bf16 %v360_v60  ;;  %v566_v54 = vunpack.c.h.bf16 %v396_v50 }
  0xf6   : > { %1243 = vmatprep.mubr.f32.mxu1 %v681_v1  ;;  %1311 = vmatpush2.msra.mxu1 %v798_v3  ;;  %v500_v1 = vunpack.c.l.bf16 %v359_v57  ;;  %v508_v3 = vunpack.c.h.bf16 %v363_v63 }
  0xf7   : > { %1566 = vmatpush2.msra.mxu0 %v864_v5  ;;  %1244 = vmatmul.mubr.f32.gmra.mxu1 %v680_v4  ;;  %v502_v4 = vunpack.c.l.bf16 %v360_v60  ;;  %v367_v5 = vld [vmem:[%s4297_s29 + $0xb0] sm:$0xff] }
  0xf8   : > { %1312 = vmatprep.subr.mxu1 %v797_v6  ;;  %1567 = vmatprep.subr.mxu0 %v863_v7  ;;  %v510_v6 = vunpack.c.h.bf16 %v364_v2  ;;  %v507_v7 = vunpack.c.l.bf16 %v363_v63  ;;  %v515_v9 = vunpack.c.h.bf16 %v367_v5 }
  0xf9   : > { %1147 = vmatprep.mubr.f32.mxu0 %v569_v8  ;;  %1313 = vmatpush2.msra.mxu1 %v796_v10  ;;  %v368_v8 = vld [vmem:[%s4297_s29 + $0xb8] sm:$0xff]  ;;  %v509_v10 = vunpack.c.l.bf16 %v364_v2 }
  0xfa   : > { %1568 = vmatpush2.msra.mxu0 %v862_v11  ;;  %1314 = vmatprep.subr.mxu1 %v795_v13  ;;  %v371_v11 = vld [vmem:[%s4297_s29 + $0xcc] sm:$0xff]  ;;  %v514_v13 = vunpack.c.l.bf16 %v367_v5  ;;  %v516_v16 = vunpack.c.l.bf16 %v368_v8 }
  0xfb   : > { %1148 = vmatmul.mubr.f32.gmra.mxu0 %v568_v12  ;;  %1569 = vmatprep.subr.mxu0 %v861_v14  ;;  %v517_v12 = vunpack.c.h.bf16 %v368_v8  ;;  %v372_v14 = vld [vmem:[%s4297_s29 + $0xd4] sm:$0xff] }
  0xfc   : > { %1249 = vmatprep.mubr.f32.mxu1 %v688_v15  ;;  %1315 = vmatpush2.msra.mxu1 %v794_v17  ;;  %v522_v15 = vunpack.c.h.bf16 %v371_v11  ;;  %v375_v17 = vld [vmem:[%s4297_s29 + $0xe8] sm:$0xff] }
  0xfd   : > { %1570 = vmatpush2.msra.mxu0 %v860_v19  ;;  %1250 = vmatmul.mubr.f32.gmra.mxu1 %v687_v18  ;;  %v524_v18 = vunpack.c.h.bf16 %v372_v14  ;;  %v521_v19 = vunpack.c.l.bf16 %v371_v11 }
  0xfe   : > { %1316 = vmatprep.subr.mxu1 %v793_v20  ;;  %1571 = vmatprep.subr.mxu0 %v859_v21  ;;  %v376_v20 = vld [vmem:[%s4297_s29 + $0xf0] sm:$0xff]  ;;  %v529_v21 = vunpack.c.h.bf16 %v375_v17 }
  0xff   : > { %1153 = vmatprep.mubr.f32.mxu0 %v576_v22  ;;  %1317 = vmatpush2.msra.mxu1 %v792_v24  ;;  %v523_v22 = vunpack.c.l.bf16 %v372_v14  ;;  %v531_v24 = vunpack.c.h.bf16 %v376_v20 }
 0x100   : > { %1572 = vmatpush2.msra.mxu0 %v858_v25  ;;  %1318 = vmatprep.subr.mxu1 %v791_v27  ;;  %v528_v25 = vunpack.c.l.bf16 %v375_v17  ;;  %v536_v27 = vunpack.c.h.bf16 %v379_v23 }
 0x101   : > { %1154 = vmatmul.mubr.f32.gmra.mxu0 %v575_v26  ;;  %1573 = vmatprep.subr.mxu0 %v857_v28  ;;  %v380_v26 = vld [vmem:[%s4297_s29 + $0x10c] sm:$0xff]  ;;  %v530_v28 = vunpack.c.l.bf16 %v376_v20 }
 0x102   : > { %1319 = vmatpush2.msra.mxu1 %v790_v31  ;;  %1320 = vmatprep.mubr.f32.mxu1 %v473_v29  ;;  %v383_v29 = vld [vmem:[%s4297_s29 + $0x120] sm:$0xff]  ;;  %v538_v30 = vunpack.c.h.bf16 %v380_v26  ;;  %v535_v31 = vunpack.c.l.bf16 %v379_v23  ;;  %v537_v34 = vunpack.c.l.bf16 %v380_v26 }
 0x103   : > { %1574 = vmatpush2.msra.mxu0 %v856_v33  ;;  %1321 = vmatmul.mubr.f32.vlgmr.msra.gmra.mxu1 %v472_v32  ;;  %v384_v32 = vld [vmem:[%s4297_s29 + $0x128] sm:$0xff]  ;;  %v543_v33 = vunpack.c.h.bf16 %v383_v29 }
 0x104   : > { %1575 = vmatprep.subr.mxu0 %v855_v36  ;;  %1798 = vmatprep.subr.mxu1 %v889_v37  ;;  %v545_v36 = vunpack.c.h.bf16 %v384_v32  ;;  %v542_v37 = vunpack.c.l.bf16 %v383_v29 }
 0x105   : > { %1576 = vmatpush2.msra.mxu0 %v854_v39  ;;  %1577 = vmatprep.mubr.f32.mxu0 %v475_v38  ;;  %v388_v38 = vld [vmem:[%s4297_s29 + $0x144] sm:$0xff]  ;;  %v550_v39 = vunpack.c.h.bf16 %v387_v35 }
 0x106   : > { %1799 = vmatpush1.msra.mxu1 %v888_v42  ;;  %1578 = vmatmul.mubr.f32.vlgmr.msra.gmra.mxu0 %v474_v40  ;;  %v544_v40 = vunpack.c.l.bf16 %v384_v32  ;;  %v552_v42 = vunpack.c.h.bf16 %v388_v38  ;;  %v551_v46 = vunpack.c.l.bf16 %v388_v38  ;;  %v427_v32 = vld [vmem:[%s4297_s29 + $0x254] sm:$0xff]  ;;  %v2248_v38 = vld [vmem:[#allocation7 + $0xe8] sm:$0xff] }
 0x107   : > { %1326 = vmatprep.mubr.f32.mxu1 %v480_v43  ;;  %1583 = vmatprep.mubr.f32.mxu0 %v482_v44  ;;  %v549_v43 = vunpack.c.l.bf16 %v387_v35  ;;  %v392_v44 = vld [vmem:[%s4297_s29 + $0x160] sm:$0xff] }
 0x108   : > { %1327 = vmatmul.mubr.f32.gmra.mxu1 %v479_v45  ;;  %1800 = vmatprep.subr.mxu1 %v887_v48  ;;  %v557_v45 = vunpack.c.h.bf16 %v391_v41  ;;  %v559_v48 = vunpack.c.h.bf16 %v392_v44 }
 0x109   : > { %1332 = vmatprep.mubr.f32.mxu1 %v487_v47  ;;  %1801 = vmatpush1.msra.mxu1 %v886_v51  ;;  %v395_v47 = vld [vmem:[%s4297_s29 + $0x174] sm:$0xff] }
 0x10a   : > { %1584 = vmatmul.mubr.f32.gmra.mxu0 %v481_v49  ;;  %v556_v49 = vunpack.c.l.bf16 %v391_v41  ;;  %v564_v51 = vunpack.c.h.bf16 %v395_v47 }
 0x10b   : > { %1589 = vmatprep.mubr.f32.mxu0 %v489_v52  ;;  %v558_v52 = vunpack.c.l.bf16 %v392_v44  ;;  %v432_v44 = vld [vmem:[%s4297_s29 + $0x278] sm:$0xff] }
 0x10c   : > { %1333 = vmatmul.mubr.f32.gmra.mxu1 %v486_v53  ;;  %v399_v53 = vld [vmem:[%s4297_s29 + $0x190] sm:$0xff] }
 0x10d   : > { %1338 = vmatprep.mubr.f32.mxu1 %v494_v55  ;;  %v563_v55 = vunpack.c.l.bf16 %v395_v47  ;;  %v571_v57 = vunpack.c.h.bf16 %v399_v53 }
 0x10e   : > { %1590 = vmatmul.mubr.f32.gmra.mxu0 %v488_v56  ;;  %v400_v56 = vld [vmem:[%s4297_s29 + $0x198] sm:$0xff] }
 0x10f   : > { %1595 = vmatprep.mubr.f32.mxu0 %v496_v58  ;;  %v565_v58 = vunpack.c.l.bf16 %v396_v50  ;;  %v573_v60 = vunpack.c.h.bf16 %v400_v56  ;;  %v2245_v50 = vld [vmem:[#allocation7 + $0xd0] sm:$0xff] }
 0x110   : > { %1339 = vmatmul.mubr.f32.gmra.mxu1 %v493_v59  ;;  %v403_v59 = vld [vmem:[%s4297_s29 + $0x1ac] sm:$0xff] }
 0x111   : > { %1344 = vmatprep.mubr.f32.mxu1 %v501_v61  ;;  %v570_v61 = vunpack.c.l.bf16 %v399_v53  ;;  %v578_v63 = vunpack.c.h.bf16 %v403_v59 }
 0x112   : > { %1596 = vmatmul.mubr.f32.gmra.mxu0 %v495_v62  ;;  %v404_v62 = vld [vmem:[%s4297_s29 + $0x1b4] sm:$0xff] }
 0x113   : > { %1601 = vmatprep.mubr.f32.mxu0 %v503_v0  ;;  %v572_v0 = vunpack.c.l.bf16 %v400_v56  ;;  %v580_v2 = vunpack.c.h.bf16 %v404_v62  ;;  %v439_v56 = vld [vmem:[%s4297_s29 + $0x2a8] sm:$0xff] }
 0x114   : > { %1345 = vmatmul.mubr.f32.gmra.mxu1 %v500_v1  ;;  %v407_v1 = vld [vmem:[%s4297_s29 + $0x1c8] sm:$0xff] }
 0x115   : > { %1350 = vmatprep.mubr.f32.mxu1 %v508_v3  ;;  %v577_v3 = vunpack.c.l.bf16 %v403_v59  ;;  %v585_v5 = vunpack.c.h.bf16 %v407_v1 }
 0x116   : > { %1602 = vmatmul.mubr.f32.gmra.mxu0 %v502_v4  ;;  %v408_v4 = vld [vmem:[%s4297_s29 + $0x1d0] sm:$0xff] }
 0x117   : > { %1607 = vmatprep.mubr.f32.mxu0 %v510_v6  ;;  %v579_v6 = vunpack.c.l.bf16 %v404_v62  ;;  %v587_v8 = vunpack.c.h.bf16 %v408_v4  ;;  %v2242_v62 = vld [vmem:[#allocation7 + $0xb8] sm:$0xff] }
 0x118   : > { %1351 = vmatmul.mubr.f32.gmra.mxu1 %v507_v7  ;;  %v411_v7 = vld [vmem:[%s4297_s29 + $0x1e4] sm:$0xff] }
 0x119   : > { %1356 = vmatprep.mubr.f32.mxu1 %v515_v9  ;;  %v584_v9 = vunpack.c.l.bf16 %v407_v1  ;;  %v592_v11 = vunpack.c.h.bf16 %v411_v7 }
 0x11a   : > { %1608 = vmatmul.mubr.f32.gmra.mxu0 %v509_v10  ;;  %v412_v10 = vld [vmem:[%s4297_s29 + $0x1ec] sm:$0xff] }
 0x11b   : > { %1613 = vmatprep.mubr.f32.mxu0 %v517_v12  ;;  %v586_v12 = vunpack.c.l.bf16 %v408_v4  ;;  %v594_v14 = vunpack.c.h.bf16 %v412_v10  ;;  %v444_v4 = vld [vmem:[%s4297_s29 + $0x2cc] sm:$0xff] }
 0x11c   : > { %1357 = vmatmul.mubr.f32.gmra.mxu1 %v514_v13  ;;  %v415_v13 = vld [vmem:[%s4297_s29 + $0x200] sm:$0xff] }
 0x11d   : > { %1362 = vmatprep.mubr.f32.mxu1 %v522_v15  ;;  %v591_v15 = vunpack.c.l.bf16 %v411_v7  ;;  %v599_v17 = vunpack.c.h.bf16 %v415_v13 }
 0x11e   : > { %1614 = vmatmul.mubr.f32.gmra.mxu0 %v516_v16  ;;  %v416_v16 = vld [vmem:[%s4297_s29 + $0x208] sm:$0xff] }
 0x11f   : > { %1619 = vmatprep.mubr.f32.mxu0 %v524_v18  ;;  %v593_v18 = vunpack.c.l.bf16 %v412_v10  ;;  %v601_v20 = vunpack.c.h.bf16 %v416_v16  ;;  %v2239_v10 = vld [vmem:[#allocation7 + $0xa0] sm:$0xff] }
 0x120   : > { %1363 = vmatmul.mubr.f32.gmra.mxu1 %v521_v19  ;;  %v419_v19 = vld [vmem:[%s4297_s29 + $0x21c] sm:$0xff] }
 0x121   : > { %1368 = vmatprep.mubr.f32.mxu1 %v529_v21  ;;  %v598_v21 = vunpack.c.l.bf16 %v415_v13  ;;  %v606_v23 = vunpack.c.h.bf16 %v419_v19 }
 0x122   : > { %1620 = vmatmul.mubr.f32.gmra.mxu0 %v523_v22  ;;  %v420_v22 = vld [vmem:[%s4297_s29 + $0x224] sm:$0xff] }
 0x123   : > { %1625 = vmatprep.mubr.f32.mxu0 %v531_v24  ;;  %v600_v24 = vunpack.c.l.bf16 %v416_v16  ;;  %v608_v26 = vunpack.c.h.bf16 %v420_v22  ;;  %v649_v16 = vunpack.c.l.bf16 %v444_v4 }
 0x124   : > { %1369 = vmatmul.mubr.f32.gmra.mxu1 %v528_v25  ;;  %v423_v25 = vld [vmem:[%s4297_s29 + $0x238] sm:$0xff] }
 0x125   : > { %1374 = vmatprep.mubr.f32.mxu1 %v536_v27  ;;  %v605_v27 = vunpack.c.l.bf16 %v419_v19  ;;  %v613_v29 = vunpack.c.h.bf16 %v423_v25  ;;  %v612_v35 = vunpack.c.l.bf16 %v423_v25 }
 0x126   : > { %1626 = vmatmul.mubr.f32.gmra.mxu0 %v530_v28  ;;  %v424_v28 = vld [vmem:[%s4297_s29 + $0x240] sm:$0xff] }
 0x127   : > { %1631 = vmatprep.mubr.f32.mxu0 %v538_v30  ;;  %v2250_v30 = vld [vmem:[#allocation7 + $0xf8] sm:$0xff] }
 0x128   : > { %1375 = vmatmul.mubr.f32.gmra.mxu1 %v535_v31  ;;  %v607_v31 = vunpack.c.l.bf16 %v420_v22  ;;  %2295 = vmatprep.subr.mxu0 %v2250_v30 }
 0x129   : > { %1380 = vmatprep.mubr.f32.mxu1 %v543_v33  ;;  %v615_v33 = vunpack.c.h.bf16 %v424_v28 }
 0x12a   : > { %1632 = vmatmul.mubr.f32.gmra.mxu0 %v537_v34  ;;  %v2249_v34 = vld [vmem:[#allocation7 + $0xf0] sm:$0xff] }
 0x12b   : > { %1637 = vmatprep.mubr.f32.mxu0 %v545_v36  ;;  %v428_v36 = vld [vmem:[%s4297_s29 + $0x25c] sm:$0xff]  ;;  %2296 = vmatpush1.msra.mxu0 %v2249_v34 }
 0x12c   : > { %1381 = vmatmul.mubr.f32.gmra.mxu1 %v542_v37  ;;  %v620_v37 = vunpack.c.h.bf16 %v427_v32  ;;  %2297 = vmatprep.subr.mxu0 %v2248_v38  ;;  %v622_v41 = vunpack.c.h.bf16 %v428_v36  ;;  %v621_v47 = vunpack.c.l.bf16 %v428_v36  ;;  %v456_v34 = vld [vmem:[%s4297_s29 + $0x320] sm:$0xff] }
 0x12d   : > { %1386 = vmatprep.mubr.f32.mxu1 %v550_v39  ;;  %v614_v39 = vunpack.c.l.bf16 %v424_v28 }
 0x12e   : > { %1638 = vmatmul.mubr.f32.gmra.mxu0 %v544_v40  ;;  %v431_v40 = vld [vmem:[%s4297_s29 + $0x270] sm:$0xff] }
 0x12f   : > { %1643 = vmatprep.mubr.f32.mxu0 %v552_v42  ;;  %v2247_v42 = vld [vmem:[#allocation7 + $0xe0] sm:$0xff] }
 0x130   : > { %1387 = vmatmul.mubr.f32.gmra.mxu1 %v549_v43  ;;  %v619_v43 = vunpack.c.l.bf16 %v427_v32  ;;  %2298 = vmatpush1.msra.mxu0 %v2247_v42  ;;  %v2235_v32 = vld [vmem:[#allocation7 + $0x80] sm:$0xff] }
 0x131   : > { %1392 = vmatprep.mubr.f32.mxu1 %v557_v45  ;;  %v627_v45 = vunpack.c.h.bf16 %v431_v40 }
 0x132   : > { %1644 = vmatmul.mubr.f32.gmra.mxu0 %v551_v46  ;;  %v2246_v46 = vld [vmem:[#allocation7 + $0xd8] sm:$0xff] }
 0x133   : > { %1649 = vmatprep.mubr.f32.mxu0 %v559_v48  ;;  %v435_v48 = vld [vmem:[%s4297_s29 + $0x28c] sm:$0xff]  ;;  %2299 = vmatprep.subr.mxu0 %v2246_v46 }
 0x134   : > { %1393 = vmatmul.mubr.f32.gmra.mxu1 %v556_v49  ;;  %v629_v49 = vunpack.c.h.bf16 %v432_v44  ;;  %2300 = vmatpush1.msra.mxu0 %v2245_v50  ;;  %v634_v53 = vunpack.c.h.bf16 %v435_v48  ;;  %v633_v59 = vunpack.c.l.bf16 %v435_v48  ;;  %v2232_v48 = vld [vmem:[#allocation7 + $0x68] sm:$0xff]  ;;  %v463_v50 = vld [vmem:[%s4297_s29 + $0x350] sm:$0xff] }
 0x135   : > { %1398 = vmatprep.mubr.f32.mxu1 %v564_v51  ;;  %v626_v51 = vunpack.c.l.bf16 %v431_v40  ;;  %v671_v40 = vunpack.c.h.bf16 %v456_v34 }
 0x136   : > { %1650 = vmatmul.mubr.f32.gmra.mxu0 %v558_v52  ;;  %v436_v52 = vld [vmem:[%s4297_s29 + $0x294] sm:$0xff] }
 0x137   : > { %1655 = vmatprep.mubr.f32.mxu0 %v566_v54  ;;  %v2244_v54 = vld [vmem:[#allocation7 + $0xc8] sm:$0xff] }
 0x138   : > { %1399 = vmatmul.mubr.f32.gmra.mxu1 %v563_v55  ;;  %v628_v55 = vunpack.c.l.bf16 %v432_v44  ;;  %2301 = vmatprep.subr.mxu0 %v2244_v54 }
 0x139   : > { %1404 = vmatprep.mubr.f32.mxu1 %v571_v57  ;;  %v636_v57 = vunpack.c.h.bf16 %v436_v52 }
 0x13a   : > { %1656 = vmatmul.mubr.f32.gmra.mxu0 %v565_v58  ;;  %v2243_v58 = vld [vmem:[#allocation7 + $0xc0] sm:$0xff] }
 0x13b   : > { %1661 = vmatprep.mubr.f32.mxu0 %v573_v60  ;;  %v440_v60 = vld [vmem:[%s4297_s29 + $0x2b0] sm:$0xff]  ;;  %2302 = vmatpush1.msra.mxu0 %v2243_v58 }
 0x13c   : > { %1405 = vmatmul.mubr.f32.gmra.mxu1 %v570_v61  ;;  %v641_v61 = vunpack.c.h.bf16 %v439_v56  ;;  %2303 = vmatprep.subr.mxu0 %v2242_v62  ;;  %v643_v1 = vunpack.c.h.bf16 %v440_v60  ;;  %v642_v7 = vunpack.c.l.bf16 %v440_v60 }
 0x13d   : > { %1410 = vmatprep.mubr.f32.mxu1 %v578_v63  ;;  %v635_v63 = vunpack.c.l.bf16 %v436_v52 }
 0x13e   : > { %1662 = vmatmul.mubr.f32.gmra.mxu0 %v572_v0  ;;  %v443_v0 = vld [vmem:[%s4297_s29 + $0x2c4] sm:$0xff] }
 0x13f   : > { %1667 = vmatprep.mubr.f32.mxu0 %v580_v2  ;;  %v2241_v2 = vld [vmem:[#allocation7 + $0xb0] sm:$0xff] }
 0x140   : > { %1411 = vmatmul.mubr.f32.gmra.mxu1 %v577_v3  ;;  %v640_v3 = vunpack.c.l.bf16 %v439_v56  ;;  %2304 = vmatpush1.msra.mxu0 %v2241_v2  ;;  %v683_v56 = vunpack.c.h.bf16 %v463_v50  ;;  %v468_v2 = vld [vmem:[%s4297_s29 + $0x374] sm:$0xff] }
 0x141   : > { %1416 = vmatprep.mubr.f32.mxu1 %v585_v5  ;;  %v648_v5 = vunpack.c.h.bf16 %v443_v0 }
 0x142   : > { %1668 = vmatmul.mubr.f32.gmra.mxu0 %v579_v6  ;;  %v2240_v6 = vld [vmem:[#allocation7 + $0xa8] sm:$0xff] }
 0x143   : > { %1673 = vmatprep.mubr.f32.mxu0 %v587_v8  ;;  %v447_v8 = vld [vmem:[%s4297_s29 + $0x2e0] sm:$0xff]  ;;  %2305 = vmatprep.subr.mxu0 %v2240_v6 }
 0x144   : > { %1417 = vmatmul.mubr.f32.gmra.mxu1 %v584_v9  ;;  %v650_v9 = vunpack.c.h.bf16 %v444_v4  ;;  %2306 = vmatpush1.msra.mxu0 %v2239_v10  ;;  %v654_v22 = vunpack.c.l.bf16 %v447_v8  ;;  %v2227_v10 = vld [vmem:[#allocation7 + $0x40] sm:$0xff] }
 0x145   : > { %1422 = vmatprep.mubr.f32.mxu1 %v592_v11  ;;  %v647_v11 = vunpack.c.l.bf16 %v443_v0  ;;  %v2229_v0 = vld [vmem:[#allocation7 + $0x50] sm:$0xff] }
 0x146   : > { %1674 = vmatmul.mubr.f32.gmra.mxu0 %v586_v12  ;;  %v448_v12 = vld [vmem:[%s4297_s29 + $0x2e8] sm:$0xff] }
 0x147   : > { %1679 = vmatprep.mubr.f32.mxu0 %v594_v14  ;;  %v655_v14 = vunpack.c.h.bf16 %v447_v8  ;;  %v656_v28 = vunpack.c.l.bf16 %v448_v12 }
 0x148   : > { %1423 = vmatmul.mubr.f32.gmra.mxu1 %v591_v15  ;;  %v2238_v15 = vld [vmem:[#allocation7 + $0x98] sm:$0xff] }
 0x149   : > { %1428 = vmatprep.mubr.f32.mxu1 %v599_v17  ;;  %v451_v17 = vld [vmem:[%s4297_s29 + $0x2fc] sm:$0xff]  ;;  %2307 = vmatprep.subr.mxu0 %v2238_v15 }
 0x14a   : > { %1680 = vmatmul.mubr.f32.gmra.mxu0 %v593_v18  ;;  %v2226_v15 = vld [vmem:[#allocation7 + $0x38] sm:$0xff] }
 0x14b   : > { %1685 = vmatprep.mubr.f32.mxu0 %v601_v20  ;;  %v657_v20 = vunpack.c.h.bf16 %v448_v12  ;;  %v345_v12 = vld [vmem:[%s4297_s29 + $0x18] ss:$28 sps:$4 sm:$0xff]  }
 0x14c   : > { %1429 = vmatmul.mubr.f32.gmra.mxu1 %v598_v21  ;;  %v2237_v21 = vld [vmem:[#allocation7 + $0x90] sm:$0xff] }
 0x14d   : > { %1434 = vmatprep.mubr.f32.mxu1 %v606_v23  ;;  %v452_v23 = vld [vmem:[%s4297_s29 + $0x304] sm:$0xff]  ;;  %2308 = vmatpush1.msra.mxu0 %v2237_v21  ;;  %v476_v21 = vunpack.c.l.bf16 %v345_v12 }
 0x14e   : > { %1686 = vmatmul.mubr.f32.gmra.mxu0 %v600_v24  ;;  %v662_v24 = vunpack.c.h.bf16 %v451_v17  ;;  %v664_v30 = vunpack.c.h.bf16 %v452_v23  ;;  %v663_v38 = vunpack.c.l.bf16 %v452_v23 }
 0x14f   : > { %1691 = vmatprep.mubr.f32.mxu0 %v608_v26 }
 0x150   : > { %1435 = vmatmul.mubr.f32.gmra.mxu1 %v605_v27  ;;  %v2236_v27 = vld [vmem:[#allocation7 + $0x88] sm:$0xff] }
 0x151   : > { %1440 = vmatprep.mubr.f32.mxu1 %v613_v29  ;;  %v455_v29 = vld [vmem:[%s4297_s29 + $0x318] sm:$0xff]  ;;  %2309 = vmatprep.subr.mxu0 %v2236_v27  ;;  %v2224_v27 = vld [vmem:[#allocation7 + $0x28] sm:$0xff] }
 0x152   : > { %1692 = vmatmul.mubr.f32.gmra.mxu0 %v607_v31  ;;  %v668_v44 = vunpack.c.l.bf16 %v455_v29 }
 0x153   : > { %1697 = vmatprep.mubr.f32.mxu0 %v615_v33  ;;  %v661_v33 = vunpack.c.l.bf16 %v451_v17  ;;  %2310 = vmatpush1.msra.mxu0 %v2235_v32  ;;  %v353_v32 = vld [vmem:[%s4297_s29 + $0x50] ss:$28 sps:$4 sm:$0xff]  }
 0x154   : > { %1441 = vmatmul.mubr.f32.gmra.mxu1 %v612_v35  ;;  %v669_v35 = vunpack.c.h.bf16 %v455_v29  ;;  %v2223_v29 = vld [vmem:[#allocation7 + $0x20] sm:$0xff] }
 0x155   : > { %1446 = vmatprep.mubr.f32.mxu1 %v620_v37  ;;  %v2234_v37 = vld [vmem:[#allocation7 + $0x78] sm:$0xff] }
 0x156   : > { %1698 = vmatmul.mubr.f32.gmra.mxu0 %v614_v39  ;;  %v459_v39 = vld [vmem:[%s4297_s29 + $0x334] sm:$0xff]  ;;  %2311 = vmatprep.subr.mxu0 %v2234_v37 }
 0x157   : > { %1703 = vmatprep.mubr.f32.mxu0 %v622_v41  ;;  %v676_v46 = vunpack.c.h.bf16 %v459_v39  ;;  %v675_v54 = vunpack.c.l.bf16 %v459_v39  ;;  %v490_v39 = vunpack.c.l.bf16 %v353_v32 }
 0x158   : > { %1447 = vmatmul.mubr.f32.gmra.mxu1 %v619_v43  ;;  %v2233_v43 = vld [vmem:[#allocation7 + $0x70] sm:$0xff] }
 0x159   : > { %1452 = vmatprep.mubr.f32.mxu1 %v627_v45  ;;  %v460_v45 = vld [vmem:[%s4297_s29 + $0x33c] sm:$0xff]  ;;  %2312 = vmatpush1.msra.mxu0 %v2233_v43  ;;  %v2220_v43 = vld [vmem:[#allocation7 + $0x8] sm:$0xff] }
 0x15a   : > { %1704 = vmatmul.mubr.f32.gmra.mxu0 %v621_v47  ;;  %2313 = vmatprep.subr.mxu0 %v2232_v48  ;;  %v677_v60 = vunpack.c.l.bf16 %v460_v45  ;;  %v361_v48 = vld [vmem:[%s4297_s29 + $0x88] ss:$28 sps:$4 sm:$0xff]  }
 0x15b   : > { %1709 = vmatprep.mubr.f32.mxu0 %v629_v49  ;;  %v670_v49 = vunpack.c.l.bf16 %v456_v34  ;;  %v2222_v34 = vld [vmem:[#allocation7 + $0x18] sm:$0xff] }
 0x15c   : > { %1453 = vmatmul.mubr.f32.gmra.mxu1 %v626_v51  ;;  %v678_v51 = vunpack.c.h.bf16 %v460_v45  ;;  %v2219_v45 = vld [vmem:[#allocation7] sm:$0xff] }
 0x15d   : > { %1458 = vmatprep.mubr.f32.mxu1 %v634_v53  ;;  %v2231_v53 = vld [vmem:[#allocation7 + $0x60] sm:$0xff] }
 0x15e   : > { %1710 = vmatmul.mubr.f32.gmra.mxu0 %v628_v55  ;;  %v464_v55 = vld [vmem:[%s4297_s29 + $0x358] sm:$0xff] }
 0x15f   : > { %1715 = vmatprep.mubr.f32.mxu0 %v636_v57  ;;  %2314 = vmatpush1.msra.mxu0 %v2231_v53  ;;  %v685_v62 = vunpack.c.h.bf16 %v464_v55  ;;  %v684_v6 = vunpack.c.l.bf16 %v464_v55  ;;  %v504_v55 = vunpack.c.l.bf16 %v361_v48 }
 0x160   : > { %1459 = vmatmul.mubr.f32.gmra.mxu1 %v633_v59  ;;  %v2230_v59 = vld [vmem:[#allocation7 + $0x58] sm:$0xff] }
 0x161   : > { %1464 = vmatprep.mubr.f32.mxu1 %v641_v61  ;;  %v467_v61 = vld [vmem:[%s4297_s29 + $0x36c] sm:$0xff]  ;;  %2315 = vmatprep.subr.mxu0 %v2230_v59 }
 0x162   : > { %1716 = vmatmul.mubr.f32.gmra.mxu0 %v635_v63  ;;  %v2280_v59 = vld [vmem:[#allocation7 + $0x1e8] sm:$0xff] }
 0x163   : > { %1721 = vmatprep.mubr.f32.mxu0 %v643_v1  ;;  %v682_v1 = vunpack.c.l.bf16 %v463_v50  ;;  %2316 = vmatpush1.msra.mxu0 %v2229_v0  ;;  %v511_v0 = vunpack.c.h.bf16 %v361_v48 }
 0x164   : > { %1465 = vmatmul.mubr.f32.gmra.mxu1 %v640_v3  ;;  %v4393_v13 = vpop.f32.mrf.mxu1  ;;  %v690_v3 = vunpack.c.h.bf16 %v467_v61 }
 0x165   : > { %1470 = vmatprep.mubr.f32.mxu1 %v648_v5  ;;  %v2228_v5 = vld [vmem:[#allocation7 + $0x48] sm:$0xff] }
 0x166   : > { %1722 = vmatmul.mubr.f32.gmra.mxu0 %v642_v7  ;;  %v4396_v18 = vpop.f32.mrf.mxu0  ;;  %v4398_v19 = vpop.f32.mrf.mxu1  ;;  %2317 = vmatprep.subr.mxu0 %v2228_v5  ;;  %v692_v7 = vunpack.c.h.bf16 %v468_v2 }
 0x167   : > { %1727 = vmatprep.mubr.f32.mxu0 %v650_v9  ;;  %2318 = vmatpush1.msra.mxu0 %v2227_v10 }
 0x168   : > { %1471 = vmatmul.mubr.f32.gmra.mxu1 %v647_v11  ;;  %v4401_v25 = vpop.f32.mrf.mxu0  ;;  %v689_v11 = vunpack.c.l.bf16 %v467_v61  ;;  %2319 = vmatprep.subr.mxu0 %v2226_v15 }
 0x169   : > { %1476 = vmatprep.mubr.f32.mxu1 %v655_v14  ;;  %v4403_v26 = vpop.f32.mrf.mxu1 }
 0x16a   : > { %1728 = vmatmul.mubr.f32.gmra.mxu0 %v649_v16  ;;  %v691_v16 = vunpack.c.l.bf16 %v468_v2 }
 0x16b   : > { %1733 = vmatprep.mubr.f32.mxu0 %v657_v20  ;;  %v4406_v31 = vpop.f32.mrf.mxu1  ;;  %v2225_v20 = vld [vmem:[#allocation7 + $0x30] sm:$0xff] }
 0x16c   : > { %1477 = vmatmul.mubr.f32.gmra.mxu1 %v654_v22  ;;  %2320 = vmatpush1.msra.mxu0 %v2225_v20  ;;  %v4120_v22 = vmov 0.0  }
 0x16d   : > { %1482 = vmatprep.mubr.f32.mxu1 %v662_v24  ;;  %v4409_v36 = vpop.f32.mrf.mxu0  ;;  %2321 = vmatprep.subr.mxu0 %v2224_v27 }
 0x16e   : > { %1734 = vmatmul.mubr.f32.gmra.mxu0 %v656_v28 }
 0x16f   : > { %1739 = vmatprep.mubr.f32.mxu0 %v664_v30  ;;  %v4412_v41 = vpop.f32.mrf.mxu0  ;;  %v4414_v42 = vpop.f32.mrf.mxu1  ;;  %v483_v30 = vunpack.c.h.bf16 %v345_v12  ;;  %2322 = vmatpush1.msra.mxu0 %v2223_v29  ;;  %v2276_v12 = vld [vmem:[#allocation7 + $0x1c8] sm:$0xff]  ;;  %v2274_v29 = vld [vmem:[#allocation7 + $0x1b8] sm:$0xff] }
 0x170   : > { %1483 = vmatmul.mubr.f32.gmra.mxu1 %v661_v33  ;;  %2323 = vmatprep.subr.mxu0 %v2222_v34  ;;  %v2273_v34 = vld [vmem:[#allocation7 + $0x1b0] sm:$0xff] }
 0x171   : > { %1488 = vmatprep.mubr.f32.mxu1 %v669_v35  ;;  %v4417_v47 = vpop.f32.mrf.mxu1 }
 0x172   : > { %1740 = vmatmul.mubr.f32.gmra.mxu0 %v663_v38  ;;  %v2221_v38 = vld [vmem:[#allocation7 + $0x10] sm:$0xff] }
 0x173   : > { %1745 = vmatprep.mubr.f32.mxu0 %v671_v40  ;;  %v4420_v52 = vpop.f32.mrf.mxu0  ;;  %2324 = vmatpush1.msra.mxu0 %v2221_v38 }
 0x174   : > { %1489 = vmatmul.mubr.f32.gmra.mxu1 %v668_v44  ;;  %2325 = vmatprep.subr.mxu0 %v2220_v43  ;;  %v2272_v43 = vld [vmem:[#allocation7 + $0x1a8] sm:$0xff] }
 0x175   : > { %1494 = vmatprep.mubr.f32.mxu1 %v676_v46  ;;  %v4423_v57 = vpop.f32.mrf.mxu0  ;;  %v4425_v58 = vpop.f32.mrf.mxu1  ;;  %v497_v46 = vunpack.c.h.bf16 %v353_v32  ;;  %2326 = vmatpush1.msra.mxu0 %v2219_v45 }
 0x176   : > { %1746 = vmatmul.mubr.f32.gmra.mxu0 %v670_v49 }
 0x177   : > { %1751 = vmatprep.mubr.f32.mxu0 %v678_v51  ;;  %v4428_v63 = vpop.f32.mrf.mxu1  ;;  %v2282_v51 = vld [vmem:[#allocation7 + $0x1f8] sm:$0xff] }
 0x178   : > { %1495 = vmatmul.mubr.f32.gmra.mxu1 %v675_v54  ;;  %2327 = vmatprep.subr.mxu0 %v2282_v51  ;;  %v2281_v54 = vld [vmem:[#allocation7 + $0x1f0] sm:$0xff] }
 0x179   : > { %1500 = vmatprep.mubr.f32.mxu1 %v683_v56  ;;  %v4431_v4 = vpop.f32.mrf.mxu0  ;;  %2328 = vmatpush2.msra.mxu0 %v2281_v54  ;;  %v385_v51 = vld [vmem:[%s4297_s29 + $0x130] ss:$28 sps:$4 sm:$0xff]  }
 0x17a   : > { %1752 = vmatmul.mubr.f32.gmra.mxu0 %v677_v60  ;;  %2329 = vmatprep.subr.mxu0 %v2280_v59  ;;  %v2270_v59 = vld [vmem:[#allocation7 + $0x198] sm:$0xff] }
 0x17b   : > { %1757 = vmatprep.mubr.f32.mxu0 %v685_v62  ;;  %v4433_v8 = vpop.f32.mrf.mxu0  ;;  %v4435_v9 = vpop.f32.mrf.mxu1  ;;  %v2279_v62 = vld [vmem:[#allocation7 + $0x1e0] sm:$0xff] }
 0x17c   : > { %1501 = vmatmul.mubr.f32.gmra.mxu1 %v682_v1  ;;  %2330 = vmatpush2.msra.mxu0 %v2279_v62  ;;  %v369_v1 = vld [vmem:[%s4297_s29 + $0xc0] ss:$28 sps:$4 sm:$0xff]  }
 0x17d   : > { %1506 = vmatprep.mubr.f32.mxu1 %v690_v3  ;;  %v4438_v14 = vpop.f32.mrf.mxu1  ;;  %v2278_v3 = vld [vmem:[#allocation7 + $0x1d8] sm:$0xff]  ;;  %v525_v20 = vunpack.c.h.bf16 %v369_v1 }
 0x17e   : > { %1758 = vmatmul.mubr.f32.gmra.mxu0 %v684_v6  ;;  %2331 = vmatprep.subr.mxu0 %v2278_v3  ;;  %v2277_v6 = vld [vmem:[#allocation7 + $0x1d0] sm:$0xff] }
 0x17f   : > { %1763 = vmatprep.mubr.f32.mxu0 %v692_v7  ;;  %v4440_v17 = vpop.f32.mrf.mxu0  ;;  %v518_v7 = vunpack.c.l.bf16 %v369_v1  ;;  %2332 = vmatpush2.msra.mxu0 %v2277_v6  ;;  %v546_v1 = vunpack.c.l.bf16 %v385_v51  ;;  %v2268_v6 = vld [vmem:[#allocation7 + $0x188] sm:$0xff] }
 0x180   : > { %5530 = vst [vmem:[#allocation11_spill] sm:$0xff] %v4440_v17  ;;  %1507 = vmatmul.mubr.f32.gmra.mxu1 %v689_v11  ;;  %2333 = vmatprep.subr.mxu0 %v2276_v12 }
 0x181   : > { %1834 = vmatprep.mubr.f32.mxu1 %v4120_v22  ;;  %v4443_v23 = vpop.f32.mrf.mxu0  ;;  %v4445_v24 = vpop.f32.mrf.mxu1 }
 0x182   : > { %5531 = vst [vmem:[#allocation12_spill] sm:$0xff] %v4443_v23  ;;  %1764 = vmatmul.mubr.f32.gmra.mxu0 %v691_v16  ;;  %v2275_v16 = vld [vmem:[#allocation7 + $0x1c0] sm:$0xff] }
 0x183   : > { %v4447_v28 = vpop.f32.mrf.mxu1  ;;  %2334 = vmatpush2.msra.mxu0 %v2275_v16  ;;  %v2267_v16 = vld [vmem:[#allocation7 + $0x180] sm:$0xff] }
 0x184   : > { %3561 = vmatmul.mubr.msk.f32.vlgmr.msra.gmra.mxu1 %vm902_vm0, %v476_v21  ;;  %v377_v21 = vld [vmem:[%s4297_s29 + $0xf8] ss:$28 sps:$4 sm:$0xff]   ;;  %2335 = vmatprep.subr.mxu0 %v2274_v29 }
 0x185   : > { %1840 = vmatprep.mubr.f32.mxu1 %v4120_v22  ;;  %v4452_v33 = vpop.f32.mrf.mxu0  ;;  %v532_v38 = vunpack.c.l.bf16 %v377_v21  ;;  %2336 = vmatpush2.msra.mxu0 %v2273_v34  ;;  %v539_v48 = vunpack.c.h.bf16 %v377_v21  ;;  %v393_v21 = vld [vmem:[%s4297_s29 + $0x168] ss:$28 sps:$4 sm:$0xff]   ;;  %v2266_v34 = vld [vmem:[#allocation7 + $0x178] sm:$0xff] }
 0x186   : > { %5532 = vst [vmem:[#allocation13_spill] sm:$0xff] %v4452_v33  ;;  %2337 = vmatprep.subr.mxu0 %v2272_v43  ;;  %v2265_v43 = vld [vmem:[#allocation7 + $0x170] sm:$0xff] }
 0x187   : > { %v4454_v35 = vpop.f32.mrf.mxu0  ;;  %v4456_v37 = vpop.f32.mrf.mxu1 }
 0x188   : > { %5533 = vst [vmem:[#allocation14_spill] sm:$0xff] %v4454_v35  ;;  %3562 = vmatmul.mubr.msk.f32.gmra.mxu1 %vm902_vm0, %v483_v30  ;;  %v433_v35 = vld [vmem:[%s4297_s29 + $0x280] ss:$28 sps:$4 sm:$0xff]  }
 0x189   : > { %1846 = vmatprep.mubr.f32.mxu1 %v4120_v22  ;;  %v4460_v40 = vpop.f32.mrf.mxu1 }
 0x18b   : > { %v4462_v44 = vpop.f32.mrf.mxu0 }
 0x18c   : > { %5534 = vst [vmem:[#allocation15_spill] sm:$0xff] %v4462_v44  ;;  %3563 = vmatmul.mubr.msk.f32.gmra.mxu1 %vm902_vm0, %v490_v39 }
 0x18d   : > { %1852 = vmatprep.mubr.f32.mxu1 %v4120_v22  ;;  %v4467_v49 = vpop.f32.mrf.mxu0  ;;  %v4469_v50 = vpop.f32.mrf.mxu1 }
 0x18e   : > { %5535 = vst [vmem:[#allocation16_spill] sm:$0xff] %v4467_v49 }
 0x18f   : > { %v4471_v53 = vpop.f32.mrf.mxu1 }
 0x190   : > { %3564 = vmatmul.mubr.msk.f32.gmra.mxu1 %vm902_vm0, %v497_v46  ;;  %v2271_v46 = vld [vmem:[#allocation7 + $0x1a0] sm:$0xff] }
 0x191   : > { %1858 = vmatprep.mubr.f32.mxu1 %v4120_v22  ;;  %v4475_v56 = vpop.f32.mrf.mxu0  ;;  %2338 = vmatpush2.msra.mxu0 %v2271_v46  ;;  %v560_v46 = vunpack.c.l.bf16 %v393_v21 }
 0x192   : > { %5536 = vst [vmem:[#allocation17_spill] sm:$0xff] %v4475_v56  ;;  %2339 = vmatprep.subr.mxu0 %v2270_v59  ;;  %v2264_v59 = vld [vmem:[#allocation7 + $0x168] sm:$0xff] }
 0x193   : > { %v4477_v60 = vpop.f32.mrf.mxu0  ;;  %v4479_v61 = vpop.f32.mrf.mxu1 }
 0x194   : > { %5537 = vst [vmem:[#allocation18_spill] sm:$0xff] %v4477_v60  ;;  %3565 = vmatmul.mubr.msk.f32.gmra.mxu1 %vm902_vm0, %v504_v55 }
 0x195   : > { %1864 = vmatprep.mubr.f32.mxu1 %v4120_v22  ;;  %v4484_v2 = vpop.f32.mrf.mxu1 }
 0x197   : > { %v4486_v5 = vpop.f32.mrf.mxu0 }
 0x198   : > { %5538 = vst [vmem:[#allocation19_spill] sm:$0xff] %v4486_v5  ;;  %3566 = vmatmul.mubr.msk.f32.gmra.mxu1 %vm902_vm0, %v511_v0  ;;  %v2269_v0 = vld [vmem:[#allocation7 + $0x190] sm:$0xff] }
 0x199   : > { %1870 = vmatprep.mubr.f32.mxu1 %v4120_v22  ;;  %v4490_v10 = vpop.f32.mrf.mxu0  ;;  %v4492_v11 = vpop.f32.mrf.mxu1  ;;  %2340 = vmatpush2.msra.mxu0 %v2269_v0 }
 0x19a   : > { %5539 = vst [vmem:[#allocation20_spill] sm:$0xff] %v4490_v10  ;;  %2341 = vmatprep.subr.mxu0 %v2268_v6  ;;  %v567_v6 = vunpack.c.h.bf16 %v393_v21  ;;  %v2251_v10 = vld [vmem:[#allocation7 + $0x100] sm:$0xff] }
 0x19b   : > { %v4494_v15 = vpop.f32.mrf.mxu1  ;;  %2342 = vmatpush2.msra.mxu0 %v2267_v16 }
 0x19c   : > { %3567 = vmatmul.mubr.msk.f32.gmra.mxu1 %vm902_vm0, %v518_v7  ;;  %2343 = vmatprep.subr.mxu0 %v2266_v34  ;;  %v2262_v34 = vld [vmem:[#allocation7 + $0x158] sm:$0xff] }
 0x19d   : > { %1876 = vmatprep.mubr.f32.mxu1 %v4120_v22  ;;  %v4499_v27 = vpop.f32.mrf.mxu0  ;;  %2344 = vmatpush2.msra.mxu0 %v2265_v43 }
 0x19e   : > { %5540 = vst [vmem:[#allocation21_spill] sm:$0xff] %v4499_v27  ;;  %2345 = vmatprep.subr.mxu0 %v2264_v59  ;;  %v2252_v27 = vld [vmem:[#allocation7 + $0x108] sm:$0xff] }
 0x19f   : > { %v4501_v30 = vpop.f32.mrf.mxu0  ;;  %v4503_v32 = vpop.f32.mrf.mxu1 }
 0x1a0   : > { %5541 = vst [vmem:[#allocation22_spill] sm:$0xff] %v4501_v30  ;;  %3568 = vmatmul.mubr.msk.f32.gmra.mxu1 %vm902_vm0, %v525_v20  ;;  %v553_v20 = vunpack.c.h.bf16 %v385_v51 }
 0x1a1   : > { %1882 = vmatprep.mubr.f32.mxu1 %v4120_v22  ;;  %v4507_v39 = vpop.f32.mrf.mxu1 }
 0x1a3   : > { %v4509_v45 = vpop.f32.mrf.mxu0 }
 0x1a4   : > { %5542 = vst [vmem:[#allocation23_spill] sm:$0xff] %v4509_v45  ;;  %3569 = vmatmul.mubr.msk.f32.gmra.mxu1 %vm902_vm0, %v532_v38 }
 0x1a5   : > { %1888 = vmatprep.mubr.f32.mxu1 %v4120_v22  ;;  %v4514_v54 = vpop.f32.mrf.mxu0  ;;  %v4516_v55 = vpop.f32.mrf.mxu1 }
 0x1a6   : > { %5543 = vst [vmem:[#allocation24_spill] sm:$0xff] %v4514_v54  ;;  %v2257_v54 = vld [vmem:[#allocation7 + $0x130] sm:$0xff] }
 0x1a7   : > { %v4518_v62 = vpop.f32.mrf.mxu1 }
 0x1a8   : > { %3570 = vmatmul.mubr.msk.f32.gmra.mxu1 %vm902_vm0, %v539_v48 }
 0x1a9   : > { %1894 = vmatprep.mubr.f32.mxu1 %v4120_v22  ;;  %v4522_v3 = vpop.f32.mrf.mxu0 }
 0x1aa   : > { %5544 = vst [vmem:[#allocation25_spill] sm:$0xff] %v4522_v3 }
 0x1ab   : > { %v4524_v7 = vpop.f32.mrf.mxu0  ;;  %v4526_v12 = vpop.f32.mrf.mxu1 }
 0x1ac   : > { %5545 = vst [vmem:[#allocation26_spill] sm:$0xff] %v4524_v7  ;;  %3571 = vmatmul.mubr.msk.f32.gmra.mxu1 %vm902_vm0, %v546_v1  ;;  %v2263_v1 = vld [vmem:[#allocation7 + $0x160] sm:$0xff]  ;;  %v2258_v7 = vld [vmem:[#allocation7 + $0x138] sm:$0xff] }
 0x1ad   : > { %1900 = vmatprep.mubr.f32.mxu1 %v4120_v22  ;;  %v4531_v29 = vpop.f32.mrf.mxu1  ;;  %2346 = vmatpush2.msra.mxu0 %v2263_v1 }
 0x1ae   : > { %2347 = vmatprep.subr.mxu0 %v2262_v34 }
 0x1af   : > { %v4533_v38 = vpop.f32.mrf.mxu0 }
 0x1b0   : > { %5546 = vst [vmem:[#allocation27_spill] sm:$0xff] %v4533_v38  ;;  %3572 = vmatmul.mubr.msk.f32.gmra.mxu1 %vm902_vm0, %v553_v20  ;;  %v401_v20 = vld [vmem:[%s4297_s29 + $0x1a0] ss:$28 sps:$4 sm:$0xff]   ;;  %v2261_v38 = vld [vmem:[#allocation7 + $0x150] sm:$0xff] }
 0x1b1   : > { %1906 = vmatprep.mubr.f32.mxu1 %v4120_v22  ;;  %v4537_v48 = vpop.f32.mrf.mxu0  ;;  %v4539_v51 = vpop.f32.mrf.mxu1  ;;  %v574_v59 = vunpack.c.l.bf16 %v401_v20  ;;  %2348 = vmatpush2.msra.mxu0 %v2261_v38  ;;  %v581_v34 = vunpack.c.h.bf16 %v401_v20  ;;  %v409_v38 = vld [vmem:[%s4297_s29 + $0x1d8] ss:$28 sps:$4 sm:$0xff]  }
 0x1b2   : > { %5547 = vst [vmem:[#allocation28_spill] sm:$0xff] %v4537_v48 }
 0x1b3   : > { %v4541_v0 = vpop.f32.mrf.mxu1 }
 0x1b4   : > { %3573 = vmatmul.mubr.msk.f32.gmra.mxu1 %vm902_vm0, %v560_v46  ;;  %v2260_v46 = vld [vmem:[#allocation7 + $0x148] sm:$0xff] }
 0x1b5   : > { %1912 = vmatprep.mubr.f32.mxu1 %v4120_v22  ;;  %v4545_v16 = vpop.f32.mrf.mxu0  ;;  %2349 = vmatprep.subr.mxu0 %v2260_v46  ;;  %v588_v46 = vunpack.c.l.bf16 %v409_v38 }
 0x1b6   : > { %5548 = vst [vmem:[#allocation29_spill] sm:$0xff] %v4545_v16  ;;  %v2259_v16 = vld [vmem:[#allocation7 + $0x140] sm:$0xff] }
 0x1b7   : > { %v4548_v43 = vpop.f32.mrf.mxu0  ;;  %v4550_v48 = vpop.f32.mrf.mxu1  ;;  %2350 = vmatpush2.msra.mxu0 %v2259_v16  ;;  %v2256_v16 = vld [vmem:[#allocation7 + $0x128] sm:$0xff] }
 0x1b8   : > { %5549 = vst [vmem:[#allocation30_spill] sm:$0xff] %v4548_v43  ;;  %3574 = vmatmul.mubr.msk.f32.gmra.mxu1 %vm902_vm0, %v567_v6  ;;  %2351 = vmatprep.subr.mxu0 %v2258_v7  ;;  %v595_v7 = vunpack.c.h.bf16 %v409_v38 }
 0x1b9   : > { %1918 = vmatprep.mubr.f32.mxu1 %v4120_v22  ;;  %v4554_v21 = vpop.f32.mrf.mxu1  ;;  %2352 = vmatpush2.msra.mxu0 %v2257_v54  ;;  %v417_v54 = vld [vmem:[%s4297_s29 + $0x210] ss:$28 sps:$4 sm:$0xff]  }
 0x1ba   : > { %2353 = vmatprep.subr.mxu0 %v2256_v16  ;;  %v602_v16 = vunpack.c.l.bf16 %v417_v54 }
 0x1bb   : > { %v4556_v1 = vpop.f32.mrf.mxu0 }
 0x1bc   : > { %5550 = vst [vmem:[#allocation31_spill] sm:$0xff] %v4556_v1  ;;  %3575 = vmatmul.mubr.msk.f32.gmra.mxu1 %vm902_vm0, %v574_v59  ;;  %v2255_v1 = vld [vmem:[#allocation7 + $0x120] sm:$0xff] }
 0x1bd   : > { %1924 = vmatprep.mubr.f32.mxu1 %v4120_v22  ;;  %v4560_v43 = vpop.f32.mrf.mxu0  ;;  %v4562_v6 = vpop.f32.mrf.mxu1  ;;  %2354 = vmatpush2.msra.mxu0 %v2255_v1  ;;  %v2253_v1 = vld [vmem:[#allocation7 + $0x110] sm:$0xff] }
 0x1be   : > { %5551 = vst [vmem:[#allocation32_spill] sm:$0xff] %v4560_v43 }
 0x1bf   : > { %v4565_v3 = vpop.f32.mrf.mxu1 }
 0x1c0   : > { %3576 = vmatmul.mubr.msk.f32.gmra.mxu1 %vm902_vm0, %v581_v34 }
 0x1c1   : > { %v4568_v59 = vpop.f32.mrf.mxu0  ;;  %1930 = vmatprep.mubr.f32.mxu1 %v4120_v22 }
 0x1c2   : > { %5552 = vst [vmem:[#allocation33_spill] sm:$0xff] %v4568_v59 }
 0x1c3   : > { %v4571_v20 = vpop.f32.mrf.mxu0  ;;  %v4573_v43 = vpop.f32.mrf.mxu1 }
 0x1c4   : > { %5553 = vst [vmem:[#allocation34_spill] sm:$0xff] %v4571_v20  ;;  %3577 = vmatmul.mubr.msk.f32.gmra.mxu1 %vm902_vm0, %v588_v46  ;;  %v2254_v20 = vld [vmem:[#allocation7 + $0x118] sm:$0xff] }
 0x1c5   : > { %v4576_v45 = vpop.f32.mrf.mxu1  ;;  %1936 = vmatprep.mubr.f32.mxu1 %v4120_v22  ;;  %2355 = vmatprep.subr.mxu0 %v2254_v20  ;;  %v425_v20 = vld [vmem:[%s4297_s29 + $0x248] ss:$28 sps:$4 sm:$0xff]  }
 0x1c6   : > { %v4580_v34 = vpop.f32.mrf.mxu0  ;;  %2356 = vmatpush2.msra.mxu0 %v2253_v1 }
 0x1c7   : > { %2357 = vmatprep.subr.mxu0 %v2252_v27  ;;  %v616_v27 = vunpack.c.l.bf16 %v425_v20 }
 0x1c8   : > { %v4582_v59 = vpop.f32.mrf.mxu1  ;;  %v4584_v30 = vpop.f32.mrf.mxu0  ;;  %3578 = vmatmul.mubr.msk.f32.gmra.mxu1 %vm902_vm0, %v595_v7  ;;  %v609_v7 = vunpack.c.h.bf16 %v417_v54  ;;  %2358 = vmatpush2.msra.mxu0 %v2251_v10  ;;  %v623_v54 = vunpack.c.h.bf16 %v425_v20 }
 0x1c9   : > { %1942 = vmatprep.mubr.f32.mxu1 %v4120_v22 }
 0x1ca   : > { %v4588_v38 = vpop.f32.mrf.mxu1  ;;  %v4590_v46 = vpop.f32.mrf.mxu0 }
 0x1cc   : > { %v4592_v5 = vpop.f32.mrf.mxu1  ;;  %3579 = vmatmul.mubr.msk.f32.gmra.mxu1 %vm902_vm0, %v602_v16  ;;  %v4595_v60 = vpop.f32.mrf.mxu0 }
 0x1cd   : > { %1948 = vmatprep.mubr.f32.mxu1 %v4120_v22 }
 0x1ce   : > { %v4599_v56 = vpop.f32.mrf.mxu1  ;;  %v4604_v1 = vpop.f32.mrf.mxu0 }
 0x1cf   : > { %5555 = vst [vmem:[#allocation36_spill] sm:$0xff] %v4604_v1 }
 0x1d0   : > { %v4601_v49 = vpop.f32.mrf.mxu1  ;;  %3580 = vmatmul.mubr.msk.f32.gmra.mxu1 %vm902_vm0, %v609_v7  ;;  %v4612_v44 = vpop.f32.mrf.mxu0 }
 0x1d1   : > { %5554 = vst [vmem:[#allocation35_spill] sm:$0xff] %v4601_v49  ;;  %1954 = vmatprep.mubr.f32.mxu1 %v4120_v22  ;;  %5558 = vst [vmem:[#allocation39_spill] sm:$0xff] %v4612_v44  ;;  %v630_v49 = vunpack.c.l.bf16 %v433_v35 }
 0x1d2   : > { %v4607_v16 = vpop.f32.mrf.mxu1  ;;  %v4621_v1 = vpop.f32.mrf.mxu0 }
 0x1d3   : > { %5556 = vst [vmem:[#allocation37_spill] sm:$0xff] %v4607_v16  ;;  %5561 = vst [vmem:[#allocation42_spill] sm:$0xff] %v4621_v1 }
 0x1d4   : > { %v4609_v10 = vpop.f32.mrf.mxu1  ;;  %3581 = vmatmul.mubr.msk.f32.gmra.mxu1 %vm902_vm0, %v616_v27  ;;  %v637_v27 = vunpack.c.h.bf16 %v433_v35  ;;  %v4629_v16 = vpop.f32.mrf.mxu0 }
 0x1d5   : > { %5557 = vst [vmem:[#allocation38_spill] sm:$0xff] %v4609_v10  ;;  %1960 = vmatprep.mubr.f32.mxu1 %v4120_v22  ;;  %5564 = vst [vmem:[#allocation45_spill] sm:$0xff] %v4629_v16 }
 0x1d6   : > { %v4616_v33 = vpop.f32.mrf.mxu1  ;;  %v4638_v44 = vpop.f32.mrf.mxu0 }
 0x1d7   : > { %5559 = vst [vmem:[#allocation40_spill] sm:$0xff] %v4616_v33  ;;  %5567 = vst [vmem:[#allocation48_spill] sm:$0xff] %v4638_v44 }
 0x1d8   : > { %v4618_v7 = vpop.f32.mrf.mxu1  ;;  %3582 = vmatmul.mubr.msk.f32.gmra.mxu1 %vm902_vm0, %v623_v54 }
 0x1d9   : > { %5560 = vst [vmem:[#allocation41_spill] sm:$0xff] %v4618_v7  ;;  %1966 = vmatprep.mubr.f32.mxu1 %v4120_v22  ;;  %v441_v7 = vld [vmem:[%s4297_s29 + $0x2b8] ss:$28 sps:$4 sm:$0xff]  }
 0x1da   : > { %v4624_v10 = vpop.f32.mrf.mxu1  ;;  %v644_v1 = vunpack.c.l.bf16 %v441_v7 }
 0x1db   : > { %5562 = vst [vmem:[#allocation43_spill] sm:$0xff] %v4624_v10  ;;  %v4646_v10 = vpop.f32.mrf.mxu0 }
 0x1dc   : > { %v4626_v20 = vpop.f32.mrf.mxu1  ;;  %3583 = vmatmul.mubr.msk.f32.gmra.mxu1 %vm902_vm0, %v630_v49  ;;  %v651_v49 = vunpack.c.h.bf16 %v441_v7  ;;  %5570 = vst [vmem:[#allocation51_spill] sm:$0xff] %v4646_v10 }
 0x1dd   : > { %5563 = vst [vmem:[#allocation44_spill] sm:$0xff] %v4626_v20  ;;  %1972 = vmatprep.mubr.f32.mxu1 %v4120_v22  ;;  %v4655_v16 = vpop.f32.mrf.mxu0 }
 0x1de   : > { %v4633_v33 = vpop.f32.mrf.mxu1  ;;  %5573 = vst [vmem:[#allocation54_spill] sm:$0xff] %v4655_v16 }
 0x1df   : > { %5565 = vst [vmem:[#allocation46_spill] sm:$0xff] %v4633_v33 }
 0x1e0   : > { %v4635_v54 = vpop.f32.mrf.mxu1  ;;  %3584 = vmatmul.mubr.msk.f32.gmra.mxu1 %vm902_vm0, %v637_v27 }
 0x1e1   : > { %5566 = vst [vmem:[#allocation47_spill] sm:$0xff] %v4635_v54  ;;  %1978 = vmatprep.mubr.f32.mxu1 %v4120_v22  ;;  %v449_v54 = vld [vmem:[%s4297_s29 + $0x2f0] ss:$28 sps:$4 sm:$0xff]  }
 0x1e2   : > { %v4641_v20 = vpop.f32.mrf.mxu1  ;;  %v658_v44 = vunpack.c.l.bf16 %v449_v54  ;;  %v665_v7 = vunpack.c.h.bf16 %v449_v54 }
 0x1e3   : > { %5568 = vst [vmem:[#allocation49_spill] sm:$0xff] %v4641_v20  ;;  %v4663_v20 = vpop.f32.mrf.mxu0 }
 0x1e4   : > { %v4643_v35 = vpop.f32.mrf.mxu1  ;;  %3585 = vmatmul.mubr.msk.f32.gmra.mxu1 %vm902_vm0, %v644_v1  ;;  %5576 = vst [vmem:[#allocation57_spill] sm:$0xff] %v4663_v20 }
 0x1e5   : > { %5569 = vst [vmem:[#allocation50_spill] sm:$0xff] %v4643_v35  ;;  %1984 = vmatprep.mubr.f32.mxu1 %v4120_v22  ;;  %v4672_v10 = vpop.f32.mrf.mxu0 }
 0x1e6   : > { %v4650_v33 = vpop.f32.mrf.mxu1  ;;  %5579 = vst [vmem:[#allocation60_spill] sm:$0xff] %v4672_v10 }
 0x1e7   : > { %5571 = vst [vmem:[#allocation52_spill] sm:$0xff] %v4650_v33  ;;  %v4680_v20 = vpop.f32.mrf.mxu0 }
 0x1e8   : > { %v4652_v27 = vpop.f32.mrf.mxu1  ;;  %3586 = vmatmul.mubr.msk.f32.gmra.mxu1 %vm902_vm0, %v651_v49  ;;  %5582 = vst [vmem:[#allocation63_spill] sm:$0xff] %v4680_v20 }
 0x1e9   : > { %5572 = vst [vmem:[#allocation53_spill] sm:$0xff] %v4652_v27  ;;  %1990 = vmatprep.mubr.f32.mxu1 %v4120_v22  ;;  %v457_v27 = vld [vmem:[%s4297_s29 + $0x328] ss:$28 sps:$4 sm:$0xff]  }
 0x1ea   : > { %v4658_v35 = vpop.f32.mrf.mxu1  ;;  %v672_v16 = vunpack.c.l.bf16 %v457_v27 }
 0x1eb   : > { %5574 = vst [vmem:[#allocation55_spill] sm:$0xff] %v4658_v35  ;;  %v679_v35 = vunpack.c.h.bf16 %v457_v27  ;;  %v890_v27 = vld [vmem:[%s5510_s2] sm:$0x3] }
 0x1ec   : > { %v4660_v1 = vpop.f32.mrf.mxu1  ;;  %3587 = vmatmul.mubr.msk.f32.gmra.mxu1 %vm902_vm0, %v658_v44  ;;  %v892_v44 = vlaneseq }
 0x1ed   : > { %5575 = vst [vmem:[#allocation56_spill] sm:$0xff] %v4660_v1  ;;  %1996 = vmatprep.mubr.f32.mxu1 %v4120_v22 }
 0x1ee   : > { %v4667_v33 = vpop.f32.mrf.mxu1 }
 0x1ef   : > { %5577 = vst [vmem:[#allocation58_spill] sm:$0xff] %v4667_v33 }
 0x1f0   : > { %v4669_v49 = vpop.f32.mrf.mxu1  ;;  %3588 = vmatmul.mubr.msk.f32.gmra.mxu1 %vm902_vm0, %v665_v7  ;;  %v893_v7 = vshrl.u32 %v892_v44, 7 }
 0x1f1   : > { %5578 = vst [vmem:[#allocation59_spill] sm:$0xff] %v4669_v49  ;;  %2002 = vmatprep.mubr.f32.mxu1 %v4120_v22  ;;  %v465_v49 = vld [vmem:[%s4297_s29 + $0x360] ss:$28 sps:$4 sm:$0xff]  }
 0x1f2   : > { %v4675_v1 = vpop.f32.mrf.mxu1  ;;  %v686_v10 = vunpack.c.l.bf16 %v465_v49  ;;  %v693_v44 = vunpack.c.h.bf16 %v465_v49 }
 0x1f3   : > { %5580 = vst [vmem:[#allocation61_spill] sm:$0xff] %v4675_v1  ;;  %v4689_v1 = vpop.f32.mrf.mxu0 }
 0x1f4   : > { %v4677_v54 = vpop.f32.mrf.mxu1  ;;  %3589 = vmatmul.mubr.msk.f32.gmra.mxu1 %vm902_vm0, %v672_v16  ;;  %5585 = vst [vmem:[#allocation66_spill] sm:$0xff] %v4689_v1  ;;  %v4694_v16 = vsub.s32 0, %v893_v7 }
 0x1f5   : > { %5581 = vst [vmem:[#allocation62_spill] sm:$0xff] %v4677_v54  ;;  %2008 = vmatprep.mubr.f32.mxu1 %v4120_v22 }
 0x1f6   : > { %v4684_v33 = vpop.f32.mrf.mxu1  ;;  %5587 = vst [vmem:[#allocation68_spill] sm:$0xff] %v4694_v16 }
 0x1f7   : > { %5583 = vst [vmem:[#allocation64_spill] sm:$0xff] %v4684_v33 }
 0x1f8   : > { %v4686_v23 = vpop.f32.mrf.mxu1  ;;  %3590 = vmatmul.mubr.msk.f32.gmra.mxu1 %vm902_vm0, %v679_v35  ;;  %v4704_v35 = vpop.f32.mrf.mxu0 }
 0x1f9   : > { %5584 = vst [vmem:[#allocation65_spill] sm:$0xff] %v4686_v23  ;;  %2014 = vmatprep.mubr.f32.mxu1 %v4120_v22  ;;  %v4702_v23 = vsub.s32 1, %v893_v7  ;;  %5590 = vst [vmem:[#allocation71_spill] sm:$0xff] %v4704_v35 }
 0x1fa   : > { %v4692_v54 = vpop.f32.mrf.mxu1 }
 0x1fb   : > { %5586 = vst [vmem:[#allocation67_spill] sm:$0xff] %v4692_v54  ;;  %5589 = vst [vmem:[#allocation70_spill] sm:$0xff] %v4702_v23  ;;  %v4710_v54 = vrot.slane %v890_v27, %v4694_v16 }
 0x1fc   : > { %v4699_v20 = vpop.f32.mrf.mxu1  ;;  %3591 = vmatmul.mubr.msk.f32.gmra.mxu1 %vm902_vm0, %v686_v10  ;;  %v4718_v10 = vpop.f32.mrf.mxu0 }
 0x1fd   : > { %5588 = vst [vmem:[#allocation69_spill] sm:$0xff] %v4699_v20  ;;  %2020 = vmatprep.mubr.f32.mxu1 %v4120_v22  ;;  %v4716_v20 = vrot.slane %v890_v27, %v4702_v23  ;;  %5593 = vst [vmem:[#allocation74_spill] sm:$0xff] %v4718_v10  ;;  %v1162_v7 = vadd.f32 %v4393_v13, %v4710_v54  ;;  %v1168_v27 = vadd.f32 %v4403_v26, %v4710_v54 }
 0x1fe   : > { %v4707_v33 = vpop.f32.mrf.mxu1  ;;  %v4726_v16 = vpop.f32.mrf.mxu0 }
 0x1ff   : > { %5591 = vst [vmem:[#allocation72_spill] sm:$0xff] %v4707_v33  ;;  %v1164_v33 = vadd.f32 %v4398_v19, %v4716_v20  ;;  %v1174_v19 = vadd.f32 %v4414_v42, %v4710_v54  ;;  %v1176_v26 = vadd.f32 %v4417_v47, %v4716_v20  ;;  %v1182_v42 = vadd.f32 %v4428_v63, %v4716_v20 }
 0x200   : > { %v4712_v1 = vpop.f32.mrf.mxu1  ;;  %3592 = vmatmul.mubr.msk.f32.gmra.mxu1 %vm902_vm0, %v693_v44  ;;  %v4736_v10 = vpop.f32.mrf.mxu0  ;;  %v1186_v47 = vadd.f32 %v4435_v9, %v4710_v54  ;;  %v1192_v63 = vadd.f32 %v4445_v24, %v4710_v54  ;;  %v1194_v9 = vadd.f32 %v4447_v28, %v4716_v20  ;;  %v1200_v24 = vadd.f32 %v4460_v40, %v4716_v20 }
 0x201   : > { %5592 = vst [vmem:[#allocation73_spill] sm:$0xff] %v4712_v1  ;;  %v1204_v28 = vadd.f32 %v4469_v50, %v4710_v54  ;;  %v1210_v40 = vadd.f32 %v4479_v61, %v4710_v54  ;;  %v1212_v50 = vadd.f32 %v4484_v2, %v4716_v20  ;;  %v1218_v61 = vadd.f32 %v4494_v15, %v4716_v20 }
 0x202   : > { %v4720_v49 = vpop.f32.mrf.mxu1  ;;  %v1222_v2 = vadd.f32 %v4503_v32, %v4710_v54  ;;  %v1228_v15 = vadd.f32 %v4516_v55, %v4710_v54  ;;  %v1230_v32 = vadd.f32 %v4518_v62, %v4716_v20  ;;  %v1236_v55 = vadd.f32 %v4531_v29, %v4716_v20 }
 0x203   : > { %5594 = vst [vmem:[#allocation75_spill] sm:$0xff] %v4720_v49  ;;  %v1170_v49 = vadd.f32 %v4406_v31, %v4716_v20  ;;  %v1180_v31 = vadd.f32 %v4425_v58, %v4710_v54  ;;  %v1188_v58 = vadd.f32 %v4438_v14, %v4716_v20  ;;  %v1198_v14 = vadd.f32 %v4456_v37, %v4710_v54 }
 0x204   : > { %v1418_v22 = vpop.f32.mrf.mxu1  ;;  %v1206_v37 = vadd.f32 %v4471_v53, %v4716_v20  ;;  %v1216_v53 = vadd.f32 %v4492_v11, %v4710_v54  ;;  %v1224_v11 = vadd.f32 %v4507_v39, %v4716_v20  ;;  %v1234_v39 = vadd.f32 %v4526_v12, %v4710_v54 }
 0x205   : > { %v4728_v35 = vadd.f32 %v1418_v22, %v1162_v7  ;;  %v1240_v62 = vadd.f32 %v4539_v51, %v4710_v54  ;;  %v1242_v12 = vadd.f32 %v4541_v0, %v4716_v20  ;;  %v1066_v29 = vadd.f32 %v4396_v18, %v4710_v54 }
 0x206   : > { %v1420_v1 = vpop.f32.mrf.mxu1  ;;  %v1248_v0 = vadd.f32 %v4554_v21, %v4716_v20  ;;  %v1072_v18 = vadd.f32 %v4409_v36, %v4710_v54  ;;  %v1254_v21 = vadd.f32 %v4565_v3, %v4716_v20 }
 0x207   : > { %v4732_v44 = vadd.f32 %v1420_v1, %v1164_v33  ;;  %v4746_v33 = vpop.f32.mrf.mxu0 }
 0x208   : > { %v1424_v23 = vpop.f32.mrf.mxu1 }
 0x209   : > { %5595 = vst [vmem:[#allocation76_spill] sm:$0xff] %v4732_v44  ;;  %v4738_v13 = vadd.f32 %v1424_v23, %v1168_v27 }
 0x20a   : > { %v1426_v17 = vpop.f32.mrf.mxu1 }
 0x20b   : > { %v4742_v7 = vadd.f32 %v1426_v17, %v1170_v49  ;;  %v4756_v17 = vpop.f32.mrf.mxu0 }
 0x20c   : > { %v1430_v22 = vpop.f32.mrf.mxu1 }
 0x20d   : > { %5596 = vst [vmem:[#allocation77_spill] sm:$0xff] %v4742_v7  ;;  %v4748_v1 = vadd.f32 %v1430_v22, %v1174_v19 }
 0x20e   : > { %v1432_v44 = vpop.f32.mrf.mxu1 }
 0x20f   : > { %v4752_v23 = vadd.f32 %v1432_v44, %v1176_v26  ;;  %v4766_v44 = vpop.f32.mrf.mxu0 }
 0x210   : > { %v1436_v27 = vpop.f32.mrf.mxu1 }
 0x211   : > { %5597 = vst [vmem:[#allocation78_spill] sm:$0xff] %v4752_v23  ;;  %v4758_v49 = vadd.f32 %v1436_v27, %v1180_v31 }
 0x212   : > { %v1438_v7 = vpop.f32.mrf.mxu1 }
 0x213   : > { %v4762_v19 = vadd.f32 %v1438_v7, %v1182_v42  ;;  %v4776_v7 = vpop.f32.mrf.mxu0 }
 0x214   : > { %v1442_v22 = vpop.f32.mrf.mxu1 }
 0x215   : > { %5598 = vst [vmem:[#allocation79_spill] sm:$0xff] %v4762_v19  ;;  %v4768_v26 = vadd.f32 %v1442_v22, %v1186_v47 }
 0x216   : > { %v1444_v23 = vpop.f32.mrf.mxu1 }
 0x217   : > { %v4772_v31 = vadd.f32 %v1444_v23, %v1188_v58  ;;  %v4786_v23 = vpop.f32.mrf.mxu0 }
 0x218   : > { %v1448_v27 = vpop.f32.mrf.mxu1 }
 0x219   : > { %5599 = vst [vmem:[#allocation80_spill] sm:$0xff] %v4772_v31  ;;  %v4778_v42 = vadd.f32 %v1448_v27, %v1192_v63 }
 0x21a   : > { %v1450_v19 = vpop.f32.mrf.mxu1 }
 0x21b   : > { %v4782_v47 = vadd.f32 %v1450_v19, %v1194_v9  ;;  %v4796_v19 = vpop.f32.mrf.mxu0 }
 0x21c   : > { %v1454_v22 = vpop.f32.mrf.mxu1 }
 0x21d   : > { %5600 = vst [vmem:[#allocation81_spill] sm:$0xff] %v4782_v47  ;;  %v4788_v58 = vadd.f32 %v1454_v22, %v1198_v14 }
 0x21e   : > { %v1456_v31 = vpop.f32.mrf.mxu1 }
 0x21f   : > { %v4792_v63 = vadd.f32 %v1456_v31, %v1200_v24  ;;  %v4806_v31 = vpop.f32.mrf.mxu0 }
 0x220   : > { %v1460_v27 = vpop.f32.mrf.mxu1 }
 0x221   : > { %5601 = vst [vmem:[#allocation82_spill] sm:$0xff] %v4792_v63  ;;  %v4798_v9 = vadd.f32 %v1460_v27, %v1204_v28 }
 0x222   : > { %v1462_v47 = vpop.f32.mrf.mxu1 }
 0x223   : > { %v4802_v14 = vadd.f32 %v1462_v47, %v1206_v37  ;;  %v4816_v47 = vpop.f32.mrf.mxu0 }
 0x224   : > { %v1466_v22 = vpop.f32.mrf.mxu1 }
 0x225   : > { %5602 = vst [vmem:[#allocation83_spill] sm:$0xff] %v4802_v14  ;;  %v4808_v24 = vadd.f32 %v1466_v22, %v1210_v40 }
 0x226   : > { %v1468_v63 = vpop.f32.mrf.mxu1 }
 0x227   : > { %v4812_v28 = vadd.f32 %v1468_v63, %v1212_v50  ;;  %v4826_v63 = vpop.f32.mrf.mxu0 }
 0x228   : > { %v1472_v27 = vpop.f32.mrf.mxu1 }
 0x229   : > { %5603 = vst [vmem:[#allocation84_spill] sm:$0xff] %v4812_v28  ;;  %v4818_v37 = vadd.f32 %v1472_v27, %v1216_v53 }
 0x22a   : > { %v1474_v14 = vpop.f32.mrf.mxu1 }
 0x22b   : > { %5604 = vst [vmem:[#allocation85_spill] sm:$0xff] %v4818_v37  ;;  %v4822_v40 = vadd.f32 %v1474_v14, %v1218_v61  ;;  %v4836_v14 = vpop.f32.mrf.mxu0 }
 0x22c   : > { %v1478_v22 = vpop.f32.mrf.mxu1 }
 0x22d   : > { %5605 = vst [vmem:[#allocation86_spill] sm:$0xff] %v4822_v40  ;;  %v4828_v50 = vadd.f32 %v1478_v22, %v1222_v2 }
 0x22e   : > { %v1480_v28 = vpop.f32.mrf.mxu1 }
 0x22f   : > { %5606 = vst [vmem:[#allocation87_spill] sm:$0xff] %v4828_v50  ;;  %v4832_v53 = vadd.f32 %v1480_v28, %v1224_v11  ;;  %v4846_v28 = vpop.f32.mrf.mxu0 }
 0x230   : > { %v1484_v27 = vpop.f32.mrf.mxu1 }
 0x231   : > { %5607 = vst [vmem:[#allocation88_spill] sm:$0xff] %v4832_v53  ;;  %v4838_v61 = vadd.f32 %v1484_v27, %v1228_v15 }
 0x232   : > { %v1486_v40 = vpop.f32.mrf.mxu1 }
 0x233   : > { %5608 = vst [vmem:[#allocation89_spill] sm:$0xff] %v4838_v61  ;;  %v4842_v2 = vadd.f32 %v1486_v40, %v1230_v32  ;;  %v4856_v40 = vpop.f32.mrf.mxu0 }
 0x234   : > { %v1490_v22 = vpop.f32.mrf.mxu1 }
 0x235   : > { %5609 = vst [vmem:[#allocation90_spill] sm:$0xff] %v4842_v2  ;;  %v4848_v11 = vadd.f32 %v1490_v22, %v1234_v39  ;;  %v1246_v39 = vadd.f32 %v4550_v48, %v4710_v54  ;;  %v1252_v48 = vadd.f32 %v4562_v6, %v4710_v54  ;;  %v1078_v6 = vadd.f32 %v4420_v52, %v4710_v54 }
 0x236   : > { %v1492_v53 = vpop.f32.mrf.mxu1  ;;  %v1084_v52 = vadd.f32 %v4431_v4, %v4710_v54  ;;  %v5618_v4 = vld [vmem:[#allocation11_spill] sm:$0xff] }
 0x237   : > { %5610 = vst [vmem:[#allocation91_spill] sm:$0xff] %v4848_v11  ;;  %v4852_v15 = vadd.f32 %v1492_v53, %v1236_v55  ;;  %v1068_v53 = vadd.f32 %v4401_v25, %v4716_v20  ;;  %v4870_v55 = vpop.f32.mrf.mxu0  ;;  %v1074_v25 = vadd.f32 %v4412_v41, %v4716_v20  ;;  %v1080_v41 = vadd.f32 %v4423_v57, %v4716_v20 }
 0x238   : > { %v1496_v27 = vpop.f32.mrf.mxu1  ;;  %v1086_v57 = vadd.f32 %v4433_v8, %v4716_v20  ;;  %v5620_v8 = vld [vmem:[#allocation36_spill] sm:$0xff] }
 0x239   : > { %5611 = vst [vmem:[#allocation92_spill] sm:$0xff] %v4852_v15  ;;  %v4858_v32 = vadd.f32 %v1496_v27, %v1240_v62  ;;  %v1331_v3 = vadd.f32 %v4588_v38, %v1074_v25 }
 0x23a   : > { %v1498_v2 = vpop.f32.mrf.mxu1 }
 0x23b   : > { %5612 = vst [vmem:[#allocation93_spill] sm:$0xff] %v4858_v32  ;;  %v4864_v22 = vadd.f32 %v1498_v2, %v1242_v12  ;;  %v1323_v2 = vadd.f32 %v4573_v43, %v1066_v29  ;;  %v1329_v29 = vadd.f32 %v4582_v59, %v1072_v18  ;;  %v1335_v59 = vadd.f32 %v4592_v5, %v1078_v6  ;;  %v5619_v5 = vld [vmem:[#allocation12_spill] sm:$0xff] }
 0x23c   : > { %v1502_v51 = vpop.f32.mrf.mxu1  ;;  %v1588_v38 = vadd.f32 %v4595_v60, %v1331_v3  ;;  %v1092_v6 = vadd.f32 %v5619_v5, %v4716_v20  ;;  %v5621_v60 = vld [vmem:[#allocation35_spill] sm:$0xff] }
 0x23d   : > { %5613 = vst [vmem:[#allocation94_spill] sm:$0xff] %v4864_v22  ;;  %v4872_v62 = vadd.f32 %v1502_v51, %v1246_v39  ;;  %v1325_v39 = vadd.f32 %v4576_v45, %v1068_v53  ;;  %v4886_v51 = vpop.f32.mrf.mxu0  ;;  %v1580_v43 = vadd.f32 %v4580_v34, %v1323_v2  ;;  %v1586_v34 = vadd.f32 %v4590_v46, %v1329_v29 }
 0x23e   : > { %v1504_v27 = vpop.f32.mrf.mxu1  ;;  %v1337_v2 = vadd.f32 %v4599_v56, %v1080_v41  ;;  %v1090_v46 = vadd.f32 %v5618_v4, %v4710_v54  ;;  %v1592_v29 = vadd.f32 %v5620_v8, %v1335_v59  ;;  %v1341_v3 = vadd.f32 %v5621_v60, %v1084_v52  ;;  %v5624_v59 = vld [vmem:[#allocation13_spill] sm:$0xff] }
 0x23f   : > { %5614 = vst [vmem:[#allocation95_spill] sm:$0xff] %v4872_v62  ;;  %v4879_v12 = vadd.f32 %v1504_v27, %v1248_v0  ;;  %v1582_v53 = vadd.f32 %v4584_v30, %v1325_v39  ;;  %v1096_v52 = vadd.f32 %v5624_v59, %v4710_v54  ;;  %v5628_v8 = vld [vmem:[#allocation45_spill] sm:$0xff] }
 0x240   : > { %v1508_v22 = vpop.f32.mrf.mxu1 }
 0x241   : > { %5615 = vst [vmem:[#allocation96_spill] sm:$0xff] %v4879_v12  ;;  %v4888_v62 = vadd.f32 %v1508_v22, %v1252_v48  ;;  %v4900_v22 = vpop.f32.mrf.mxu0 }
 0x242   : > { %v1510_v36 = vpop.f32.mrf.mxu1 }
 0x243   : > { %5616 = vst [vmem:[#allocation97_spill] sm:$0xff] %v4888_v62  ;;  %v4894_v0 = vadd.f32 %v1510_v36, %v1254_v21  ;;  %v4910_v21 = vpop.f32.mrf.mxu0 }
 0x244   : > { %v1836_v45 = vpop.f32.mrf.mxu1 }
 0x245   : > { %5617 = vst [vmem:[#allocation98_spill] sm:$0xff] %v4894_v0  ;;  %v1837_v27 = vadd.f32 %v1836_v45, %v1580_v43  ;;  %v5622_v45 = vld [vmem:[#allocation39_spill] sm:$0xff]  ;;  %v4920_v12 = vpop.f32.mrf.mxu0 }
 0x246   : > { %v1838_v48 = vpop.f32.mrf.mxu1 }
 0x247   : > { %v1839_v18 = vadd.f32 %v1838_v48, %v1582_v53  ;;  %v2091_v30 = vmul.f32 0.2, %v1837_v27  ;;  %vm2027_vm1 = vcmp.gt.f32.partialorder %v1837_v27, 0.0  ;;  %v1594_v53 = vadd.f32 %v5622_v45, %v1337_v2  ;;  %v5623_v48 = vld [vmem:[#allocation37_spill] sm:$0xff] }
 0x248   : > { %v1842_v25 = vpop.f32.mrf.mxu1  ;;  %v1343_v0 = vadd.f32 %v5623_v48, %v1086_v57 }
 0x249   : > { %v2092_v39 = vmul.f32 0.2, %v1839_v18  ;;  %v1843_v36 = vadd.f32 %v1842_v25, %v1586_v34  ;;  %vm2028_vm2 = vcmp.gt.f32.partialorder %v1839_v18, 0.0  ;;  %v2155_v62 = vsel %vm2027_vm1, %v1837_v27, %v2091_v30  ;;  %v5627_v27 = vld [vmem:[#allocation38_spill] sm:$0xff] }
 0x24a   : > { %v1844_v43 = vpop.f32.mrf.mxu1  ;;  %v1347_v30 = vadd.f32 %v5627_v27, %v1090_v46  ;;  %v1600_v60 = vadd.f32 %v5628_v8, %v1343_v0 }
 0x24b   : > { %v1845_v56 = vadd.f32 %v1844_v43, %v1588_v38  ;;  %v2156_v41 = vsel %vm2028_vm2, %v1839_v18, %v2092_v39  ;;  %v2093_v34 = vmul.f32 0.2, %v1843_v36  ;;  %vm2029_vm4 = vcmp.gt.f32.partialorder %v1843_v36, 0.0  ;;  %v5625_v18 = vld [vmem:[#allocation14_spill] sm:$0xff] }
 0x24c   : > { %v1848_v25 = vpop.f32.mrf.mxu1  ;;  %2359 = vmatprep.mubr.f32.mxu0 %v2156_v41  ;;  %v1098_v38 = vadd.f32 %v5625_v18, %v4716_v20  ;;  %v5626_v39 = vld [vmem:[#allocation42_spill] sm:$0xff]  ;;  %v5629_v41 = vld [vmem:[#allocation40_spill] sm:$0xff]  ;;  %v5633_v18 = vld [vmem:[#allocation41_spill] sm:$0xff] }
 0x24d   : > { %v2094_v4 = vmul.f32 0.2, %v1845_v56  ;;  %v1849_v32 = vadd.f32 %v1848_v25, %v1592_v29  ;;  %2360 = vmatmul.mubr.f32.vlgmr.msra.gmra.mxu0 %v2155_v62  ;;  %vm2030_vm3 = vcmp.gt.f32.partialorder %v1845_v56, 0.0  ;;  %v1598_v57 = vadd.f32 %v5626_v39, %v1341_v3  ;;  %v4930_v25 = vpop.f32.mrf.mxu0  ;;  %v5630_v3 = vld [vmem:[#allocation15_spill] sm:$0xff] }
 0x24e   : > { %v1850_v2 = vpop.f32.mrf.mxu1  ;;  %v1349_v29 = vadd.f32 %v5629_v41, %v1092_v6  ;;  %v2157_v48 = vsel %vm2029_vm4, %v1843_v36, %v2093_v34  ;;  %v1102_v46 = vadd.f32 %v5630_v3, %v4710_v54  ;;  %v5634_v34 = vld [vmem:[#allocation51_spill] sm:$0xff] }
 0x24f   : > { %v1851_v5 = vadd.f32 %v1850_v2, %v1594_v53  ;;  %v2158_v43 = vsel %vm2030_vm3, %v1845_v56, %v2094_v4  ;;  %v2095_v62 = vmul.f32 0.2, %v1849_v32  ;;  %vm2031_vm6 = vcmp.gt.f32.partialorder %v1849_v32, 0.0  ;;  %v5631_v56 = vld [vmem:[#allocation16_spill] sm:$0xff] }
 0x250   : > { %v1854_v45 = vpop.f32.mrf.mxu1  ;;  %2365 = vmatprep.mubr.f32.mxu0 %v2158_v43  ;;  %v1104_v53 = vadd.f32 %v5631_v56, %v4716_v20  ;;  %v5632_v4 = vld [vmem:[#allocation48_spill] sm:$0xff]  ;;  %v1353_v2 = vadd.f32 %v5633_v18, %v1096_v52  ;;  %v1606_v27 = vadd.f32 %v5634_v34, %v1349_v29  ;;  %v5635_v43 = vld [vmem:[#allocation43_spill] sm:$0xff] }
 0x251   : > { %v2096_v59 = vmul.f32 0.2, %v1851_v5  ;;  %v1855_v15 = vadd.f32 %v1854_v45, %v1598_v57  ;;  %2366 = vmatmul.mubr.f32.gmra.mxu0 %v2157_v48  ;;  %vm2032_vm5 = vcmp.gt.f32.partialorder %v1851_v5, 0.0  ;;  %v1604_v6 = vadd.f32 %v5632_v4, %v1347_v30  ;;  %v4940_v48 = vpop.f32.mrf.mxu0  ;;  %v5636_v30 = vld [vmem:[#allocation17_spill] sm:$0xff]  ;;  %v5639_v56 = vld [vmem:[#allocation44_spill] sm:$0xff] }
 0x252   : > { %v1856_v0 = vpop.f32.mrf.mxu1  ;;  %v1355_v57 = vadd.f32 %v5635_v43, %v1098_v38  ;;  %v2159_v45 = vsel %vm2031_vm6, %v1849_v32, %v2095_v62  ;;  %v1108_v52 = vadd.f32 %v5636_v30, %v4710_v54  ;;  %v5640_v62 = vld [vmem:[#allocation57_spill] sm:$0xff] }
 0x253   : > { %v1857_v39 = vadd.f32 %v1856_v0, %v1600_v60  ;;  %v2160_v36 = vsel %vm2032_vm5, %v1851_v5, %v2096_v59  ;;  %v2097_v8 = vmul.f32 0.2, %v1855_v15  ;;  %vm2033_vm8 = vcmp.gt.f32.partialorder %v1855_v15, 0.0  ;;  %v5637_v5 = vld [vmem:[#allocation18_spill] sm:$0xff] }
 0x254   : > { %v1860_v41 = vpop.f32.mrf.mxu1  ;;  %2371 = vmatprep.mubr.f32.mxu0 %v2160_v36  ;;  %v1110_v60 = vadd.f32 %v5637_v5, %v4716_v20  ;;  %v5638_v59 = vld [vmem:[#allocation54_spill] sm:$0xff]  ;;  %v1359_v0 = vadd.f32 %v5639_v56, %v1102_v46  ;;  %v1612_v18 = vadd.f32 %v5640_v62, %v1355_v57  ;;  %v5645_v5 = vld [vmem:[#allocation47_spill] sm:$0xff] }
 0x255   : > { %v2098_v3 = vmul.f32 0.2, %v1857_v39  ;;  %v1861_v11 = vadd.f32 %v1860_v41, %v1604_v6  ;;  %2372 = vmatmul.mubr.f32.gmra.mxu0 %v2159_v45  ;;  %vm2034_vm7 = vcmp.gt.f32.partialorder %v1857_v39, 0.0  ;;  %v1610_v38 = vadd.f32 %v5638_v59, %v1353_v2  ;;  %v5641_v36 = vld [vmem:[#allocation46_spill] sm:$0xff]  ;;  %v4950_v45 = vpop.f32.mrf.mxu0  ;;  %v5642_v2 = vld [vmem:[#allocation19_spill] sm:$0xff] }
 0x256   : > { %v1862_v29 = vpop.f32.mrf.mxu1  ;;  %v1361_v6 = vadd.f32 %v5641_v36, %v1104_v53  ;;  %v2161_v41 = vsel %vm2033_vm8, %v1855_v15, %v2097_v8  ;;  %v1114_v46 = vadd.f32 %v5642_v2, %v4710_v54  ;;  %v5646_v8 = vld [vmem:[#allocation63_spill] sm:$0xff] }
 0x257   : > { %v1863_v4 = vadd.f32 %v1862_v29, %v1606_v27  ;;  %v2162_v32 = vsel %vm2034_vm7, %v1857_v39, %v2098_v3  ;;  %v2099_v34 = vmul.f32 0.2, %v1861_v11  ;;  %vm2035_vm10 = vcmp.gt.f32.partialorder %v1861_v11, 0.0  ;;  %v5643_v39 = vld [vmem:[#allocation20_spill] sm:$0xff] }
 0x258   : > { %v1866_v43 = vpop.f32.mrf.mxu1  ;;  %2377 = vmatprep.mubr.f32.mxu0 %v2162_v32  ;;  %v1116_v27 = vadd.f32 %v5643_v39, %v4716_v20  ;;  %v5644_v3 = vld [vmem:[#allocation60_spill] sm:$0xff]  ;;  %v1365_v29 = vadd.f32 %v5645_v5, %v1108_v52  ;;  %v1618_v56 = vadd.f32 %v5646_v8, %v1361_v6  ;;  %v5647_v32 = vld [vmem:[#allocation49_spill] sm:$0xff]  ;;  %v5651_v39 = vld [vmem:[#allocation50_spill] sm:$0xff] }
 0x259   : > { %v2100_v30 = vmul.f32 0.2, %v1863_v4  ;;  %v1867_v61 = vadd.f32 %v1866_v43, %v1610_v38  ;;  %2378 = vmatmul.mubr.f32.gmra.mxu0 %v2161_v41  ;;  %vm2036_vm9 = vcmp.gt.f32.partialorder %v1863_v4, 0.0  ;;  %v1616_v53 = vadd.f32 %v5644_v3, %v1359_v0  ;;  %v4960_v41 = vpop.f32.mrf.mxu0  ;;  %v5648_v0 = vld [vmem:[#allocation21_spill] sm:$0xff] }
 0x25a   : > { %v1868_v57 = vpop.f32.mrf.mxu1  ;;  %v1367_v38 = vadd.f32 %v5647_v32, %v1110_v60  ;;  %v2163_v43 = vsel %vm2035_vm10, %v1861_v11, %v2099_v34  ;;  %v1120_v52 = vadd.f32 %v5648_v0, %v4710_v54  ;;  %v5652_v34 = vld [vmem:[#allocation71_spill] sm:$0xff] }
 0x25b   : > { %v1869_v59 = vadd.f32 %v1868_v57, %v1612_v18  ;;  %v2164_v15 = vsel %vm2036_vm9, %v1863_v4, %v2100_v30  ;;  %v2101_v62 = vmul.f32 0.2, %v1867_v61  ;;  %vm2037_vm12 = vcmp.gt.f32.partialorder %v1867_v61, 0.0  ;;  %v5649_v4 = vld [vmem:[#allocation22_spill] sm:$0xff] }
 0x25c   : > { %v1872_v36 = vpop.f32.mrf.mxu1  ;;  %2383 = vmatprep.mubr.f32.mxu0 %v2164_v15  ;;  %v1122_v18 = vadd.f32 %v5649_v4, %v4716_v20  ;;  %v5650_v30 = vld [vmem:[#allocation66_spill] sm:$0xff]  ;;  %v1371_v57 = vadd.f32 %v5651_v39, %v1114_v46  ;;  %v1624_v5 = vadd.f32 %v5652_v34, %v1367_v38  ;;  %v5653_v15 = vld [vmem:[#allocation52_spill] sm:$0xff]  ;;  %v5657_v4 = vld [vmem:[#allocation53_spill] sm:$0xff] }
 0x25d   : > { %v2102_v2 = vmul.f32 0.2, %v1869_v59  ;;  %v1873_v50 = vadd.f32 %v1872_v36, %v1616_v53  ;;  %2384 = vmatmul.mubr.f32.gmra.mxu0 %v2163_v43  ;;  %vm2038_vm11 = vcmp.gt.f32.partialorder %v1869_v59, 0.0  ;;  %v1622_v60 = vadd.f32 %v5650_v30, %v1365_v29  ;;  %v4970_v43 = vpop.f32.mrf.mxu0  ;;  %v5654_v29 = vld [vmem:[#allocation23_spill] sm:$0xff] }
 0x25e   : > { %v1874_v6 = vpop.f32.mrf.mxu1  ;;  %v1373_v53 = vadd.f32 %v5653_v15, %v1116_v27  ;;  %v2165_v36 = vsel %vm2037_vm12, %v1867_v61, %v2101_v62  ;;  %v1126_v46 = vadd.f32 %v5654_v29, %v4710_v54  ;;  %v5658_v39 = vld [vmem:[#allocation55_spill] sm:$0xff] }
 0x25f   : > { %v1875_v3 = vadd.f32 %v1874_v6, %v1618_v56  ;;  %v2166_v11 = vsel %vm2038_vm11, %v1869_v59, %v2102_v2  ;;  %v2103_v8 = vmul.f32 0.2, %v1873_v50  ;;  %vm2039_vm14 = vcmp.gt.f32.partialorder %v1873_v50, 0.0  ;;  %v5655_v59 = vld [vmem:[#allocation24_spill] sm:$0xff]  ;;  %v5656_v2 = vld [vmem:[#allocation74_spill] sm:$0xff] }
 0x260   : > { %v1878_v32 = vpop.f32.mrf.mxu1  ;;  %2389 = vmatprep.mubr.f32.mxu0 %v2166_v11  ;;  %v1128_v56 = vadd.f32 %v5655_v59, %v4716_v20  ;;  %v1628_v27 = vadd.f32 %v5656_v2, %v1371_v57  ;;  %v1377_v6 = vadd.f32 %v5657_v4, %v1120_v52  ;;  %v1630_v62 = vadd.f32 %v4726_v16, %v1373_v53  ;;  %v5659_v57 = vld [vmem:[#allocation25_spill] sm:$0xff]  ;;  %v5661_v53 = vld [vmem:[#allocation56_spill] sm:$0xff] }
 0x261   : > { %v2104_v0 = vmul.f32 0.2, %v1875_v3  ;;  %v1879_v37 = vadd.f32 %v1878_v32, %v1622_v60  ;;  %2390 = vmatmul.mubr.f32.gmra.mxu0 %v2165_v36  ;;  %vm2040_vm13 = vcmp.gt.f32.partialorder %v1875_v3, 0.0  ;;  %v1379_v60 = vadd.f32 %v5658_v39, %v1122_v18  ;;  %v4980_v32 = vpop.f32.mrf.mxu0 }
 0x262   : > { %v1880_v38 = vpop.f32.mrf.mxu1  ;;  %v2167_v15 = vsel %vm2039_vm14, %v1873_v50, %v2103_v8  ;;  %v1132_v52 = vadd.f32 %v5659_v57, %v4710_v54  ;;  %v1634_v18 = vadd.f32 %v4736_v10, %v1377_v6  ;;  %v5663_v10 = vld [vmem:[#allocation27_spill] sm:$0xff]  ;;  %v5664_v6 = vld [vmem:[#allocation28_spill] sm:$0xff]  ;;  %v5666_v57 = vld [vmem:[#allocation61_spill] sm:$0xff] }
 0x263   : > { %v1881_v30 = vadd.f32 %v1880_v38, %v1624_v5  ;;  %v2168_v61 = vsel %vm2040_vm13, %v1875_v3, %v2104_v0  ;;  %v2105_v11 = vmul.f32 0.2, %v1879_v37  ;;  %vm2041_vm0 = vcmp.gt.f32.partialorder %v1879_v37, 0.0  ;;  %v5660_v3 = vld [vmem:[#allocation26_spill] sm:$0xff]  ;;  %v4990_v39 = vpop.f32.mrf.mxu0 }
 0x264   : > { %v1884_v34 = vpop.f32.mrf.mxu1  ;;  %2395 = vmatprep.mubr.f32.mxu0 %v2168_v61  ;;  %v1134_v5 = vadd.f32 %v5660_v3, %v4716_v20  ;;  %v1383_v0 = vadd.f32 %v5661_v53, %v1126_v46  ;;  %v1636_v8 = vadd.f32 %v4746_v33, %v1379_v60  ;;  %v5662_v38 = vld [vmem:[#allocation58_spill] sm:$0xff]  ;;  %v1138_v46 = vadd.f32 %v5663_v10, %v4710_v54 }
 0x265   : > { %v2106_v36 = vmul.f32 0.2, %v1881_v30  ;;  %v1885_v29 = vadd.f32 %v1884_v34, %v1628_v27  ;;  %2396 = vmatmul.mubr.f32.gmra.mxu0 %v2167_v15  ;;  %vm2042_vm15 = vcmp.gt.f32.partialorder %v1881_v30, 0.0  ;;  %v1385_v2 = vadd.f32 %v5662_v38, %v1128_v56 }
 0x266   : > { %v1886_v16 = vpop.f32.mrf.mxu1  ;;  %v2169_v61 = vsel %vm2041_vm0, %v1879_v37, %v2105_v11  ;;  %v1640_v56 = vadd.f32 %v4756_v17, %v1383_v0  ;;  %v1391_v3 = vadd.f32 %v5666_v57, %v1134_v5  ;;  %v5667_v17 = vld [vmem:[#allocation29_spill] sm:$0xff]  ;;  %v5668_v0 = vld [vmem:[#allocation30_spill] sm:$0xff] }
 0x267   : > { %v1887_v59 = vadd.f32 %v1886_v16, %v1630_v62  ;;  %v2170_v50 = vsel %vm2042_vm15, %v1881_v30, %v2106_v36  ;;  %v2107_v27 = vmul.f32 0.2, %v1885_v29  ;;  %vm2043_vm1 = vcmp.gt.f32.partialorder %v1885_v29, 0.0  ;;  %v5665_v62 = vld [vmem:[#allocation59_spill] sm:$0xff] }
 0x268   : > { %v1890_v4 = vpop.f32.mrf.mxu1  ;;  %2401 = vmatprep.mubr.f32.mxu0 %v2170_v50  ;;  %v1140_v30 = vadd.f32 %v5664_v6, %v4716_v20  ;;  %v1389_v60 = vadd.f32 %v5665_v62, %v1132_v52  ;;  %v1642_v11 = vadd.f32 %v4766_v44, %v1385_v2  ;;  %v5001_v50 = vpop.f32.mrf.mxu0  ;;  %v1144_v52 = vadd.f32 %v5667_v17, %v4710_v54 }
 0x269   : > { %v2108_v34 = vmul.f32 0.2, %v1887_v59  ;;  %v1891_v15 = vadd.f32 %v1890_v4, %v1634_v18  ;;  %2402 = vmatmul.mubr.f32.gmra.mxu0 %v2169_v61  ;;  %vm2044_vm2 = vcmp.gt.f32.partialorder %v1887_v59, 0.0  ;;  %v2171_v53 = vsel %vm2043_vm1, %v1885_v29, %v2107_v27 }
 0x26a   : > { %v1892_v33 = vpop.f32.mrf.mxu1  ;;  %v1146_v44 = vadd.f32 %v5668_v0, %v4716_v20  ;;  %v1646_v5 = vadd.f32 %v4776_v7, %v1389_v60  ;;  %v1648_v27 = vadd.f32 %v4786_v23, %v1391_v3  ;;  %v5012_v62 = vpop.f32.mrf.mxu0  ;;  %v5671_v7 = vld [vmem:[#allocation31_spill] sm:$0xff]  ;;  %v5672_v60 = vld [vmem:[#allocation32_spill] sm:$0xff] }
 0x26b   : > { %v1893_v36 = vadd.f32 %v1892_v33, %v1636_v8  ;;  %v2172_v37 = vsel %vm2044_vm2, %v1887_v59, %v2108_v34  ;;  %v2109_v16 = vmul.f32 0.2, %v1891_v15  ;;  %vm2045_vm3 = vcmp.gt.f32.partialorder %v1891_v15, 0.0  ;;  %v5669_v8 = vld [vmem:[#allocation62_spill] sm:$0xff]  ;;  %v5670_v34 = vld [vmem:[#allocation64_spill] sm:$0xff] }
 0x26c   : > { %v1896_v18 = vpop.f32.mrf.mxu1  ;;  %2407 = vmatprep.mubr.f32.mxu0 %v2172_v37  ;;  %v1395_v2 = vadd.f32 %v5669_v8, %v1138_v46  ;;  %v1397_v10 = vadd.f32 %v5670_v34, %v1140_v30  ;;  %v1150_v46 = vadd.f32 %v5671_v7, %v4710_v54  ;;  %v1152_v23 = vadd.f32 %v5672_v60, %v4716_v20 }
 0x26d   : > { %v2110_v38 = vmul.f32 0.2, %v1893_v36  ;;  %v1897_v4 = vadd.f32 %v1896_v18, %v1640_v56  ;;  %2408 = vmatmul.mubr.f32.gmra.mxu0 %v2171_v53  ;;  %vm2046_vm4 = vcmp.gt.f32.partialorder %v1893_v36, 0.0  ;;  %v2173_v56 = vsel %vm2045_vm3, %v1891_v15, %v2109_v16  ;;  %v5674_v53 = vld [vmem:[#allocation67_spill] sm:$0xff] }
 0x26e   : > { %v1898_v59 = vpop.f32.mrf.mxu1  ;;  %v1652_v30 = vadd.f32 %v4796_v19, %v1395_v2  ;;  %v1654_v16 = vadd.f32 %v4806_v31, %v1397_v10  ;;  %v5675_v19 = vld [vmem:[#allocation33_spill] sm:$0xff]  ;;  %v5676_v2 = vld [vmem:[#allocation34_spill] sm:$0xff] }
 0x26f   : > { %v1899_v61 = vadd.f32 %v1898_v59, %v1642_v11  ;;  %v2174_v29 = vsel %vm2046_vm4, %v1893_v36, %v2110_v38  ;;  %v2111_v6 = vmul.f32 0.2, %v1897_v4  ;;  %vm2047_vm5 = vcmp.gt.f32.partialorder %v1897_v4, 0.0  ;;  %v5673_v11 = vld [vmem:[#allocation65_spill] sm:$0xff] }
 0x270   : > { %v1902_v33 = vpop.f32.mrf.mxu1  ;;  %2413 = vmatprep.mubr.f32.mxu0 %v2174_v29  ;;  %v1401_v3 = vadd.f32 %v5673_v11, %v1144_v52  ;;  %v1403_v38 = vadd.f32 %v5674_v53, %v1146_v44  ;;  %v1156_v52 = vadd.f32 %v5675_v19, %v4710_v54  ;;  %v1158_v31 = vadd.f32 %v5676_v2, %v4716_v20 }
 0x271   : > { %v2112_v37 = vmul.f32 0.2, %v1899_v61  ;;  %v1903_v57 = vadd.f32 %v1902_v33, %v1646_v5  ;;  %2414 = vmatmul.mubr.f32.gmra.mxu0 %v2173_v56  ;;  %vm2048_vm6 = vcmp.gt.f32.partialorder %v1899_v61, 0.0  ;;  %v2175_v59 = vsel %vm2047_vm5, %v1897_v4, %v2111_v6  ;;  %v5023_v5 = vpop.f32.mrf.mxu0  ;;  %v5678_v33 = vld [vmem:[#allocation72_spill] sm:$0xff] }
 0x272   : > { %v1904_v36 = vpop.f32.mrf.mxu1  ;;  %v1658_v44 = vadd.f32 %v4816_v47, %v1401_v3  ;;  %v1660_v6 = vadd.f32 %v4826_v63, %v1403_v38  ;;  %v1409_v56 = vadd.f32 %v5678_v33, %v1152_v23 }
 0x273   : > { %v1905_v18 = vadd.f32 %v1904_v36, %v1648_v27  ;;  %v2176_v15 = vsel %vm2048_vm6, %v1899_v61, %v2112_v37  ;;  %v2113_v17 = vmul.f32 0.2, %v1903_v57  ;;  %vm2049_vm7 = vcmp.gt.f32.partialorder %v1903_v57, 0.0  ;;  %v5677_v27 = vld [vmem:[#allocation69_spill] sm:$0xff]  ;;  %v5034_v54 = vpop.f32.mrf.mxu0 }
 0x274   : > { %v1908_v0 = vpop.f32.mrf.mxu1  ;;  %2419 = vmatprep.mubr.f32.mxu0 %v2176_v15  ;;  %v1407_v34 = vadd.f32 %v5677_v27, %v1150_v46  ;;  %v1666_v23 = vadd.f32 %v4846_v28, %v1409_v56 }
 0x275   : > { %v2114_v8 = vmul.f32 0.2, %v1905_v18  ;;  %v1909_v29 = vadd.f32 %v1908_v0, %v1652_v30  ;;  %2420 = vmatmul.mubr.f32.gmra.mxu0 %v2175_v59  ;;  %vm2050_vm8 = vcmp.gt.f32.partialorder %v1905_v18, 0.0  ;;  %v2177_v60 = vsel %vm2049_vm7, %v1903_v57, %v2113_v17  ;;  %v5679_v30 = vld [vmem:[#allocation73_spill] sm:$0xff]  ;;  %v5040_v38 = vpop.f32.mrf.mxu0 }
 0x276   : > { %v1910_v61 = vpop.f32.mrf.mxu1  ;;  %v1664_v46 = vadd.f32 %v4836_v14, %v1407_v34  ;;  %v1413_v11 = vadd.f32 %v5679_v30, %v1156_v52  ;;  %v1676_v34 = vadd.f32 %v4886_v51, %v4728_v35  ;;  %v1682_v35 = vadd.f32 %v4910_v21, %v4738_v13 }
 0x277   : > { %v1911_v10 = vadd.f32 %v1910_v61, %v1654_v16  ;;  %v2178_v4 = vsel %vm2050_vm8, %v1905_v18, %v2114_v8  ;;  %v2115_v37 = vmul.f32 0.2, %v1909_v29  ;;  %vm2051_vm9 = vcmp.gt.f32.partialorder %v1909_v29, 0.0  ;;  %v5680_v18 = vld [vmem:[#allocation75_spill] sm:$0xff]  ;;  %v5044_v61 = vpop.f32.mrf.mxu0 }
 0x278   : > { %v1914_v7 = vpop.f32.mrf.mxu1  ;;  %2425 = vmatprep.mubr.f32.mxu0 %v2178_v4  ;;  %v1415_v15 = vadd.f32 %v5680_v18, %v1158_v31  ;;  %v1670_v59 = vadd.f32 %v4856_v40, %v1413_v11  ;;  %v5681_v4 = vld [vmem:[#allocation76_spill] sm:$0xff]  ;;  %v1688_v13 = vadd.f32 %v4930_v25, %v4748_v1  ;;  %v1694_v1 = vadd.f32 %v4950_v45, %v4758_v49 }
 0x279   : > { %v2116_v20 = vmul.f32 0.2, %v1911_v10  ;;  %v1915_v36 = vadd.f32 %v1914_v7, %v1658_v44  ;;  %2426 = vmatmul.mubr.f32.gmra.mxu0 %v2177_v60  ;;  %vm2052_vm10 = vcmp.gt.f32.partialorder %v1911_v10, 0.0  ;;  %v2179_v53 = vsel %vm2051_vm9, %v1909_v29, %v2115_v37  ;;  %v5050_v37 = vpop.f32.mrf.mxu0 }
 0x27a   : > { %v1916_v47 = vpop.f32.mrf.mxu1  ;;  %v1672_v28 = vadd.f32 %v4870_v55, %v1415_v15  ;;  %v1678_v55 = vadd.f32 %v4900_v22, %v5681_v4  ;;  %v1700_v49 = vadd.f32 %v4970_v43, %v4768_v26  ;;  %v1706_v26 = vadd.f32 %v4990_v39, %v4778_v42 }
 0x27b   : > { %v1917_v63 = vadd.f32 %v1916_v47, %v1660_v6  ;;  %v2180_v3 = vsel %vm2052_vm10, %v1911_v10, %v2116_v20  ;;  %v2117_v16 = vmul.f32 0.2, %v1915_v36  ;;  %vm2053_vm11 = vcmp.gt.f32.partialorder %v1915_v36, 0.0  ;;  %v5682_v47 = vld [vmem:[#allocation77_spill] sm:$0xff] }
 0x27c   : > { %v1920_v57 = vpop.f32.mrf.mxu1  ;;  %2431 = vmatprep.mubr.f32.mxu0 %v2180_v3  ;;  %v1684_v22 = vadd.f32 %v4920_v12, %v5682_v47  ;;  %v1712_v42 = vadd.f32 %v5012_v62, %v4788_v58  ;;  %v1718_v58 = vadd.f32 %v5034_v54, %v4798_v9  ;;  %v1724_v9 = vadd.f32 %v5044_v61, %v4808_v24 }
 0x27d   : > { %v2118_v17 = vmul.f32 0.2, %v1917_v63  ;;  %v1921_v0 = vadd.f32 %v1920_v57, %v1664_v46  ;;  %2432 = vmatmul.mubr.f32.gmra.mxu0 %v2179_v53  ;;  %vm2054_vm12 = vcmp.gt.f32.partialorder %v1917_v63, 0.0  ;;  %v2181_v31 = vsel %vm2053_vm11, %v1915_v36, %v2117_v16  ;;  %v5683_v16 = vld [vmem:[#allocation78_spill] sm:$0xff] }
 0x27e   : > { %v1922_v14 = vpop.f32.mrf.mxu1  ;;  %v1690_v12 = vadd.f32 %v4940_v48, %v5683_v16 }
 0x27f   : > { %v1923_v8 = vadd.f32 %v1922_v14, %v1666_v23  ;;  %v2182_v19 = vsel %vm2054_vm12, %v1917_v63, %v2118_v17  ;;  %v2119_v52 = vmul.f32 0.2, %v1921_v0  ;;  %vm2055_vm13 = vcmp.gt.f32.partialorder %v1921_v0, 0.0  ;;  %v5056_v63 = vpop.f32.mrf.mxu0 }
 0x280   : > { %v1926_v2 = vpop.f32.mrf.mxu1  ;;  %2437 = vmatprep.mubr.f32.mxu0 %v2182_v19 }
 0x281   : > { %v2120_v29 = vmul.f32 0.2, %v1923_v8  ;;  %v1927_v44 = vadd.f32 %v1926_v2, %v1670_v59  ;;  %2438 = vmatmul.mubr.f32.gmra.mxu0 %v2181_v31  ;;  %vm2056_vm14 = vcmp.gt.f32.partialorder %v1923_v8, 0.0  ;;  %v2183_v56 = vsel %vm2055_vm13, %v1921_v0, %v2119_v52  ;;  %v5062_v0 = vpop.f32.mrf.mxu0 }
 0x282   : > { %v1928_v27 = vpop.f32.mrf.mxu1 }
 0x283   : > { %v1929_v40 = vadd.f32 %v1928_v27, %v1672_v28  ;;  %v2184_v10 = vsel %vm2056_vm14, %v1923_v8, %v2120_v29  ;;  %v2121_v6 = vmul.f32 0.2, %v1927_v44  ;;  %vm2057_vm15 = vcmp.gt.f32.partialorder %v1927_v44, 0.0  ;;  %v5684_v28 = vld [vmem:[#allocation79_spill] sm:$0xff]  ;;  %v5068_v29 = vpop.f32.mrf.mxu0 }
 0x284   : > { %v1932_v33 = vpop.f32.mrf.mxu1  ;;  %2443 = vmatprep.mubr.f32.mxu0 %v2184_v10  ;;  %v1696_v48 = vadd.f32 %v4960_v41, %v5684_v28  ;;  %v5685_v10 = vld [vmem:[#allocation80_spill] sm:$0xff] }
 0x285   : > { %v2122_v7 = vmul.f32 0.2, %v1929_v40  ;;  %v1933_v60 = vadd.f32 %v1932_v33, %v1676_v34  ;;  %2444 = vmatmul.mubr.f32.gmra.mxu0 %v2183_v56  ;;  %vm2058_vm0 = vcmp.gt.f32.partialorder %v1929_v40, 0.0  ;;  %v2185_v11 = vsel %vm2057_vm15, %v1927_v44, %v2121_v6  ;;  %v5074_v33 = vpop.f32.mrf.mxu0 }
 0x286   : > { %v1934_v20 = vpop.f32.mrf.mxu1  ;;  %v1702_v41 = vadd.f32 %v4980_v32, %v5685_v10 }
 0x287   : > { %v1935_v51 = vadd.f32 %v1934_v20, %v1678_v55  ;;  %v2186_v36 = vsel %vm2058_vm0, %v1929_v40, %v2122_v7  ;;  %v2123_v46 = vmul.f32 0.2, %v1933_v60  ;;  %vm2059_vm1 = vcmp.gt.f32.partialorder %v1933_v60, 0.0 }
 0x288   : > { %v1938_v30 = vpop.f32.mrf.mxu1  ;;  %2449 = vmatprep.mubr.f32.mxu0 %v2186_v36 }
 0x289   : > { %v2124_v3 = vmul.f32 0.2, %v1935_v51  ;;  %v1939_v23 = vadd.f32 %v1938_v30, %v1682_v35  ;;  %2450 = vmatmul.mubr.f32.gmra.mxu0 %v2185_v11  ;;  %vm2060_vm2 = vcmp.gt.f32.partialorder %v1935_v51, 0.0  ;;  %v2187_v17 = vsel %vm2059_vm1, %v1933_v60, %v2123_v46  ;;  %v5686_v35 = vld [vmem:[#allocation81_spill] sm:$0xff] }
 0x28a   : > { %v1940_v18 = vpop.f32.mrf.mxu1  ;;  %v1708_v32 = vadd.f32 %v5001_v50, %v5686_v35 }
 0x28b   : > { %v1941_v21 = vadd.f32 %v1940_v18, %v1684_v22  ;;  %v2188_v15 = vsel %vm2060_vm2, %v1935_v51, %v2124_v3  ;;  %v2125_v57 = vmul.f32 0.2, %v1939_v23  ;;  %vm2061_vm3 = vcmp.gt.f32.partialorder %v1939_v23, 0.0  ;;  %v5080_v22 = vpop.f32.mrf.mxu0 }
 0x28c   : > { %v1944_v53 = vpop.f32.mrf.mxu1  ;;  %2455 = vmatprep.mubr.f32.mxu0 %v2188_v15 }
 0x28d   : > { %v2126_v14 = vmul.f32 0.2, %v1941_v21  ;;  %v1945_v59 = vadd.f32 %v1944_v53, %v1688_v13  ;;  %2456 = vmatmul.mubr.f32.gmra.mxu0 %v2187_v17  ;;  %vm2062_vm4 = vcmp.gt.f32.partialorder %v1941_v21, 0.0  ;;  %v2189_v31 = vsel %vm2061_vm3, %v1939_v23, %v2125_v57  ;;  %v5687_v23 = vld [vmem:[#allocation82_spill] sm:$0xff]  ;;  %v5086_v15 = vpop.f32.mrf.mxu0  ;;  %v5688_v17 = vld [vmem:[#allocation83_spill] sm:$0xff] }
 0x28e   : > { %v1946_v8 = vpop.f32.mrf.mxu1  ;;  %v1714_v50 = vadd.f32 %v5023_v5, %v5687_v23  ;;  %v1720_v5 = vadd.f32 %v5040_v38, %v5688_v17 }
 0x28f   : > { %v1947_v25 = vadd.f32 %v1946_v8, %v1690_v12  ;;  %v2190_v19 = vsel %vm2062_vm4, %v1941_v21, %v2126_v14  ;;  %v2127_v52 = vmul.f32 0.2, %v1945_v59  ;;  %vm2063_vm5 = vcmp.gt.f32.partialorder %v1945_v59, 0.0 }
 0x290   : > { %v1950_v2 = vpop.f32.mrf.mxu1  ;;  %2461 = vmatprep.mubr.f32.mxu0 %v2190_v19 }
 0x291   : > { %v2128_v44 = vmul.f32 0.2, %v1947_v25  ;;  %v1951_v27 = vadd.f32 %v1950_v2, %v1694_v1  ;;  %2462 = vmatmul.mubr.f32.gmra.mxu0 %v2189_v31  ;;  %vm2064_vm6 = vcmp.gt.f32.partialorder %v1947_v25, 0.0  ;;  %v2191_v6 = vsel %vm2063_vm5, %v1945_v59, %v2127_v52  ;;  %v5092_v1 = vpop.f32.mrf.mxu0  ;;  %v5689_v52 = vld [vmem:[#allocation84_spill] sm:$0xff] }
 0x292   : > { %v1952_v34 = vpop.f32.mrf.mxu1  ;;  %v1726_v38 = vadd.f32 %v5050_v37, %v5689_v52 }
 0x293   : > { %v1953_v45 = vadd.f32 %v1952_v34, %v1696_v48  ;;  %v2192_v40 = vsel %vm2064_vm6, %v1947_v25, %v2128_v44  ;;  %v2129_v4 = vmul.f32 0.2, %v1951_v27  ;;  %vm2065_vm7 = vcmp.gt.f32.partialorder %v1951_v27, 0.0 }
 0x294   : > { %v1956_v55 = vpop.f32.mrf.mxu1  ;;  %2467 = vmatprep.mubr.f32.mxu0 %v2192_v40  ;;  %v5690_v40 = vld [vmem:[#allocation85_spill] sm:$0xff] }
 0x295   : > { %v2130_v56 = vmul.f32 0.2, %v1953_v45  ;;  %v1957_v7 = vadd.f32 %v1956_v55, %v1700_v49  ;;  %2468 = vmatmul.mubr.f32.gmra.mxu0 %v2191_v6  ;;  %vm2066_vm8 = vcmp.gt.f32.partialorder %v1953_v45, 0.0  ;;  %v2193_v47 = vsel %vm2065_vm7, %v1951_v27, %v2129_v4  ;;  %v1749_v27 = vpop.f32.mrf.mxu0 }
 0x296   : > { %v1958_v60 = vpop.f32.mrf.mxu1  ;;  %v1730_v10 = vadd.f32 %v5056_v63, %v5690_v40 }
 0x297   : > { %v1959_v43 = vadd.f32 %v1958_v60, %v1702_v41  ;;  %v2194_v20 = vsel %vm2066_vm8, %v1953_v45, %v2130_v56  ;;  %v2131_v51 = vmul.f32 0.2, %v1957_v7  ;;  %vm2067_vm9 = vcmp.gt.f32.partialorder %v1957_v7, 0.0  ;;  %v5691_v41 = vld [vmem:[#allocation86_spill] sm:$0xff]  ;;  %v1753_v56 = vpop.f32.mrf.mxu0 }
 0x298   : > { %v1962_v36 = vpop.f32.mrf.mxu1  ;;  %2473 = vmatprep.mubr.f32.mxu0 %v2194_v20  ;;  %v1732_v4 = vadd.f32 %v5062_v0, %v5691_v41 }
 0x299   : > { %v2132_v46 = vmul.f32 0.2, %v1959_v43  ;;  %v1963_v30 = vadd.f32 %v1962_v36, %v1706_v26  ;;  %2474 = vmatmul.mubr.f32.gmra.mxu0 %v2193_v47  ;;  %vm2068_vm10 = vcmp.gt.f32.partialorder %v1959_v43, 0.0  ;;  %v2195_v21 = vsel %vm2067_vm9, %v1957_v7, %v2131_v51 }
 0x29a   : > { %v1964_v11 = vpop.f32.mrf.mxu1 }
 0x29b   : > { %v1965_v39 = vadd.f32 %v1964_v11, %v1708_v32  ;;  %v2196_v3 = vsel %vm2068_vm10, %v1959_v43, %v2132_v46  ;;  %v2133_v18 = vmul.f32 0.2, %v1963_v30  ;;  %vm2069_vm11 = vcmp.gt.f32.partialorder %v1963_v30, 0.0  ;;  %v5692_v43 = vld [vmem:[#allocation87_spill] sm:$0xff]  ;;  %v5693_v32 = vld [vmem:[#allocation88_spill] sm:$0xff]  ;;  %v1755_v46 = vpop.f32.mrf.mxu0 }
 0x29c   : > { %v1968_v13 = vpop.f32.mrf.mxu1  ;;  %2479 = vmatprep.mubr.f32.mxu0 %v2196_v3  ;;  %v1736_v20 = vadd.f32 %v5068_v29, %v5692_v43  ;;  %v1738_v51 = vadd.f32 %v5074_v33, %v5693_v32 }
 0x29d   : > { %v2134_v16 = vmul.f32 0.2, %v1965_v39  ;;  %v1969_v12 = vadd.f32 %v1968_v13, %v1712_v42  ;;  %2480 = vmatmul.mubr.f32.gmra.mxu0 %v2195_v21  ;;  %vm2070_vm12 = vcmp.gt.f32.partialorder %v1965_v39, 0.0  ;;  %v2197_v8 = vsel %vm2069_vm11, %v1963_v30, %v2133_v18 }
 0x29e   : > { %v1970_v57 = vpop.f32.mrf.mxu1 }
 0x29f   : > { %v1971_v62 = vadd.f32 %v1970_v57, %v1714_v50  ;;  %v2198_v53 = vsel %vm2070_vm12, %v1965_v39, %v2134_v16  ;;  %v2135_v14 = vmul.f32 0.2, %v1969_v12  ;;  %vm2071_vm13 = vcmp.gt.f32.partialorder %v1969_v12, 0.0  ;;  %v5694_v39 = vld [vmem:[#allocation89_spill] sm:$0xff]  ;;  %v5695_v50 = vld [vmem:[#allocation90_spill] sm:$0xff]  ;;  %v1759_v16 = vpop.f32.mrf.mxu0 }
 0x2a0   : > { %v1974_v59 = vpop.f32.mrf.mxu1  ;;  %2485 = vmatprep.mubr.f32.mxu0 %v2198_v53  ;;  %v1742_v3 = vadd.f32 %v5080_v22, %v5694_v39  ;;  %v1744_v18 = vadd.f32 %v5086_v15, %v5695_v50 }
 0x2a1   : > { %v2136_v25 = vmul.f32 0.2, %v1971_v62  ;;  %v1975_v19 = vadd.f32 %v1974_v59, %v1718_v58  ;;  %2486 = vmatmul.mubr.f32.gmra.mxu0 %v2197_v8  ;;  %vm2072_vm14 = vcmp.gt.f32.partialorder %v1971_v62, 0.0  ;;  %v2199_v44 = vsel %vm2071_vm13, %v1969_v12, %v2135_v14 }
 0x2a2   : > { %v1976_v28 = vpop.f32.mrf.mxu1 }
 0x2a3   : > { %v1977_v54 = vadd.f32 %v1976_v28, %v1720_v5  ;;  %v2200_v48 = vsel %vm2072_vm14, %v1971_v62, %v2136_v25  ;;  %v2137_v2 = vmul.f32 0.2, %v1975_v19  ;;  %vm2073_vm15 = vcmp.gt.f32.partialorder %v1975_v19, 0.0  ;;  %v5696_v62 = vld [vmem:[#allocation91_spill] sm:$0xff]  ;;  %v5697_v5 = vld [vmem:[#allocation92_spill] sm:$0xff]  ;;  %v1761_v25 = vpop.f32.mrf.mxu0 }
 0x2a4   : > { %v1980_v31 = vpop.f32.mrf.mxu1  ;;  %2491 = vmatprep.mubr.f32.mxu0 %v2200_v48  ;;  %v1748_v53 = vadd.f32 %v5092_v1, %v5696_v62  ;;  %v1750_v14 = vadd.f32 %v1749_v27, %v5697_v5  ;;  %v5699_v1 = vld [vmem:[#allocation94_spill] sm:$0xff] }
 0x2a5   : > { %v2138_v34 = vmul.f32 0.2, %v1977_v54  ;;  %v1981_v49 = vadd.f32 %v1980_v31, %v1724_v9  ;;  %2492 = vmatmul.mubr.f32.gmra.mxu0 %v2199_v44  ;;  %vm2074_vm0 = vcmp.gt.f32.partialorder %v1977_v54, 0.0  ;;  %v2201_v6 = vsel %vm2073_vm15, %v1975_v19, %v2137_v2 }
 0x2a6   : > { %v1982_v45 = vpop.f32.mrf.mxu1  ;;  %v1756_v2 = vadd.f32 %v1755_v46, %v5699_v1 }
 0x2a7   : > { %v1983_v24 = vadd.f32 %v1982_v45, %v1726_v38  ;;  %v2202_v61 = vsel %vm2074_vm0, %v1977_v54, %v2138_v34  ;;  %v2139_v37 = vmul.f32 0.2, %v1981_v49  ;;  %vm2075_vm1 = vcmp.gt.f32.partialorder %v1981_v49, 0.0  ;;  %v5698_v54 = vld [vmem:[#allocation93_spill] sm:$0xff]  ;;  %v1765_v34 = vpop.f32.mrf.mxu0 }
 0x2a8   : > { %v1986_v55 = vpop.f32.mrf.mxu1  ;;  %2497 = vmatprep.mubr.f32.mxu0 %v2202_v61  ;;  %v1754_v48 = vadd.f32 %v1753_v56, %v5698_v54 }
 0x2a9   : > { %v2140_v7 = vmul.f32 0.2, %v1983_v24  ;;  %v1987_v60 = vadd.f32 %v1986_v55, %v1730_v10  ;;  %2498 = vmatmul.mubr.f32.gmra.mxu0 %v2201_v6  ;;  %vm2076_vm2 = vcmp.gt.f32.partialorder %v1983_v24, 0.0  ;;  %v2203_v47 = vsel %vm2075_vm1, %v1981_v49, %v2139_v37  ;;  %v5700_v10 = vld [vmem:[#allocation95_spill] sm:$0xff] }
 0x2aa   : > { %v1988_v26 = vpop.f32.mrf.mxu1 }
 0x2ab   : > { %v1989_v63 = vadd.f32 %v1988_v26, %v1732_v4  ;;  %v2204_v35 = vsel %vm2076_vm2, %v1983_v24, %v2140_v7  ;;  %v2141_v0 = vmul.f32 0.2, %v1987_v60  ;;  %vm2077_vm3 = vcmp.gt.f32.partialorder %v1987_v60, 0.0  ;;  %v5701_v4 = vld [vmem:[#allocation96_spill] sm:$0xff]  ;;  %v1767_v7 = vpop.f32.mrf.mxu0 }
 0x2ac   : > { %v1992_v36 = vpop.f32.mrf.mxu1  ;;  %2503 = vmatprep.mubr.f32.mxu0 %v2204_v35  ;;  %v1760_v24 = vadd.f32 %v1759_v16, %v5700_v10  ;;  %v1762_v37 = vadd.f32 %v1761_v25, %v5701_v4 }
 0x2ad   : > { %v2142_v30 = vmul.f32 0.2, %v1989_v63  ;;  %v1993_v11 = vadd.f32 %v1992_v36, %v1736_v20  ;;  %2504 = vmatmul.mubr.f32.gmra.mxu0 %v2203_v47  ;;  %vm2078_vm4 = vcmp.gt.f32.partialorder %v1989_v63, 0.0  ;;  %v2205_v21 = vsel %vm2077_vm3, %v1987_v60, %v2141_v0  ;;  %v5702_v20 = vld [vmem:[#allocation97_spill] sm:$0xff] }
 0x2ae   : > { %v1994_v42 = vpop.f32.mrf.mxu1 }
 0x2af   : > { %v1995_v29 = vadd.f32 %v1994_v42, %v1738_v51  ;;  %v2206_v23 = vsel %vm2078_vm4, %v1989_v63, %v2142_v30  ;;  %v2143_v33 = vmul.f32 0.2, %v1993_v11  ;;  %vm2079_vm5 = vcmp.gt.f32.partialorder %v1993_v11, 0.0  ;;  %v5703_v51 = vld [vmem:[#allocation98_spill] sm:$0xff] }
 0x2b0   : > { %v1998_v13 = vpop.f32.mrf.mxu1  ;;  %2509 = vmatprep.mubr.f32.mxu0 %v2206_v23  ;;  %v1766_v63 = vadd.f32 %v1765_v34, %v5702_v20  ;;  %v1768_v0 = vadd.f32 %v1767_v7, %v5703_v51 }
 0x2b1   : > { %v2144_v12 = vmul.f32 0.2, %v1995_v29  ;;  %v1999_v57 = vadd.f32 %v1998_v13, %v1742_v3  ;;  %2510 = vmatmul.mubr.f32.gmra.mxu0 %v2205_v21  ;;  %vm2080_vm6 = vcmp.gt.f32.partialorder %v1995_v29, 0.0  ;;  %v2207_v8 = vsel %vm2079_vm5, %v1993_v11, %v2143_v33  ;;  %v2283_v13 = vld [vmem:[%s5512_s4] sm:$0x3]  ;;  %v5704_v21 = vld [vmem:[#allocation68_spill] sm:$0xff] }
 0x2b2   : > { %v2000_v58 = vpop.f32.mrf.mxu1  ;;  %v5123_v16 = vrot.slane %v2283_v13, %v5704_v21 }
 0x2b3   : > { %v2001_v22 = vadd.f32 %v2000_v58, %v1744_v18  ;;  %v2208_v17 = vsel %vm2080_vm6, %v1995_v29, %v2144_v12  ;;  %v2145_v59 = vmul.f32 0.2, %v1999_v57  ;;  %vm2081_vm7 = vcmp.gt.f32.partialorder %v1999_v57, 0.0  ;;  %v5705_v12 = vld [vmem:[#allocation70_spill] sm:$0xff] }
 0x2b4   : > { %v2004_v15 = vpop.f32.mrf.mxu1  ;;  %2515 = vmatprep.mubr.f32.mxu0 %v2208_v17 }
 0x2b5   : > { %v2146_v19 = vmul.f32 0.2, %v2001_v22  ;;  %v2005_v28 = vadd.f32 %v2004_v15, %v1748_v53  ;;  %2516 = vmatmul.mubr.f32.gmra.mxu0 %v2207_v8  ;;  %vm2082_vm8 = vcmp.gt.f32.partialorder %v2001_v22, 0.0  ;;  %v2209_v27 = vsel %vm2081_vm7, %v1999_v57, %v2145_v59  ;;  %v2744_v53 = vld [vmem:[%s5513_s5] sm:$0x3] }
 0x2b6   : > { %v2006_v9 = vpop.f32.mrf.mxu1  ;;  %v5126_v57 = vrot.slane %v2283_v13, %v5705_v12  ;;  %v5134_v59 = vrot.slane %v2744_v53, %v5704_v21  ;;  %v5137_v15 = vrot.slane %v2744_v53, %v5705_v12 }
 0x2b7   : > { %v2007_v52 = vadd.f32 %v2006_v9, %v1750_v14  ;;  %v2210_v38 = vsel %vm2082_vm8, %v2001_v22, %v2146_v19  ;;  %v2147_v31 = vmul.f32 0.2, %v2005_v28  ;;  %vm2083_vm9 = vcmp.gt.f32.partialorder %v2005_v28, 0.0 }
 0x2b8   : > { %v2010_v44 = vpop.f32.mrf.mxu1  ;;  %2521 = vmatprep.mubr.f32.mxu0 %v2210_v38 }
 0x2b9   : > { %v2148_v49 = vmul.f32 0.2, %v2007_v52  ;;  %v2011_v45 = vadd.f32 %v2010_v44, %v1754_v48  ;;  %2522 = vmatmul.mubr.f32.gmra.mxu0 %v2209_v27  ;;  %vm2084_vm10 = vcmp.gt.f32.partialorder %v2007_v52, 0.0  ;;  %v2211_v56 = vsel %vm2083_vm9, %v2005_v28, %v2147_v31 }
 0x2ba   : > { %v2012_v40 = vpop.f32.mrf.mxu1 }
 0x2bb   : > { %v2013_v61 = vadd.f32 %v2012_v40, %v1756_v2  ;;  %v2212_v41 = vsel %vm2084_vm10, %v2007_v52, %v2148_v49  ;;  %v2149_v55 = vmul.f32 0.2, %v2011_v45  ;;  %vm2085_vm11 = vcmp.gt.f32.partialorder %v2011_v45, 0.0 }
 0x2bc   : > { %v2016_v6 = vpop.f32.mrf.mxu1  ;;  %2527 = vmatprep.mubr.f32.mxu0 %v2212_v41 }
 0x2bd   : > { %v2150_v60 = vmul.f32 0.2, %v2013_v61  ;;  %v2017_v26 = vadd.f32 %v2016_v6, %v1760_v24  ;;  %2528 = vmatmul.mubr.f32.gmra.mxu0 %v2211_v56  ;;  %vm2086_vm12 = vcmp.gt.f32.partialorder %v2013_v61, 0.0  ;;  %v2213_v46 = vsel %vm2085_vm11, %v2011_v45, %v2149_v55 }
 0x2be   : > { %v2018_v43 = vpop.f32.mrf.mxu1 }
 0x2bf   : > { %v2019_v35 = vadd.f32 %v2018_v43, %v1762_v37  ;;  %v2214_v32 = vsel %vm2086_vm12, %v2013_v61, %v2150_v60  ;;  %v2151_v36 = vmul.f32 0.2, %v2017_v26  ;;  %vm2087_vm13 = vcmp.gt.f32.partialorder %v2017_v26, 0.0 }
 0x2c0   : > { %v2022_v47 = vpop.f32.mrf.mxu1  ;;  %2533 = vmatprep.mubr.f32.mxu0 %v2214_v32 }
 0x2c1   : > { %v2152_v30 = vmul.f32 0.2, %v2019_v35  ;;  %v2023_v11 = vadd.f32 %v2022_v47, %v1766_v63  ;;  %2534 = vmatmul.mubr.f32.gmra.mxu0 %v2213_v46  ;;  %vm2088_vm14 = vcmp.gt.f32.partialorder %v2019_v35, 0.0  ;;  %v2215_v23 = vsel %vm2087_vm13, %v2017_v26, %v2151_v36 }
 0x2c2   : > { %v2024_v42 = vpop.f32.mrf.mxu1 }
 0x2c3   : > { %v2025_v39 = vadd.f32 %v2024_v42, %v1768_v0  ;;  %v2216_v3 = vsel %vm2088_vm14, %v2019_v35, %v2152_v30  ;;  %v2153_v29 = vmul.f32 0.2, %v2023_v11  ;;  %vm2089_vm15 = vcmp.gt.f32.partialorder %v2023_v11, 0.0 }
 0x2c4   : > { %2539 = vmatprep.mubr.f32.mxu0 %v2216_v3 }
 0x2c5   : > { %v2154_v50 = vmul.f32 0.2, %v2025_v39  ;;  %2540 = vmatmul.mubr.f32.gmra.mxu0 %v2215_v23  ;;  %vm2090_vm0 = vcmp.gt.f32.partialorder %v2025_v39, 0.0  ;;  %v2217_v33 = vsel %vm2089_vm15, %v2023_v11, %v2153_v29 }
 0x2c7   : > { %v2218_v18 = vsel %vm2090_vm0, %v2025_v39, %v2154_v50 }
 0x2c8   : > { %2545 = vmatprep.mubr.f32.mxu0 %v2218_v18 }
 0x2c9   : > { %2546 = vmatmul.mubr.f32.gmra.mxu0 %v2217_v33 }
 0x30d   : > { %v2361_v58 = vpop.f32.mrf.mxu0 }
 0x30e   : > { %v2362_v62 = vadd.f32 %v2361_v58, %v5123_v16 }
 0x30f   : > { %v2363_v22 = vpop.f32.mrf.mxu0 }
 0x310   : > { %vm2552_vm1 = vcmp.gt.f32.partialorder %v2362_v62, 0.0  ;;  %v2616_v17 = vmul.f32 0.2, %v2362_v62  ;;  %v2364_v5 = vadd.f32 %v2363_v22, %v5126_v57 }
 0x311   : > { %v2367_v14 = vpop.f32.mrf.mxu0 }
 0x312   : > { %vm2553_vm2 = vcmp.gt.f32.partialorder %v2364_v5, 0.0  ;;  %v2617_v8 = vmul.f32 0.2, %v2364_v5  ;;  %v2368_v25 = vadd.f32 %v2367_v14, %v5123_v16  ;;  %v2680_v19 = vsel %vm2552_vm1, %v2362_v62, %v2616_v17 }
 0x313   : > { %v2369_v28 = vpop.f32.mrf.mxu0  ;;  %v2756_v38 = vmul.f32 %v5134_v59, %v2680_v19 }
 0x314   : > { %vm2554_vm3 = vcmp.gt.f32.partialorder %v2368_v25, 0.0  ;;  %v2618_v9 = vmul.f32 0.2, %v2368_v25  ;;  %v2370_v54 = vadd.f32 %v2369_v28, %v5126_v57  ;;  %v2681_v48 = vsel %vm2553_vm2, %v2364_v5, %v2617_v8 }
 0x315   : > { %v2373_v52 = vpop.f32.mrf.mxu0  ;;  %v2757_v1 = vmul.f32 %v5137_v15, %v2681_v48 }
 0x316   : > { %vm2555_vm4 = vcmp.gt.f32.partialorder %v2370_v54, 0.0  ;;  %v2619_v2 = vmul.f32 0.2, %v2370_v54  ;;  %v2374_v31 = vadd.f32 %v2373_v52, %v5123_v16  ;;  %v2682_v44 = vsel %vm2554_vm3, %v2368_v25, %v2618_v9 }
 0x317   : > { %v2375_v27 = vpop.f32.mrf.mxu0  ;;  %v2820_v34 = vadd.f32 %v2757_v1, %v2756_v38  ;;  %v2758_v24 = vmul.f32 %v5134_v59, %v2682_v44 }
 0x318   : > { %vm2556_vm5 = vcmp.gt.f32.partialorder %v2374_v31, 0.0  ;;  %v2620_v49 = vmul.f32 0.2, %v2374_v31  ;;  %v2376_v45 = vadd.f32 %v2375_v27, %v5126_v57  ;;  %v2683_v40 = vsel %vm2555_vm4, %v2370_v54, %v2619_v2 }
 0x319   : > { %v2379_v10 = vpop.f32.mrf.mxu0  ;;  %2821 = vadd.xlane.f32.xlu0 %v2820_v34  ;;  %v2759_v61 = vmul.f32 %v5137_v15, %v2683_v40 }
 0x31a   : > { %vm2557_vm6 = vcmp.gt.f32.partialorder %v2376_v45, 0.0  ;;  %v2621_v41 = vmul.f32 0.2, %v2376_v45  ;;  %v2380_v4 = vadd.f32 %v2379_v10, %v5123_v16  ;;  %v2684_v37 = vsel %vm2556_vm5, %v2374_v31, %v2620_v49 }
 0x31b   : > { %v2381_v55 = vpop.f32.mrf.mxu0  ;;  %v2823_v6 = vadd.f32 %v2759_v61, %v2758_v24  ;;  %v2760_v43 = vmul.f32 %v5134_v59, %v2684_v37 }
 0x31c   : > { %vm2558_vm7 = vcmp.gt.f32.partialorder %v2380_v4, 0.0  ;;  %v2622_v56 = vmul.f32 0.2, %v2380_v4  ;;  %v2382_v7 = vadd.f32 %v2381_v55, %v5126_v57  ;;  %v2685_v60 = vsel %vm2557_vm6, %v2376_v45, %v2621_v41 }
 0x31d   : > { %v2385_v26 = vpop.f32.mrf.mxu0  ;;  %2824 = vadd.xlane.f32.xlu0 %v2823_v6  ;;  %v2761_v20 = vmul.f32 %v5137_v15, %v2685_v60 }
 0x31e   : > { %vm2559_vm8 = vcmp.gt.f32.partialorder %v2382_v7, 0.0  ;;  %v2623_v63 = vmul.f32 0.2, %v2382_v7  ;;  %v2386_v35 = vadd.f32 %v2385_v26, %v5123_v16  ;;  %v2686_v32 = vsel %vm2558_vm7, %v2380_v4, %v2622_v56 }
 0x31f   : > { %v2387_v51 = vpop.f32.mrf.mxu0  ;;  %v2826_v0 = vadd.f32 %v2761_v20, %v2760_v43  ;;  %v2762_v11 = vmul.f32 %v5134_v59, %v2686_v32 }
 0x320   : > { %vm2560_vm9 = vcmp.gt.f32.partialorder %v2386_v35, 0.0  ;;  %v2624_v36 = vmul.f32 0.2, %v2386_v35  ;;  %v2388_v47 = vadd.f32 %v2387_v51, %v5126_v57  ;;  %v2687_v46 = vsel %vm2559_vm8, %v2382_v7, %v2623_v63 }
 0x321   : > { %v2391_v30 = vpop.f32.mrf.mxu0  ;;  %2827 = vadd.xlane.f32.xlu1 %v2826_v0  ;;  %v2763_v42 = vmul.f32 %v5137_v15, %v2687_v46 }
 0x322   : > { %vm2561_vm10 = vcmp.gt.f32.partialorder %v2388_v47, 0.0  ;;  %v2625_v39 = vmul.f32 0.2, %v2388_v47  ;;  %v2392_v3 = vadd.f32 %v2391_v30, %v5123_v16  ;;  %v2688_v29 = vsel %vm2560_vm9, %v2386_v35, %v2624_v36 }
 0x323   : > { %v2393_v23 = vpop.f32.mrf.mxu0  ;;  %v2829_v50 = vadd.f32 %v2763_v42, %v2762_v11  ;;  %v2764_v12 = vmul.f32 %v5134_v59, %v2688_v29 }
 0x324   : > { %vm2562_vm11 = vcmp.gt.f32.partialorder %v2392_v3, 0.0  ;;  %v2626_v18 = vmul.f32 0.2, %v2392_v3  ;;  %v2394_v33 = vadd.f32 %v2393_v23, %v5126_v57  ;;  %v2689_v13 = vsel %vm2561_vm10, %v2388_v47, %v2625_v39 }
 0x325   : > { %v2397_v21 = vpop.f32.mrf.mxu0  ;;  %2830 = vadd.xlane.f32.xlu1 %v2829_v50  ;;  %v2765_v58 = vmul.f32 %v5137_v15, %v2689_v13 }
 0x326   : > { %vm2563_vm12 = vcmp.gt.f32.partialorder %v2394_v33, 0.0  ;;  %v2627_v62 = vmul.f32 0.2, %v2394_v33  ;;  %v2398_v53 = vadd.f32 %v2397_v21, %v5123_v16  ;;  %v2690_v22 = vsel %vm2562_vm11, %v2392_v3, %v2626_v18 }
 0x327   : > { %v2399_v17 = vpop.f32.mrf.mxu0  ;;  %v2832_v5 = vadd.f32 %v2765_v58, %v2764_v12  ;;  %v2766_v28 = vmul.f32 %v5134_v59, %v2690_v22 }
 0x328   : > { %vm2564_vm13 = vcmp.gt.f32.partialorder %v2398_v53, 0.0  ;;  %v2628_v14 = vmul.f32 0.2, %v2398_v53  ;;  %v2400_v8 = vadd.f32 %v2399_v17, %v5126_v57  ;;  %v2691_v25 = vsel %vm2563_vm12, %v2394_v33, %v2627_v62 }
 0x329   : > { %v2403_v19 = vpop.f32.mrf.mxu0  ;;  %2833 = vadd.xlane.f32.xlu0 %v2832_v5  ;;  %v2767_v9 = vmul.f32 %v5137_v15, %v2691_v25 }
 0x32a   : > { %vm2565_vm14 = vcmp.gt.f32.partialorder %v2400_v8, 0.0  ;;  %v2629_v54 = vmul.f32 0.2, %v2400_v8  ;;  %v2404_v48 = vadd.f32 %v2403_v19, %v5123_v16  ;;  %v2692_v52 = vsel %vm2564_vm13, %v2398_v53, %v2628_v14 }
 0x32b   : > { %v2405_v38 = vpop.f32.mrf.mxu0  ;;  %v2835_v1 = vadd.f32 %v2767_v9, %v2766_v28  ;;  %v2768_v34 = vmul.f32 %v5134_v59, %v2692_v52 }
 0x32c   : > { %vm2566_vm15 = vcmp.gt.f32.partialorder %v2404_v48, 0.0  ;;  %v2630_v2 = vmul.f32 0.2, %v2404_v48  ;;  %v2406_v31 = vadd.f32 %v2405_v38, %v5126_v57  ;;  %v2693_v44 = vsel %vm2565_vm14, %v2400_v8, %v2629_v54 }
 0x32d   : > { %v2409_v27 = vpop.f32.mrf.mxu0  ;;  %2836 = vadd.xlane.f32.xlu1 %v2835_v1  ;;  %v2769_v49 = vmul.f32 %v5137_v15, %v2693_v44 }
 0x32e   : > { %vm2567_vm0 = vcmp.gt.f32.partialorder %v2406_v31, 0.0  ;;  %v2631_v45 = vmul.f32 0.2, %v2406_v31  ;;  %v2410_v40 = vadd.f32 %v2409_v27, %v5123_v16  ;;  %v2694_v10 = vsel %vm2566_vm15, %v2404_v48, %v2630_v2 }
 0x32f   : > { %v2411_v24 = vpop.f32.mrf.mxu0  ;;  %v2838_v61 = vadd.f32 %v2769_v49, %v2768_v34  ;;  %v2770_v6 = vmul.f32 %v5134_v59, %v2694_v10 }
 0x330   : > { %vm2568_vm1 = vcmp.gt.f32.partialorder %v2410_v40, 0.0  ;;  %v2632_v41 = vmul.f32 0.2, %v2410_v40  ;;  %v2412_v4 = vadd.f32 %v2411_v24, %v5126_v57  ;;  %v2695_v37 = vsel %vm2567_vm0, %v2406_v31, %v2631_v45 }
 0x331   : > { %v2415_v55 = vpop.f32.mrf.mxu0  ;;  %2839 = vadd.xlane.f32.xlu0 %v2838_v61  ;;  %v2771_v56 = vmul.f32 %v5137_v15, %v2695_v37 }
 0x332   : > { %vm2569_vm2 = vcmp.gt.f32.partialorder %v2412_v4, 0.0  ;;  %v2633_v7 = vmul.f32 0.2, %v2412_v4  ;;  %v2416_v60 = vadd.f32 %v2415_v55, %v5123_v16  ;;  %v2696_v26 = vsel %vm2568_vm1, %v2410_v40, %v2632_v41 }
 0x333   : > { %v2417_v43 = vpop.f32.mrf.mxu0  ;;  %v2841_v20 = vadd.f32 %v2771_v56, %v2770_v6  ;;  %v2772_v0 = vmul.f32 %v5134_v59, %v2696_v26 }
 0x334   : > { %vm2570_vm3 = vcmp.gt.f32.partialorder %v2416_v60, 0.0  ;;  %v2634_v63 = vmul.f32 0.2, %v2416_v60  ;;  %v2418_v35 = vadd.f32 %v2417_v43, %v5126_v57  ;;  %v2697_v32 = vsel %vm2569_vm2, %v2412_v4, %v2633_v7 }
 0x335   : > { %v2421_v51 = vpop.f32.mrf.mxu0  ;;  %2842 = vadd.xlane.f32.xlu1 %v2841_v20  ;;  %v2773_v36 = vmul.f32 %v5137_v15, %v2697_v32 }
 0x336   : > { %vm2571_vm4 = vcmp.gt.f32.partialorder %v2418_v35, 0.0  ;;  %v2635_v47 = vmul.f32 0.2, %v2418_v35  ;;  %v2422_v46 = vadd.f32 %v2421_v51, %v5123_v16  ;;  %v2698_v30 = vsel %vm2570_vm3, %v2416_v60, %v2634_v63 }
 0x337   : > { %v2423_v11 = vpop.f32.mrf.mxu0  ;;  %v2844_v42 = vadd.f32 %v2773_v36, %v2772_v0  ;;  %v2774_v50 = vmul.f32 %v5134_v59, %v2698_v30 }
 0x338   : > { %vm2572_vm5 = vcmp.gt.f32.partialorder %v2422_v46, 0.0  ;;  %v2636_v39 = vmul.f32 0.2, %v2422_v46  ;;  %v2424_v3 = vadd.f32 %v2423_v11, %v5126_v57  ;;  %v2699_v29 = vsel %vm2571_vm4, %v2418_v35, %v2635_v47 }
 0x339   : > { %v2427_v23 = vpop.f32.mrf.mxu0  ;;  %2845 = vadd.xlane.f32.xlu0 %v2844_v42  ;;  %v2775_v18 = vmul.f32 %v5137_v15, %v2699_v29 }
 0x33a   : > { %vm2573_vm6 = vcmp.gt.f32.partialorder %v2424_v3, 0.0  ;;  %v2637_v33 = vmul.f32 0.2, %v2424_v3  ;;  %v2428_v13 = vadd.f32 %v2427_v23, %v5123_v16  ;;  %v2700_v21 = vsel %vm2572_vm5, %v2422_v46, %v2636_v39 }
 0x33b   : > { %v2429_v12 = vpop.f32.mrf.mxu0  ;;  %v2847_v58 = vadd.f32 %v2775_v18, %v2774_v50  ;;  %v2776_v5 = vmul.f32 %v5134_v59, %v2700_v21 }
 0x33c   : > { %vm2574_vm7 = vcmp.gt.f32.partialorder %v2428_v13, 0.0  ;;  %v2638_v62 = vmul.f32 0.2, %v2428_v13  ;;  %v2430_v53 = vadd.f32 %v2429_v12, %v5126_v57  ;;  %v2701_v22 = vsel %vm2573_vm6, %v2424_v3, %v2637_v33 }
 0x33d   : > { %v2433_v17 = vpop.f32.mrf.mxu0  ;;  %2848 = vadd.xlane.f32.xlu1 %v2847_v58  ;;  %v2777_v14 = vmul.f32 %v5137_v15, %v2701_v22 }
 0x33e   : > { %vm2575_vm8 = vcmp.gt.f32.partialorder %v2430_v53, 0.0  ;;  %v2639_v8 = vmul.f32 0.2, %v2430_v53  ;;  %v2434_v25 = vadd.f32 %v2433_v17, %v5123_v16  ;;  %v2702_v19 = vsel %vm2574_vm7, %v2428_v13, %v2638_v62 }
 0x33f   : > { %v2435_v28 = vpop.f32.mrf.mxu0  ;;  %v2850_v9 = vadd.f32 %v2777_v14, %v2776_v5  ;;  %v2778_v1 = vmul.f32 %v5134_v59, %v2702_v19 }
 0x340   : > { %vm2576_vm9 = vcmp.gt.f32.partialorder %v2434_v25, 0.0  ;;  %v2640_v54 = vmul.f32 0.2, %v2434_v25  ;;  %v2436_v48 = vadd.f32 %v2435_v28, %v5126_v57  ;;  %v2703_v52 = vsel %vm2575_vm8, %v2430_v53, %v2639_v8 }
 0x341   : > { %v2439_v38 = vpop.f32.mrf.mxu0  ;;  %2851 = vadd.xlane.f32.xlu0 %v2850_v9  ;;  %v2779_v2 = vmul.f32 %v5137_v15, %v2703_v52 }
 0x342   : > { %vm2577_vm10 = vcmp.gt.f32.partialorder %v2436_v48, 0.0  ;;  %v2641_v31 = vmul.f32 0.2, %v2436_v48  ;;  %v2440_v44 = vadd.f32 %v2439_v38, %v5123_v16  ;;  %v2704_v27 = vsel %vm2576_vm9, %v2434_v25, %v2640_v54 }
 0x343   : > { %v2441_v34 = vpop.f32.mrf.mxu0  ;;  %v2853_v49 = vadd.f32 %v2779_v2, %v2778_v1  ;;  %v2780_v61 = vmul.f32 %v5134_v59, %v2704_v27 }
 0x344   : > { %vm2578_vm11 = vcmp.gt.f32.partialorder %v2440_v44, 0.0  ;;  %v2642_v45 = vmul.f32 0.2, %v2440_v44  ;;  %v2442_v40 = vadd.f32 %v2441_v34, %v5126_v57  ;;  %v2705_v10 = vsel %vm2577_vm10, %v2436_v48, %v2641_v31 }
 0x345   : > { %v2445_v24 = vpop.f32.mrf.mxu0  ;;  %2854 = vadd.xlane.f32.xlu1 %v2853_v49  ;;  %v2781_v41 = vmul.f32 %v5137_v15, %v2705_v10 }
 0x346   : > { %vm2579_vm12 = vcmp.gt.f32.partialorder %v2442_v40, 0.0  ;;  %v2643_v4 = vmul.f32 0.2, %v2442_v40  ;;  %v2446_v37 = vadd.f32 %v2445_v24, %v5123_v16  ;;  %v2706_v55 = vsel %vm2578_vm11, %v2440_v44, %v2642_v45 }
 0x347   : > { %v2447_v6 = vpop.f32.mrf.mxu0  ;;  %v2856_v56 = vadd.f32 %v2781_v41, %v2780_v61  ;;  %v2782_v20 = vmul.f32 %v5134_v59, %v2706_v55 }
 0x348   : > { %vm2580_vm13 = vcmp.gt.f32.partialorder %v2446_v37, 0.0  ;;  %v2644_v7 = vmul.f32 0.2, %v2446_v37  ;;  %v2448_v60 = vadd.f32 %v2447_v6, %v5126_v57  ;;  %v2707_v26 = vsel %vm2579_vm12, %v2442_v40, %v2643_v4 }
 0x349   : > { %v2451_v43 = vpop.f32.mrf.mxu0  ;;  %2857 = vadd.xlane.f32.xlu0 %v2856_v56  ;;  %v2783_v63 = vmul.f32 %v5137_v15, %v2707_v26 }
 0x34a   : > { %vm2581_vm14 = vcmp.gt.f32.partialorder %v2448_v60, 0.0  ;;  %v2645_v35 = vmul.f32 0.2, %v2448_v60  ;;  %v2452_v32 = vadd.f32 %v2451_v43, %v5123_v16  ;;  %v2708_v51 = vsel %vm2580_vm13, %v2446_v37, %v2644_v7 }
 0x34b   : > { %v2453_v0 = vpop.f32.mrf.mxu0  ;;  %v2859_v36 = vadd.f32 %v2783_v63, %v2782_v20  ;;  %v2784_v42 = vmul.f32 %v5134_v59, %v2708_v51 }
 0x34c   : > { %vm2582_vm15 = vcmp.gt.f32.partialorder %v2452_v32, 0.0  ;;  %v2646_v47 = vmul.f32 0.2, %v2452_v32  ;;  %v2454_v46 = vadd.f32 %v2453_v0, %v5126_v57  ;;  %v2709_v30 = vsel %vm2581_vm14, %v2448_v60, %v2645_v35 }
 0x34d   : > { %v2457_v11 = vpop.f32.mrf.mxu0  ;;  %2860 = vadd.xlane.f32.xlu1 %v2859_v36  ;;  %v2785_v39 = vmul.f32 %v5137_v15, %v2709_v30 }
 0x34e   : > { %vm2583_vm0 = vcmp.gt.f32.partialorder %v2454_v46, 0.0  ;;  %v2647_v3 = vmul.f32 0.2, %v2454_v46  ;;  %v2458_v29 = vadd.f32 %v2457_v11, %v5123_v16  ;;  %v2710_v23 = vsel %vm2582_vm15, %v2452_v32, %v2646_v47 }
 0x34f   : > { %v2459_v50 = vpop.f32.mrf.mxu0  ;;  %v2862_v18 = vadd.f32 %v2785_v39, %v2784_v42  ;;  %v2786_v58 = vmul.f32 %v5134_v59, %v2710_v23 }
 0x350   : > { %vm2584_vm1 = vcmp.gt.f32.partialorder %v2458_v29, 0.0  ;;  %v2648_v33 = vmul.f32 0.2, %v2458_v29  ;;  %v2460_v13 = vadd.f32 %v2459_v50, %v5126_v57  ;;  %v2711_v21 = vsel %vm2583_vm0, %v2454_v46, %v2647_v3 }
 0x351   : > { %v2463_v12 = vpop.f32.mrf.mxu0  ;;  %2863 = vadd.xlane.f32.xlu0 %v2862_v18  ;;  %v2787_v62 = vmul.f32 %v5137_v15, %v2711_v21 }
 0x352   : > { %vm2585_vm2 = vcmp.gt.f32.partialorder %v2460_v13, 0.0  ;;  %v2649_v53 = vmul.f32 0.2, %v2460_v13  ;;  %v2464_v22 = vadd.f32 %v2463_v12, %v5123_v16  ;;  %v2712_v17 = vsel %vm2584_vm1, %v2458_v29, %v2648_v33 }
 0x353   : > { %v2465_v5 = vpop.f32.mrf.mxu0  ;;  %v2865_v14 = vadd.f32 %v2787_v62, %v2786_v58  ;;  %v2788_v9 = vmul.f32 %v5134_v59, %v2712_v17 }
 0x354   : > { %vm2586_vm3 = vcmp.gt.f32.partialorder %v2464_v22, 0.0  ;;  %v2650_v8 = vmul.f32 0.2, %v2464_v22  ;;  %v2466_v25 = vadd.f32 %v2465_v5, %v5126_v57  ;;  %v2713_v19 = vsel %vm2585_vm2, %v2460_v13, %v2649_v53 }
 0x355   : > { %v2469_v28 = vpop.f32.mrf.mxu0  ;;  %2866 = vadd.xlane.f32.xlu1 %v2865_v14  ;;  %v2789_v54 = vmul.f32 %v5137_v15, %v2713_v19 }
 0x356   : > { %vm2587_vm4 = vcmp.gt.f32.partialorder %v2466_v25, 0.0  ;;  %v2651_v48 = vmul.f32 0.2, %v2466_v25  ;;  %v2470_v52 = vadd.f32 %v2469_v28, %v5123_v16  ;;  %v2714_v38 = vsel %vm2586_vm3, %v2464_v22, %v2650_v8 }
 0x357   : > { %v2471_v1 = vpop.f32.mrf.mxu0  ;;  %v2868_v2 = vadd.f32 %v2789_v54, %v2788_v9  ;;  %v2790_v49 = vmul.f32 %v5134_v59, %v2714_v38 }
 0x358   : > { %vm2588_vm5 = vcmp.gt.f32.partialorder %v2470_v52, 0.0  ;;  %v2652_v31 = vmul.f32 0.2, %v2470_v52  ;;  %v2472_v44 = vadd.f32 %v2471_v1, %v5126_v57  ;;  %v2715_v27 = vsel %vm2587_vm4, %v2466_v25, %v2651_v48 }
 0x359   : > { %v2475_v34 = vpop.f32.mrf.mxu0  ;;  %2869 = vadd.xlane.f32.xlu0 %v2868_v2  ;;  %v2791_v45 = vmul.f32 %v5137_v15, %v2715_v27 }
 0x35a   : > { %vm2589_vm6 = vcmp.gt.f32.partialorder %v2472_v44, 0.0  ;;  %v2653_v40 = vmul.f32 0.2, %v2472_v44  ;;  %v2476_v10 = vadd.f32 %v2475_v34, %v5123_v16  ;;  %v2716_v24 = vsel %vm2588_vm5, %v2470_v52, %v2652_v31 }
 0x35b   : > { %v2477_v61 = vpop.f32.mrf.mxu0  ;;  %v2871_v41 = vadd.f32 %v2791_v45, %v2790_v49  ;;  %v2792_v56 = vmul.f32 %v5134_v59, %v2716_v24 }
 0x35c   : > { %vm2590_vm7 = vcmp.gt.f32.partialorder %v2476_v10, 0.0  ;;  %v2654_v4 = vmul.f32 0.2, %v2476_v10  ;;  %v2478_v37 = vadd.f32 %v2477_v61, %v5126_v57  ;;  %v2717_v55 = vsel %vm2589_vm6, %v2472_v44, %v2653_v40 }
 0x35d   : > { %v2481_v6 = vpop.f32.mrf.mxu0  ;;  %2872 = vadd.xlane.f32.xlu1 %v2871_v41  ;;  %v2793_v7 = vmul.f32 %v5137_v15, %v2717_v55 }
 0x35e   : > { %vm2591_vm8 = vcmp.gt.f32.partialorder %v2478_v37, 0.0  ;;  %v2655_v60 = vmul.f32 0.2, %v2478_v37  ;;  %v2482_v26 = vadd.f32 %v2481_v6, %v5123_v16  ;;  %v2718_v43 = vsel %vm2590_vm7, %v2476_v10, %v2654_v4 }
 0x35f   : > { %v2483_v20 = vpop.f32.mrf.mxu0  ;;  %v2874_v63 = vadd.f32 %v2793_v7, %v2792_v56  ;;  %v2794_v36 = vmul.f32 %v5134_v59, %v2718_v43 }
 0x360   : > { %vm2592_vm9 = vcmp.gt.f32.partialorder %v2482_v26, 0.0  ;;  %v2656_v35 = vmul.f32 0.2, %v2482_v26  ;;  %v2484_v32 = vadd.f32 %v2483_v20, %v5126_v57  ;;  %v2719_v51 = vsel %vm2591_vm8, %v2478_v37, %v2655_v60 }
 0x361   : > { %v2487_v0 = vpop.f32.mrf.mxu0  ;;  %2875 = vadd.xlane.f32.xlu0 %v2874_v63  ;;  %v2795_v47 = vmul.f32 %v5137_v15, %v2719_v51 }
 0x362   : > { %vm2593_vm10 = vcmp.gt.f32.partialorder %v2484_v32, 0.0  ;;  %v2657_v46 = vmul.f32 0.2, %v2484_v32  ;;  %v2488_v30 = vadd.f32 %v2487_v0, %v5123_v16  ;;  %v2720_v11 = vsel %vm2592_vm9, %v2482_v26, %v2656_v35 }
 0x363   : > { %v2489_v42 = vpop.f32.mrf.mxu0  ;;  %v2877_v39 = vadd.f32 %v2795_v47, %v2794_v36  ;;  %v2796_v18 = vmul.f32 %v5134_v59, %v2720_v11 }
 0x364   : > { %vm2594_vm11 = vcmp.gt.f32.partialorder %v2488_v30, 0.0  ;;  %v2658_v3 = vmul.f32 0.2, %v2488_v30  ;;  %v2490_v29 = vadd.f32 %v2489_v42, %v5126_v57  ;;  %v2721_v23 = vsel %vm2593_vm10, %v2484_v32, %v2657_v46 }
 0x365   : > { %v2493_v50 = vpop.f32.mrf.mxu0  ;;  %2878 = vadd.xlane.f32.xlu1 %v2877_v39  ;;  %v2797_v33 = vmul.f32 %v5137_v15, %v2721_v23 }
 0x366   : > { %vm2595_vm12 = vcmp.gt.f32.partialorder %v2490_v29, 0.0  ;;  %v2659_v13 = vmul.f32 0.2, %v2490_v29  ;;  %v2494_v21 = vadd.f32 %v2493_v50, %v5123_v16  ;;  %v2722_v12 = vsel %vm2594_vm11, %v2488_v30, %v2658_v3 }
 0x367   : > { %v2495_v58 = vpop.f32.mrf.mxu0  ;;  %v2880_v62 = vadd.f32 %v2797_v33, %v2796_v18  ;;  %v2798_v14 = vmul.f32 %v5134_v59, %v2722_v12 }
 0x368   : > { %vm2596_vm13 = vcmp.gt.f32.partialorder %v2494_v21, 0.0  ;;  %v2660_v53 = vmul.f32 0.2, %v2494_v21  ;;  %v2496_v22 = vadd.f32 %v2495_v58, %v5126_v57  ;;  %v2723_v17 = vsel %vm2595_vm12, %v2490_v29, %v2659_v13 }
 0x369   : > { %v2499_v5 = vpop.f32.mrf.mxu0  ;;  %2881 = vadd.xlane.f32.xlu0 %v2880_v62  ;;  %v2799_v8 = vmul.f32 %v5137_v15, %v2723_v17 }
 0x36a   : > { %vm2597_vm14 = vcmp.gt.f32.partialorder %v2496_v22, 0.0  ;;  %v2661_v25 = vmul.f32 0.2, %v2496_v22  ;;  %v2500_v19 = vadd.f32 %v2499_v5, %v5123_v16  ;;  %v2724_v28 = vsel %vm2596_vm13, %v2494_v21, %v2660_v53 }
 0x36b   : > { %v2501_v9 = vpop.f32.mrf.mxu0  ;;  %v2883_v54 = vadd.f32 %v2799_v8, %v2798_v14  ;;  %v2800_v2 = vmul.f32 %v5134_v59, %v2724_v28 }
 0x36c   : > { %vm2598_vm15 = vcmp.gt.f32.partialorder %v2500_v19, 0.0  ;;  %v2662_v48 = vmul.f32 0.2, %v2500_v19  ;;  %v2502_v52 = vadd.f32 %v2501_v9, %v5126_v57  ;;  %v2725_v38 = vsel %vm2597_vm14, %v2496_v22, %v2661_v25 }
 0x36d   : > { %v2505_v1 = vpop.f32.mrf.mxu0  ;;  %2884 = vadd.xlane.f32.xlu1 %v2883_v54  ;;  %v2801_v31 = vmul.f32 %v5137_v15, %v2725_v38 }
 0x36e   : > { %vm2599_vm0 = vcmp.gt.f32.partialorder %v2502_v52, 0.0  ;;  %v2663_v44 = vmul.f32 0.2, %v2502_v52  ;;  %v2506_v27 = vadd.f32 %v2505_v1, %v5123_v16  ;;  %v2726_v34 = vsel %vm2598_vm15, %v2500_v19, %v2662_v48 }
 0x36f   : > { %v2507_v49 = vpop.f32.mrf.mxu0  ;;  %v2886_v45 = vadd.f32 %v2801_v31, %v2800_v2  ;;  %v2802_v41 = vmul.f32 %v5134_v59, %v2726_v34 }
 0x370   : > { %vm2600_vm1 = vcmp.gt.f32.partialorder %v2506_v27, 0.0  ;;  %v2664_v40 = vmul.f32 0.2, %v2506_v27  ;;  %v2508_v10 = vadd.f32 %v2507_v49, %v5126_v57  ;;  %v2727_v24 = vsel %vm2599_vm0, %v2502_v52, %v2663_v44 }
 0x371   : > { %v2511_v61 = vpop.f32.mrf.mxu0  ;;  %2887 = vadd.xlane.f32.xlu0 %v2886_v45  ;;  %v2803_v4 = vmul.f32 %v5137_v15, %v2727_v24 }
 0x372   : > { %vm2601_vm2 = vcmp.gt.f32.partialorder %v2508_v10, 0.0  ;;  %v2665_v37 = vmul.f32 0.2, %v2508_v10  ;;  %v2512_v55 = vadd.f32 %v2511_v61, %v5123_v16  ;;  %v2728_v6 = vsel %vm2600_vm1, %v2506_v27, %v2664_v40 }
 0x373   : > { %v2513_v56 = vpop.f32.mrf.mxu0  ;;  %v2889_v7 = vadd.f32 %v2803_v4, %v2802_v41  ;;  %v2804_v63 = vmul.f32 %v5134_v59, %v2728_v6  ;;  %vm3142_vm1 = vcmask 7168  }
 0x374   : > { %vm2602_vm3 = vcmp.gt.f32.partialorder %v2512_v55, 0.0  ;;  %v2666_v60 = vmul.f32 0.2, %v2512_v55  ;;  %v2514_v26 = vadd.f32 %v2513_v56, %v5126_v57  ;;  %v2729_v43 = vsel %vm2601_vm2, %v2508_v10, %v2665_v37 }
 0x375   : > { %v2517_v20 = vpop.f32.mrf.mxu0  ;;  %2890 = vadd.xlane.f32.xlu1 %v2889_v7  ;;  %v2805_v35 = vmul.f32 %v5137_v15, %v2729_v43 }
 0x376   : > { %vm2603_vm4 = vcmp.gt.f32.partialorder %v2514_v26, 0.0  ;;  %v2667_v32 = vmul.f32 0.2, %v2514_v26  ;;  %v2518_v51 = vadd.f32 %v2517_v20, %v5123_v16  ;;  %v2730_v0 = vsel %vm2602_vm3, %v2512_v55, %v2666_v60 }
 0x377   : > { %v2519_v36 = vpop.f32.mrf.mxu0  ;;  %v2892_v47 = vadd.f32 %v2805_v35, %v2804_v63  ;;  %v2806_v39 = vmul.f32 %v5134_v59, %v2730_v0 }
 0x378   : > { %vm2604_vm5 = vcmp.gt.f32.partialorder %v2518_v51, 0.0  ;;  %v2668_v46 = vmul.f32 0.2, %v2518_v51  ;;  %v2520_v30 = vadd.f32 %v2519_v36, %v5126_v57  ;;  %v2731_v11 = vsel %vm2603_vm4, %v2514_v26, %v2667_v32 }
 0x379   : > { %v2523_v42 = vpop.f32.mrf.mxu0  ;;  %2893 = vadd.xlane.f32.xlu0 %v2892_v47  ;;  %v2807_v3 = vmul.f32 %v5137_v15, %v2731_v11 }
 0x37a   : > { %vm2605_vm6 = vcmp.gt.f32.partialorder %v2520_v30, 0.0  ;;  %v2669_v29 = vmul.f32 0.2, %v2520_v30  ;;  %v2524_v23 = vadd.f32 %v2523_v42, %v5123_v16  ;;  %v2732_v50 = vsel %vm2604_vm5, %v2518_v51, %v2668_v46 }
 0x37b   : > { %v2525_v18 = vpop.f32.mrf.mxu0  ;;  %v2895_v33 = vadd.f32 %v2807_v3, %v2806_v39  ;;  %v2808_v62 = vmul.f32 %v5134_v59, %v2732_v50 }
 0x37c   : > { %vm2606_vm7 = vcmp.gt.f32.partialorder %v2524_v23, 0.0  ;;  %v2670_v13 = vmul.f32 0.2, %v2524_v23  ;;  %v2526_v21 = vadd.f32 %v2525_v18, %v5126_v57  ;;  %v2733_v12 = vsel %vm2605_vm6, %v2520_v30, %v2669_v29 }
 0x37d   : > { %v2529_v58 = vpop.f32.mrf.mxu0  ;;  %2896 = vadd.xlane.f32.xlu1 %v2895_v33  ;;  %v2809_v53 = vmul.f32 %v5137_v15, %v2733_v12 }
 0x37e   : > { %vm2607_vm8 = vcmp.gt.f32.partialorder %v2526_v21, 0.0  ;;  %v2671_v22 = vmul.f32 0.2, %v2526_v21  ;;  %v2530_v17 = vadd.f32 %v2529_v58, %v5123_v16  ;;  %v2734_v5 = vsel %vm2606_vm7, %v2524_v23, %v2670_v13 }
 0x37f   : > { %v2531_v14 = vpop.f32.mrf.mxu0  ;;  %v2898_v8 = vadd.f32 %v2809_v53, %v2808_v62  ;;  %v2810_v54 = vmul.f32 %v5134_v59, %v2734_v5 }
 0x380   : > { %vm2608_vm9 = vcmp.gt.f32.partialorder %v2530_v17, 0.0  ;;  %v2672_v25 = vmul.f32 0.2, %v2530_v17  ;;  %v2532_v19 = vadd.f32 %v2531_v14, %v5126_v57  ;;  %v2735_v28 = vsel %vm2607_vm8, %v2526_v21, %v2671_v22 }
 0x381   : > { %v2535_v9 = vpop.f32.mrf.mxu0  ;;  %2899 = vadd.xlane.f32.xlu0 %v2898_v8  ;;  %v2811_v48 = vmul.f32 %v5137_v15, %v2735_v28 }
 0x382   : > { %vm2609_vm10 = vcmp.gt.f32.partialorder %v2532_v19, 0.0  ;;  %v2673_v52 = vmul.f32 0.2, %v2532_v19  ;;  %v2536_v38 = vadd.f32 %v2535_v9, %v5123_v16  ;;  %v2736_v1 = vsel %vm2608_vm9, %v2530_v17, %v2672_v25 }
 0x383   : > { %v2537_v2 = vpop.f32.mrf.mxu0  ;;  %v2901_v31 = vadd.f32 %v2811_v48, %v2810_v54  ;;  %v2812_v45 = vmul.f32 %v5134_v59, %v2736_v1 }
 0x384   : > { %vm2610_vm11 = vcmp.gt.f32.partialorder %v2536_v38, 0.0  ;;  %v2674_v44 = vmul.f32 0.2, %v2536_v38  ;;  %v2538_v27 = vadd.f32 %v2537_v2, %v5126_v57  ;;  %v2737_v34 = vsel %vm2609_vm10, %v2532_v19, %v2673_v52 }
 0x385   : > { %v2541_v49 = vpop.f32.mrf.mxu0  ;;  %2902 = vadd.xlane.f32.xlu1 %v2901_v31  ;;  %v2813_v40 = vmul.f32 %v5137_v15, %v2737_v34 }
 0x386   : > { %vm2611_vm12 = vcmp.gt.f32.partialorder %v2538_v27, 0.0  ;;  %v2675_v10 = vmul.f32 0.2, %v2538_v27  ;;  %v2542_v24 = vadd.f32 %v2541_v49, %v5123_v16  ;;  %v2738_v61 = vsel %vm2610_vm11, %v2536_v38, %v2674_v44 }
 0x387   : > { %v2543_v41 = vpop.f32.mrf.mxu0  ;;  %v2904_v4 = vadd.f32 %v2813_v40, %v2812_v45  ;;  %v2814_v7 = vmul.f32 %v5134_v59, %v2738_v61 }
 0x388   : > { %vm2612_vm13 = vcmp.gt.f32.partialorder %v2542_v24, 0.0  ;;  %v2676_v37 = vmul.f32 0.2, %v2542_v24  ;;  %v2544_v55 = vadd.f32 %v2543_v41, %v5126_v57  ;;  %v2739_v6 = vsel %vm2611_vm12, %v2538_v27, %v2675_v10 }
 0x389   : > { %v2547_v56 = vpop.f32.mrf.mxu0  ;;  %2905 = vadd.xlane.f32.xlu0 %v2904_v4  ;;  %v2815_v60 = vmul.f32 %v5137_v15, %v2739_v6 }
 0x38a   : > { %vm2613_vm14 = vcmp.gt.f32.partialorder %v2544_v55, 0.0  ;;  %v2677_v26 = vmul.f32 0.2, %v2544_v55  ;;  %v2548_v43 = vadd.f32 %v2547_v56, %v5123_v16  ;;  %v2740_v20 = vsel %vm2612_vm13, %v2542_v24, %v2676_v37 }
 0x38b   : > { %v2549_v63 = vpop.f32.mrf.mxu0  ;;  %v2907_v35 = vadd.f32 %v2815_v60, %v2814_v7  ;;  %v2816_v36 = vmul.f32 %v5134_v59, %v2740_v20 }
 0x38c   : > { %vm2614_vm15 = vcmp.gt.f32.partialorder %v2548_v43, 0.0  ;;  %v2678_v32 = vmul.f32 0.2, %v2548_v43  ;;  %v2550_v51 = vadd.f32 %v2549_v63, %v5126_v57  ;;  %v2741_v0 = vsel %vm2613_vm14, %v2544_v55, %v2677_v26 }
 0x38d   : > { %2908 = vadd.xlane.f32.xlu1 %v2907_v35  ;;  %v2817_v47 = vmul.f32 %v5137_v15, %v2741_v0  ;;  %v5265_v57 = vstv %s2916_s15 }
 0x38e   : > { %vm2615_vm0 = vcmp.gt.f32.partialorder %v2550_v51, 0.0  ;;  %v2679_v46 = vmul.f32 0.2, %v2550_v51  ;;  %v2742_v30 = vsel %vm2614_vm15, %v2548_v43, %v2678_v32 }
 0x38f   : > { %v2910_v11 = vadd.f32 %v2817_v47, %v2816_v36  ;;  %v2818_v16 = vmul.f32 %v5134_v59, %v2742_v30 }
 0x390   : > { %v2743_v42 = vsel %vm2615_vm0, %v2550_v51, %v2679_v46 }
 0x391   : > { %2911 = vadd.xlane.f32.xlu0 %v2910_v11  ;;  %v2819_v39 = vmul.f32 %v5137_v15, %v2743_v42 }
 0x393   : > { %v2913_v3 = vadd.f32 %v2819_v39, %v2818_v16 }
 0x395   : > { %2914 = vadd.xlane.f32.xlu1 %v2913_v3 }
 0x3a2   : > { %v2822_v29 = vpop.xlane.xlu0 %2821 }
 0x3a3   : > { %v2918_v23 = vadd.f32 %v5265_v57, %v2822_v29 }
 0x3a5   : > { %v2950_v50 = vsub.f32 0.0, %v2918_v23 }
 0x3a6   : > { %v2825_v18 = vpop.xlane.xlu0 %2824 }
 0x3a7   : > { %v2982_v33 = vmul.f32 1.442695, %v2950_v50  ;;  %v2919_v13 = vadd.f32 %v5265_v57, %v2825_v18 }
 0x3a9   : > { %3803 = vpow2.f32 %v2982_v33  ;;  %v2951_v21 = vsub.f32 0.0, %v2919_v13 }
 0x3aa   : > { %v2828_v12 = vpop.xlane.xlu1 %2827 }
 0x3ab   : > { %v2984_v58 = vmul.f32 1.442695, %v2951_v21  ;;  %v2920_v59 = vadd.f32 %v5265_v57, %v2828_v12 }
 0x3ad   : > { %3805 = vpow2.f32 %v2984_v58  ;;  %v2952_v15 = vsub.f32 0.0, %v2920_v59 }
 0x3ae   : > { %v2831_v62 = vpop.xlane.xlu1 %2830 }
 0x3af   : > { %v2986_v53 = vmul.f32 1.442695, %v2952_v15  ;;  %v2921_v22 = vadd.f32 %v5265_v57, %v2831_v62 }
 0x3b1   : > { %3807 = vpow2.f32 %v2986_v53  ;;  %v2953_v17 = vsub.f32 0.0, %v2921_v22 }
 0x3b2   : > { %v2834_v5 = vpop.xlane.xlu0 %2833 }
 0x3b3   : > { %v2988_v14 = vmul.f32 1.442695, %v2953_v17  ;;  %v2922_v8 = vadd.f32 %v5265_v57, %v2834_v5 }
 0x3b5   : > { %3809 = vpow2.f32 %v2988_v14  ;;  %v2954_v25 = vsub.f32 0.0, %v2922_v8 }
 0x3b6   : > { %v3804_v19 = vpop.eup %3803  ;;  %v2837_v28 = vpop.xlane.xlu1 %2836 }
 0x3b7   : > { %v3046_v9 = vadd.f32 1.0, %v3804_v19  ;;  %v2990_v54 = vmul.f32 1.442695, %v2954_v25  ;;  %v2923_v48 = vadd.f32 %v5265_v57, %v2837_v28 }
 0x3b9   : > { %3811 = vrcp.f32 %v3046_v9  ;;  %v2955_v52 = vsub.f32 0.0, %v2923_v48 }
 0x3ba   : > { %v3806_v38 = vpop.eup %3805  ;;  %3813 = vpow2.f32 %v2990_v54  ;;  %v2840_v1 = vpop.xlane.xlu0 %2839 }
 0x3bb   : > { %v3047_v2 = vadd.f32 1.0, %v3806_v38  ;;  %v2992_v31 = vmul.f32 1.442695, %v2955_v52  ;;  %v2924_v44 = vadd.f32 %v5265_v57, %v2840_v1 }
 0x3bd   : > { %3815 = vrcp.f32 %v3047_v2  ;;  %v2956_v27 = vsub.f32 0.0, %v2924_v44 }
 0x3be   : > { %v3808_v34 = vpop.eup %3807  ;;  %3817 = vpow2.f32 %v2992_v31  ;;  %v2843_v49 = vpop.xlane.xlu1 %2842 }
 0x3bf   : > { %v3048_v45 = vadd.f32 1.0, %v3808_v34  ;;  %v2994_v40 = vmul.f32 1.442695, %v2956_v27  ;;  %v2925_v10 = vadd.f32 %v5265_v57, %v2843_v49 }
 0x3c1   : > { %3819 = vrcp.f32 %v3048_v45  ;;  %v2957_v24 = vsub.f32 0.0, %v2925_v10 }
 0x3c2   : > { %v3810_v61 = vpop.eup %3809  ;;  %3821 = vpow2.f32 %v2994_v40  ;;  %v2846_v41 = vpop.xlane.xlu0 %2845 }
 0x3c3   : > { %v3049_v4 = vadd.f32 1.0, %v3810_v61  ;;  %v2996_v37 = vmul.f32 1.442695, %v2957_v24  ;;  %v2926_v55 = vadd.f32 %v5265_v57, %v2846_v41 }
 0x3c5   : > { %3823 = vrcp.f32 %v3049_v4  ;;  %v2958_v6 = vsub.f32 0.0, %v2926_v55 }
 0x3c6   : > { %v3812_v56 = vpop.eup %3811  ;;  %3825 = vpow2.f32 %v2996_v37  ;;  %v2849_v7 = vpop.xlane.xlu1 %2848 }
 0x3c7   : > { %v3814_v60 = vpop.eup %3813  ;;  %3143 = vst.msk [vmem:[%s5277_s18] sm:$0xff] %vm3142_vm1, %v3812_v56  ;;  %v2998_v26 = vmul.f32 1.442695, %v2958_v6  ;;  %v2927_v43 = vadd.f32 %v5265_v57, %v2849_v7 }
 0x3c8   : > { %v3050_v20 = vadd.f32 1.0, %v3814_v60 }
 0x3c9   : > { %3827 = vpow2.f32 %v2998_v26  ;;  %v2959_v63 = vsub.f32 0.0, %v2927_v43 }
 0x3ca   : > { %v3816_v35 = vpop.eup %3815  ;;  %3829 = vrcp.f32 %v3050_v20  ;;  %v2852_v32 = vpop.xlane.xlu0 %2851 }
 0x3cb   : > { %v3818_v51 = vpop.eup %3817  ;;  %3144 = vst.msk [vmem:[%s5277_s18 + $0x8] sm:$0xff] %vm3142_vm1, %v3816_v35  ;;  %v3000_v0 = vmul.f32 1.442695, %v2959_v63  ;;  %v2928_v36 = vadd.f32 %v5265_v57, %v2852_v32 }
 0x3cc   : > { %v3051_v47 = vadd.f32 1.0, %v3818_v51 }
 0x3cd   : > { %3831 = vpow2.f32 %v3000_v0  ;;  %v2960_v46 = vsub.f32 0.0, %v2928_v36 }
 0x3ce   : > { %v3820_v30 = vpop.eup %3819  ;;  %3833 = vrcp.f32 %v3051_v47  ;;  %v2855_v11 = vpop.xlane.xlu1 %2854 }
 0x3cf   : > { %v3822_v42 = vpop.eup %3821  ;;  %3145 = vst.msk [vmem:[%s5277_s18 + $0x10] sm:$0xff] %vm3142_vm1, %v3820_v30  ;;  %v3002_v16 = vmul.f32 1.442695, %v2960_v46  ;;  %v2929_v39 = vadd.f32 %v5265_v57, %v2855_v11 }
 0x3d0   : > { %v3052_v3 = vadd.f32 1.0, %v3822_v42 }
 0x3d1   : > { %3835 = vpow2.f32 %v3002_v16  ;;  %v2961_v29 = vsub.f32 0.0, %v2929_v39 }
 0x3d2   : > { %v3824_v23 = vpop.eup %3823  ;;  %3837 = vrcp.f32 %v3052_v3  ;;  %v2858_v50 = vpop.xlane.xlu0 %2857 }
 0x3d3   : > { %v3826_v18 = vpop.eup %3825  ;;  %3146 = vst.msk [vmem:[%s5277_s18 + $0x18] sm:$0xff] %vm3142_vm1, %v3824_v23  ;;  %v3004_v33 = vmul.f32 1.442695, %v2961_v29  ;;  %v2930_v13 = vadd.f32 %v5265_v57, %v2858_v50 }
 0x3d4   : > { %v3053_v21 = vadd.f32 1.0, %v3826_v18 }
 0x3d5   : > { %3839 = vpow2.f32 %v3004_v33  ;;  %v2962_v12 = vsub.f32 0.0, %v2930_v13 }
 0x3d6   : > { %v3828_v58 = vpop.eup %3827  ;;  %3841 = vrcp.f32 %v3053_v21  ;;  %v2861_v59 = vpop.xlane.xlu1 %2860 }
 0x3d7   : > { %v3830_v15 = vpop.eup %3829  ;;  %v3054_v62 = vadd.f32 1.0, %v3828_v58  ;;  %v3006_v53 = vmul.f32 1.442695, %v2962_v12  ;;  %v2931_v22 = vadd.f32 %v5265_v57, %v2861_v59 }
 0x3d8   : > { %3147 = vst.msk [vmem:[%s5277_s18 + $0x20] sm:$0xff] %vm3142_vm1, %v3830_v15 }
 0x3d9   : > { %3843 = vrcp.f32 %v3054_v62  ;;  %v2963_v17 = vsub.f32 0.0, %v2931_v22 }
 0x3da   : > { %v3832_v5 = vpop.eup %3831  ;;  %3845 = vpow2.f32 %v3006_v53  ;;  %v2864_v14 = vpop.xlane.xlu0 %2863 }
 0x3db   : > { %v3834_v8 = vpop.eup %3833  ;;  %v3055_v25 = vadd.f32 1.0, %v3832_v5  ;;  %v3008_v19 = vmul.f32 1.442695, %v2963_v17  ;;  %v2932_v28 = vadd.f32 %v5265_v57, %v2864_v14 }
 0x3dc   : > { %3148 = vst.msk [vmem:[%s5277_s18 + $0x28] sm:$0xff] %vm3142_vm1, %v3834_v8 }
 0x3dd   : > { %3847 = vrcp.f32 %v3055_v25  ;;  %v2964_v9 = vsub.f32 0.0, %v2932_v28 }
 0x3de   : > { %v3836_v54 = vpop.eup %3835  ;;  %3849 = vpow2.f32 %v3008_v19  ;;  %v2867_v48 = vpop.xlane.xlu1 %2866 }
 0x3df   : > { %v3838_v52 = vpop.eup %3837  ;;  %v3056_v38 = vadd.f32 1.0, %v3836_v54  ;;  %v3010_v1 = vmul.f32 1.442695, %v2964_v9  ;;  %v2933_v2 = vadd.f32 %v5265_v57, %v2867_v48 }
 0x3e0   : > { %3149 = vst.msk [vmem:[%s5277_s18 + $0x30] sm:$0xff] %vm3142_vm1, %v3838_v52 }
 0x3e1   : > { %3851 = vrcp.f32 %v3056_v38  ;;  %v2965_v31 = vsub.f32 0.0, %v2933_v2 }
 0x3e2   : > { %v3840_v44 = vpop.eup %3839  ;;  %3853 = vpow2.f32 %v3010_v1  ;;  %v2870_v27 = vpop.xlane.xlu0 %2869 }
 0x3e3   : > { %v3842_v34 = vpop.eup %3841  ;;  %v3057_v49 = vadd.f32 1.0, %v3840_v44  ;;  %v3012_v45 = vmul.f32 1.442695, %v2965_v31  ;;  %v2934_v40 = vadd.f32 %v5265_v57, %v2870_v27 }
 0x3e4   : > { %3150 = vst.msk [vmem:[%s5277_s18 + $0x38] sm:$0xff] %vm3142_vm1, %v3842_v34 }
 0x3e5   : > { %3855 = vrcp.f32 %v3057_v49  ;;  %v2966_v10 = vsub.f32 0.0, %v2934_v40 }
 0x3e6   : > { %v3844_v24 = vpop.eup %3843  ;;  %3857 = vpow2.f32 %v3012_v45  ;;  %v2873_v61 = vpop.xlane.xlu1 %2872 }
 0x3e7   : > { %v3846_v41 = vpop.eup %3845  ;;  %3151 = vst.msk [vmem:[%s5277_s18 + $0x40] sm:$0xff] %vm3142_vm1, %v3844_v24  ;;  %v3014_v4 = vmul.f32 1.442695, %v2966_v10  ;;  %v2935_v37 = vadd.f32 %v5265_v57, %v2873_v61 }
 0x3e8   : > { %v3058_v55 = vadd.f32 1.0, %v3846_v41 }
 0x3e9   : > { %3859 = vpow2.f32 %v3014_v4  ;;  %v2967_v6 = vsub.f32 0.0, %v2935_v37 }
 0x3ea   : > { %v3848_v56 = vpop.eup %3847  ;;  %3861 = vrcp.f32 %v3058_v55  ;;  %v2876_v7 = vpop.xlane.xlu0 %2875 }
 0x3eb   : > { %v3850_v60 = vpop.eup %3849  ;;  %3152 = vst.msk [vmem:[%s5277_s18 + $0x48] sm:$0xff] %vm3142_vm1, %v3848_v56  ;;  %v3016_v26 = vmul.f32 1.442695, %v2967_v6  ;;  %v2936_v43 = vadd.f32 %v5265_v57, %v2876_v7 }
 0x3ec   : > { %v3059_v20 = vadd.f32 1.0, %v3850_v60 }
 0x3ed   : > { %3863 = vpow2.f32 %v3016_v26  ;;  %v2968_v63 = vsub.f32 0.0, %v2936_v43 }
 0x3ee   : > { %v3852_v35 = vpop.eup %3851  ;;  %3865 = vrcp.f32 %v3059_v20  ;;  %v2879_v32 = vpop.xlane.xlu1 %2878 }
 0x3ef   : > { %v3854_v51 = vpop.eup %3853  ;;  %3153 = vst.msk [vmem:[%s5277_s18 + $0x50] sm:$0xff] %vm3142_vm1, %v3852_v35  ;;  %v3018_v0 = vmul.f32 1.442695, %v2968_v63  ;;  %v2937_v36 = vadd.f32 %v5265_v57, %v2879_v32 }
 0x3f0   : > { %v3060_v47 = vadd.f32 1.0, %v3854_v51 }
 0x3f1   : > { %3867 = vpow2.f32 %v3018_v0  ;;  %v2969_v46 = vsub.f32 0.0, %v2937_v36 }
 0x3f2   : > { %v3856_v30 = vpop.eup %3855  ;;  %3869 = vrcp.f32 %v3060_v47  ;;  %v2882_v11 = vpop.xlane.xlu0 %2881 }
 0x3f3   : > { %v3858_v42 = vpop.eup %3857  ;;  %3154 = vst.msk [vmem:[%s5277_s18 + $0x58] sm:$0xff] %vm3142_vm1, %v3856_v30  ;;  %v3020_v16 = vmul.f32 1.442695, %v2969_v46  ;;  %v2938_v39 = vadd.f32 %v5265_v57, %v2882_v11 }
 0x3f4   : > { %v3061_v3 = vadd.f32 1.0, %v3858_v42 }
 0x3f5   : > { %3871 = vpow2.f32 %v3020_v16  ;;  %v2970_v29 = vsub.f32 0.0, %v2938_v39 }
 0x3f6   : > { %v3860_v23 = vpop.eup %3859  ;;  %3873 = vrcp.f32 %v3061_v3  ;;  %v2885_v50 = vpop.xlane.xlu1 %2884 }
 0x3f7   : > { %v3862_v18 = vpop.eup %3861  ;;  %v3062_v33 = vadd.f32 1.0, %v3860_v23  ;;  %v3022_v13 = vmul.f32 1.442695, %v2970_v29  ;;  %v2939_v21 = vadd.f32 %v5265_v57, %v2885_v50 }
 0x3f8   : > { %3155 = vst.msk [vmem:[%s5277_s18 + $0x60] sm:$0xff] %vm3142_vm1, %v3862_v18 }
 0x3f9   : > { %3875 = vrcp.f32 %v3062_v33  ;;  %v2971_v12 = vsub.f32 0.0, %v2939_v21 }
 0x3fa   : > { %v3864_v58 = vpop.eup %3863  ;;  %3877 = vpow2.f32 %v3022_v13  ;;  %v2888_v59 = vpop.xlane.xlu0 %2887 }
 0x3fb   : > { %v3866_v15 = vpop.eup %3865  ;;  %v3063_v62 = vadd.f32 1.0, %v3864_v58  ;;  %v3024_v53 = vmul.f32 1.442695, %v2971_v12  ;;  %v2940_v22 = vadd.f32 %v5265_v57, %v2888_v59 }
 0x3fc   : > { %3156 = vst.msk [vmem:[%s5277_s18 + $0x68] sm:$0xff] %vm3142_vm1, %v3866_v15 }
 0x3fd   : > { %3879 = vrcp.f32 %v3063_v62  ;;  %v2972_v17 = vsub.f32 0.0, %v2940_v22 }
 0x3fe   : > { %v3868_v5 = vpop.eup %3867  ;;  %3881 = vpow2.f32 %v3024_v53  ;;  %v2891_v14 = vpop.xlane.xlu1 %2890 }
 0x3ff   : > { %v3870_v8 = vpop.eup %3869  ;;  %v3064_v25 = vadd.f32 1.0, %v3868_v5  ;;  %v3026_v19 = vmul.f32 1.442695, %v2972_v17  ;;  %v2941_v28 = vadd.f32 %v5265_v57, %v2891_v14 }
 0x400   : > { %3157 = vst.msk [vmem:[%s5277_s18 + $0x70] sm:$0xff] %vm3142_vm1, %v3870_v8 }
 0x401   : > { %3883 = vrcp.f32 %v3064_v25  ;;  %v2973_v9 = vsub.f32 0.0, %v2941_v28 }
 0x402   : > { %v3872_v54 = vpop.eup %3871  ;;  %3885 = vpow2.f32 %v3026_v19  ;;  %v2894_v48 = vpop.xlane.xlu0 %2893 }
 0x403   : > { %v3874_v52 = vpop.eup %3873  ;;  %v3065_v38 = vadd.f32 1.0, %v3872_v54  ;;  %v3028_v1 = vmul.f32 1.442695, %v2973_v9  ;;  %v2942_v2 = vadd.f32 %v5265_v57, %v2894_v48 }
 0x404   : > { %3158 = vst.msk [vmem:[%s5277_s18 + $0x78] sm:$0xff] %vm3142_vm1, %v3874_v52 }
 0x405   : > { %3887 = vrcp.f32 %v3065_v38  ;;  %v2974_v31 = vsub.f32 0.0, %v2942_v2 }
 0x406   : > { %v3876_v44 = vpop.eup %3875  ;;  %3889 = vpow2.f32 %v3028_v1  ;;  %v2897_v27 = vpop.xlane.xlu1 %2896 }
 0x407   : > { %v3878_v34 = vpop.eup %3877  ;;  %3159 = vst.msk [vmem:[%s5277_s18 + $0x80] sm:$0xff] %vm3142_vm1, %v3876_v44  ;;  %v3030_v49 = vmul.f32 1.442695, %v2974_v31  ;;  %v2943_v45 = vadd.f32 %v5265_v57, %v2897_v27 }
 0x408   : > { %v3066_v40 = vadd.f32 1.0, %v3878_v34 }
 0x409   : > { %3891 = vpow2.f32 %v3030_v49  ;;  %v2975_v10 = vsub.f32 0.0, %v2943_v45 }
 0x40a   : > { %v3880_v24 = vpop.eup %3879  ;;  %3893 = vrcp.f32 %v3066_v40  ;;  %v2900_v61 = vpop.xlane.xlu0 %2899 }
 0x40b   : > { %v3882_v41 = vpop.eup %3881  ;;  %3160 = vst.msk [vmem:[%s5277_s18 + $0x88] sm:$0xff] %vm3142_vm1, %v3880_v24  ;;  %v3032_v4 = vmul.f32 1.442695, %v2975_v10  ;;  %v2944_v37 = vadd.f32 %v5265_v57, %v2900_v61 }
 0x40c   : > { %v3067_v55 = vadd.f32 1.0, %v3882_v41 }
 0x40d   : > { %3895 = vpow2.f32 %v3032_v4  ;;  %v2976_v6 = vsub.f32 0.0, %v2944_v37 }
 0x40e   : > { %v3884_v56 = vpop.eup %3883  ;;  %3897 = vrcp.f32 %v3067_v55  ;;  %v2903_v7 = vpop.xlane.xlu1 %2902 }
 0x40f   : > { %v3886_v60 = vpop.eup %3885  ;;  %3161 = vst.msk [vmem:[%s5277_s18 + $0x90] sm:$0xff] %vm3142_vm1, %v3884_v56  ;;  %v3034_v26 = vmul.f32 1.442695, %v2976_v6  ;;  %v2945_v43 = vadd.f32 %v5265_v57, %v2903_v7 }
 0x410   : > { %v3068_v20 = vadd.f32 1.0, %v3886_v60 }
 0x411   : > { %3899 = vpow2.f32 %v3034_v26  ;;  %v2977_v63 = vsub.f32 0.0, %v2945_v43 }
 0x412   : > { %v3888_v35 = vpop.eup %3887  ;;  %3901 = vrcp.f32 %v3068_v20  ;;  %v2906_v32 = vpop.xlane.xlu0 %2905 }
 0x413   : > { %v3890_v51 = vpop.eup %3889  ;;  %3162 = vst.msk [vmem:[%s5277_s18 + $0x98] sm:$0xff] %vm3142_vm1, %v3888_v35  ;;  %v3036_v0 = vmul.f32 1.442695, %v2977_v63  ;;  %v2946_v36 = vadd.f32 %v5265_v57, %v2906_v32 }
 0x414   : > { %v3069_v47 = vadd.f32 1.0, %v3890_v51 }
 0x415   : > { %3903 = vpow2.f32 %v3036_v0  ;;  %v2978_v46 = vsub.f32 0.0, %v2946_v36 }
 0x416   : > { %v3892_v30 = vpop.eup %3891  ;;  %3905 = vrcp.f32 %v3069_v47  ;;  %v2909_v11 = vpop.xlane.xlu1 %2908 }
 0x417   : > { %v3894_v42 = vpop.eup %3893  ;;  %v3070_v16 = vadd.f32 1.0, %v3892_v30  ;;  %v3038_v39 = vmul.f32 1.442695, %v2978_v46  ;;  %v2947_v3 = vadd.f32 %v5265_v57, %v2909_v11 }
 0x418   : > { %3163 = vst.msk [vmem:[%s5277_s18 + $0xa0] sm:$0xff] %vm3142_vm1, %v3894_v42 }
 0x419   : > { %3907 = vrcp.f32 %v3070_v16  ;;  %v2979_v29 = vsub.f32 0.0, %v2947_v3 }
 0x41a   : > { %v3896_v23 = vpop.eup %3895  ;;  %3909 = vpow2.f32 %v3038_v39  ;;  %v2912_v50 = vpop.xlane.xlu0 %2911 }
 0x41b   : > { %v3898_v18 = vpop.eup %3897  ;;  %v3071_v33 = vadd.f32 1.0, %v3896_v23  ;;  %v3040_v13 = vmul.f32 1.442695, %v2979_v29  ;;  %v2948_v21 = vadd.f32 %v5265_v57, %v2912_v50 }
 0x41c   : > { %3164 = vst.msk [vmem:[%s5277_s18 + $0xa8] sm:$0xff] %vm3142_vm1, %v3898_v18 }
 0x41d   : > { %3911 = vrcp.f32 %v3071_v33  ;;  %v2980_v12 = vsub.f32 0.0, %v2948_v21 }
 0x41e   : > { %v3900_v58 = vpop.eup %3899  ;;  %3913 = vpow2.f32 %v3040_v13  ;;  %v2915_v59 = vpop.xlane.xlu1 %2914 }
 0x41f   : > { %v3902_v15 = vpop.eup %3901  ;;  %v3072_v62 = vadd.f32 1.0, %v3900_v58  ;;  %v3042_v53 = vmul.f32 1.442695, %v2980_v12  ;;  %v2949_v22 = vadd.f32 %v5265_v57, %v2915_v59 }
 0x420   : > { %3165 = vst.msk [vmem:[%s5277_s18 + $0xb0] sm:$0xff] %vm3142_vm1, %v3902_v15 }
 0x421   : > { %3915 = vrcp.f32 %v3072_v62  ;;  %v2981_v17 = vsub.f32 0.0, %v2949_v22 }
 0x422   : > { %v3904_v5 = vpop.eup %3903  ;;  %3917 = vpow2.f32 %v3042_v53 }
 0x423   : > { %v3906_v14 = vpop.eup %3905  ;;  %v3073_v8 = vadd.f32 1.0, %v3904_v5  ;;  %v3044_v25 = vmul.f32 1.442695, %v2981_v17 }
 0x424   : > { %3166 = vst.msk [vmem:[%s5277_s18 + $0xb8] sm:$0xff] %vm3142_vm1, %v3906_v14 }
 0x425   : > { %3919 = vrcp.f32 %v3073_v8 }
 0x426   : > { %v3908_v19 = vpop.eup %3907  ;;  %3921 = vpow2.f32 %v3044_v25 }
 0x427   : > { %v3910_v28 = vpop.eup %3909  ;;  %3167 = vst.msk [vmem:[%s5277_s18 + $0xc0] sm:$0xff] %vm3142_vm1, %v3908_v19 }
 0x428   : > { %v3074_v57 = vadd.f32 1.0, %v3910_v28 }
 0x42a   : > { %v3912_v9 = vpop.eup %3911  ;;  %3923 = vrcp.f32 %v3074_v57 }
 0x42b   : > { %v3914_v54 = vpop.eup %3913  ;;  %3168 = vst.msk [vmem:[%s5277_s18 + $0xc8] sm:$0xff] %vm3142_vm1, %v3912_v9 }
 0x42c   : > { %v3075_v48 = vadd.f32 1.0, %v3914_v54 }
 0x42e   : > { %v3916_v52 = vpop.eup %3915  ;;  %3925 = vrcp.f32 %v3075_v48 }
 0x42f   : > { %v3918_v38 = vpop.eup %3917  ;;  %3169 = vst.msk [vmem:[%s5277_s18 + $0xd0] sm:$0xff] %vm3142_vm1, %v3916_v52 }
 0x430   : > { %v3076_v1 = vadd.f32 1.0, %v3918_v38 }
 0x432   : > { %v3920_v2 = vpop.eup %3919  ;;  %3927 = vrcp.f32 %v3076_v1 }
 0x433   : > { %v3922_v31 = vpop.eup %3921  ;;  %3170 = vst.msk [vmem:[%s5277_s18 + $0xd8] sm:$0xff] %vm3142_vm1, %v3920_v2 }
 0x434   : > { %v3077_v44 = vadd.f32 1.0, %v3922_v31 }
 0x436   : > { %3929 = vrcp.f32 %v3077_v44 }
 0x437   : > { %v3924_v27 = vpop.eup %3923 }
 0x438   : > { %3171 = vst.msk [vmem:[%s5277_s18 + $0xe0] sm:$0xff] %vm3142_vm1, %v3924_v27 }
 0x43b   : > { %v3926_v34 = vpop.eup %3925 }
 0x43c   : > { %3172 = vst.msk [vmem:[%s5277_s18 + $0xe8] sm:$0xff] %vm3142_vm1, %v3926_v34 }
 0x43f   : > { %v3928_v49 = vpop.eup %3927 }
 0x440   : > { %3173 = vst.msk [vmem:[%s5277_s18 + $0xf0] sm:$0xff] %vm3142_vm1, %v3928_v49  ;;  %3181 = sbr.rel (!%p5706_p0) target bundleno = 1141 (0x475), region = 64 }
 0x443   : > { %v3930_v45 = vpop.eup %3929 }
 0x444   : > { %3174 = vst.msk [vmem:[%s5277_s18 + $0xf8] sm:$0xff] %vm3142_vm1, %v3930_v45 }
 0x445   : > { %s5719_s11 = smov (!%p3184_p9, %s3183_s11), 32 }
 0x446   : > { %s3595_s8 = sshll.u32 %s5719_s11, 7 }
 0x447   : > { %p3598_p12 = scmp.eq.s32.totalorder %s3595_s8, 0 }
 0x448   : > { %s5379_s13 = sshrl.u32 (!%p3598_p12), %s5719_s11, 5 }
 0x449   : > { %3192 = sbr.rel (%p3598_p12) target bundleno = 1141 (0x475), region = 68  ;;  %p3599_p1 = scmp.le.s32.totalorder (!%p3598_p12), %s5379_s13, 0 }
 0x44e   : > { %3480 = sbr.rel (%p3599_p1) target bundleno = 1124 (0x464), region = 150  ;;  %s5707_s6 = smov (!%p3599_p1), %s5373_s26 }
 0x44f   : > { %s5708_s9 = smov (!%p3599_p1), %s5277_s18  ;;  %s5388_s29 = smov (!%p3599_p1), 0  }
 0x450   : > { %s5390_s12 = smov (!%p3599_p1), 0  }
 0x453 LB: >> { %v3317_v40 = vld [vmem:[%s4087_s9] sm:$0xff]  ;;  %v3319_v10 = vld [vmem:[%s4087_s9 + $0x8] sm:$0xff]  ;;  %v3321_v24 = vld [vmem:[%s4087_s9 + $0x10] sm:$0xff]  ;;  %s3381_s14 = sadd.s32 1, %s4091_s29  ;;  %s3311_s12 = sadd.s32 1, %s4095_s12   ;;  %s4095_s12 = sphi %s5390_s12, %s3311_s12   ;;  %s4091_s29 = sphi %s5388_s29, %s5711_s29   ;;  %s4087_s9 = sphi %s5708_s9, %s5710_s9   ;;  %s4083_s6 = sphi %s5707_s6, %s5709_s6  }
 0x454   : >> { %3318 = vst [vmem:[%s4083_s6] sm:$0xff] %v3317_v40  ;;  %3320 = vst [vmem:[%s4083_s6 + $0x8] sm:$0xff] %v3319_v10  ;;  %v3323_v61 = vld [vmem:[%s4087_s9 + $0x18] sm:$0xff]  ;;  %v3325_v41 = vld [vmem:[%s4087_s9 + $0x20] sm:$0xff]  ;;  %p3382_p2 = scmp.ge.s32.totalorder %s3381_s14, %s5379_s13  ;;  %p3310_p6 = scmp.ge.s32.totalorder %s3311_s12, %s5379_s13 }
 0x455   : >> { %3322 = vst [vmem:[%s4083_s6 + $0x10] sm:$0xff] %v3321_v24  ;;  %v3327_v4 = vld [vmem:[%s4087_s9 + $0x28] sm:$0xff]  ;;  %3324 = vst [vmem:[%s4083_s6 + $0x18] sm:$0xff] %v3323_v61  ;;  %v3329_v37 = vld [vmem:[%s4087_s9 + $0x30] sm:$0xff] }
 0x456   : >> { %3326 = vst [vmem:[%s4083_s6 + $0x20] sm:$0xff] %v3325_v41  ;;  %3328 = vst [vmem:[%s4083_s6 + $0x28] sm:$0xff] %v3327_v4  ;;  %v3331_v55 = vld [vmem:[%s4087_s9 + $0x38] sm:$0xff]  ;;  %v3333_v6 = vld [vmem:[%s4087_s9 + $0x40] sm:$0xff]  ;;  %s5721_s14 = smov (%p3382_p2, %s3381_s14), 0 }
 0x457   : >> { %3330 = vst [vmem:[%s4083_s6 + $0x30] sm:$0xff] %v3329_v37  ;;  %3332 = vst [vmem:[%s4083_s6 + $0x38] sm:$0xff] %v3331_v55  ;;  %v3335_v56 = vld [vmem:[%s4087_s9 + $0x48] sm:$0xff]  ;;  %v3337_v7 = vld [vmem:[%s4087_s9 + $0x50] sm:$0xff]  ;;  %s3600_s20 = sshll.u32 %s5721_s14, 8  ;;  %s5711_s29 = smov %s5721_s14 }
 0x458   : >> { %3334 = vst [vmem:[%s4083_s6 + $0x40] sm:$0xff] %v3333_v6  ;;  %v3339_v60 = vld [vmem:[%s4087_s9 + $0x58] sm:$0xff]  ;;  %3336 = vst [vmem:[%s4083_s6 + $0x48] sm:$0xff] %v3335_v56  ;;  %v3341_v26 = vld [vmem:[%s4087_s9 + $0x60] sm:$0xff]  ;;  %s5446_s23 = scalar_lea.vmem %s5277_s18, %s3600_s20 [#allocation8]   ;;  %s3387_s21 = scalar_lea.vmem %s5373_s26, %s3600_s20  }
 0x459   : >> { %3338 = vst [vmem:[%s4083_s6 + $0x50] sm:$0xff] %v3337_v7  ;;  %3340 = vst [vmem:[%s4083_s6 + $0x58] sm:$0xff] %v3339_v60  ;;  %v3343_v43 = vld [vmem:[%s4087_s9 + $0x68] sm:$0xff]  ;;  %v3345_v20 = vld [vmem:[%s4087_s9 + $0x70] sm:$0xff] }
 0x45a   : >> { %3342 = vst [vmem:[%s4083_s6 + $0x60] sm:$0xff] %v3341_v26  ;;  %3344 = vst [vmem:[%s4083_s6 + $0x68] sm:$0xff] %v3343_v43  ;;  %v3347_v63 = vld [vmem:[%s4087_s9 + $0x78] sm:$0xff]  ;;  %v3349_v35 = vld [vmem:[%s4087_s9 + $0x80] sm:$0xff] }
 0x45b   : >> { %3346 = vst [vmem:[%s4083_s6 + $0x70] sm:$0xff] %v3345_v20  ;;  %v3351_v32 = vld [vmem:[%s4087_s9 + $0x88] sm:$0xff]  ;;  %3348 = vst [vmem:[%s4083_s6 + $0x78] sm:$0xff] %v3347_v63  ;;  %v3353_v51 = vld [vmem:[%s4087_s9 + $0x90] sm:$0xff] }
 0x45c   : >> { %3350 = vst [vmem:[%s4083_s6 + $0x80] sm:$0xff] %v3349_v35  ;;  %3352 = vst [vmem:[%s4083_s6 + $0x88] sm:$0xff] %v3351_v32  ;;  %v3355_v0 = vld [vmem:[%s4087_s9 + $0x98] sm:$0xff]  ;;  %v3357_v36 = vld [vmem:[%s4087_s9 + $0xa0] sm:$0xff] }
 0x45d   : >> { %3354 = vst [vmem:[%s4083_s6 + $0x90] sm:$0xff] %v3353_v51  ;;  %3356 = vst [vmem:[%s4083_s6 + $0x98] sm:$0xff] %v3355_v0  ;;  %v3359_v47 = vld [vmem:[%s4087_s9 + $0xa8] sm:$0xff]  ;;  %v3361_v46 = vld [vmem:[%s4087_s9 + $0xb0] sm:$0xff] }
 0x45e   : >> { %3358 = vst [vmem:[%s4083_s6 + $0xa0] sm:$0xff] %v3357_v36  ;;  %v3363_v30 = vld [vmem:[%s4087_s9 + $0xb8] sm:$0xff]  ;;  %3360 = vst [vmem:[%s4083_s6 + $0xa8] sm:$0xff] %v3359_v47  ;;  %v3365_v11 = vld [vmem:[%s4087_s9 + $0xc0] sm:$0xff] }
 0x45f   : >> { %3362 = vst [vmem:[%s4083_s6 + $0xb0] sm:$0xff] %v3361_v46  ;;  %3364 = vst [vmem:[%s4083_s6 + $0xb8] sm:$0xff] %v3363_v30  ;;  %v3367_v42 = vld [vmem:[%s4087_s9 + $0xc8] sm:$0xff]  ;;  %v3369_v16 = vld [vmem:[%s4087_s9 + $0xd0] sm:$0xff]  ;;  %3313 = sbr.rel (!%p3310_p6) target bundleno = 1107 (0x453), region = 156 }
 0x460   : >> { %3366 = vst [vmem:[%s4083_s6 + $0xc0] sm:$0xff] %v3365_v11  ;;  %3368 = vst [vmem:[%s4083_s6 + $0xc8] sm:$0xff] %v3367_v42  ;;  %v3371_v39 = vld [vmem:[%s4087_s9 + $0xd8] sm:$0xff]  ;;  %v3373_v3 = vld [vmem:[%s4087_s9 + $0xe0] sm:$0xff] }
 0x461   : >> { %3370 = vst [vmem:[%s4083_s6 + $0xd0] sm:$0xff] %v3369_v16  ;;  %v3375_v29 = vld [vmem:[%s4087_s9 + $0xe8] sm:$0xff]  ;;  %3372 = vst [vmem:[%s4083_s6 + $0xd8] sm:$0xff] %v3371_v39  ;;  %v3377_v23 = vld [vmem:[%s4087_s9 + $0xf0] sm:$0xff] }
 0x462   : >> { %3374 = vst [vmem:[%s4083_s6 + $0xe0] sm:$0xff] %v3373_v3  ;;  %3376 = vst [vmem:[%s4083_s6 + $0xe8] sm:$0xff] %v3375_v29  ;;  %v3379_v50 = vld [vmem:[%s4087_s9 + $0xf8] sm:$0xff]  ;;  %s5710_s9 = smov %s5446_s23 }
 0x463   : >> { %3378 = vst [vmem:[%s4083_s6 + $0xf0] sm:$0xff] %v3377_v23  ;;  %3380 = vst [vmem:[%s4083_s6 + $0xf8] sm:$0xff] %v3379_v50  ;;  %s5709_s6 = smov %s3387_s21 }
 0x464 PF: > { %s5487_s25 = sand.u32 31, %s5719_s11   ;;  %s3611_s15 = sshll.u32 %s5379_s13, 8 }
 0x465   : > { %s3392_s16 = scalar_lea.vmem %s5277_s18, %s3611_s15 [#allocation8]   ;;  %s3394_s17 = scalar_lea.vmem %s5373_s26, %s3611_s15  }
 0x466   : > { %p3605_p3 = scmp.le.s32.totalorder %s5487_s25, 0 }
 0x467   : > { %s4097_s19 = smov (!%p3605_p3), %s3394_s17   ;;  %s4101_s22 = smov (!%p3605_p3), %s3392_s16  }
 0x468   : > { %3494 = sbr.rel (%p3605_p3) target bundleno = 1141 (0x475), region = 161  ;;  %s4105_s24 = smov (!%p3605_p3), 0  }
 0x469   : > { %s4109_s8 = smov (!%p3605_p3), 0  }
 0x46d LB: >> { %v3404_v18 = vld [vmem:[%s4103_s22] sm:$0xff]  ;;  %s3406_s11 = sadd.s32 1, %s4107_s24  ;;  %s3398_s8 = sadd.s32 1, %s4111_s8   ;;  %s4111_s8 = sphi %s4109_s8, %s3398_s8   ;;  %s4107_s24 = sphi %s4105_s24, %s4106_s24   ;;  %s4103_s22 = sphi %s4101_s22, %s3411_s22   ;;  %s4099_s19 = sphi %s4097_s19, %s3412_s19  }
 0x46e   : >> { %3405 = vst [vmem:[%s4099_s19] sm:$0xff] %v3404_v18  ;;  %p3407_p7 = scmp.ge.s32.totalorder %s3406_s11, %s5487_s25  ;;  %p3397_p5 = scmp.ge.s32.totalorder %s3398_s8, %s5487_s25 }
 0x470   : >> { %s5723_s11 = smov (%p3407_p7, %s3406_s11), 0  ;;  %3400 = sbr.rel (!%p3397_p5) target bundleno = 1133 (0x46d), region = 167 }
 0x471   : >> { %s3606_s18 = sshll.u32 %s5723_s11, 3  ;;  %s4106_s24 = smov %s5723_s11  }
 0x472   : >> { %s3411_s22 = scalar_lea.vmem %s3392_s16, %s3606_s18 [#allocation8]   ;;  %s3412_s19 = scalar_lea.vmem %s3394_s17, %s3606_s18  }
 0x475 PF: > { %p19_p8 = scmp.ge.s32.totalorder %s4186_s30, 4   ;;  %s5712_s26 = smov %s4071_s27 }
 0x476   : > { %s5713_s27 = smov %s4075_s28  ;;  %s5714_s28 = smov %s4196_s10 }
 0x477   : > { %s5715_s29 = smov %s4186_s30  ;;  %21 = sbr.rel (!%p19_p8) target bundleno = 6 (0x6), region = 178 }
 0x47c   :  { %3428 = vsyncpa [#allocation4], 1 }
 0x47d   :  { %3430 = vsyncpa [#allocation4 + $0x1], 1 }
 0x47e   :  { %3431 = vsyncpa [#allocation6], 1 }

</bundles_post_ra>
